<compile_context>
chip_gen: v5e
topology: v5e:2x2
jax: 0.10.0
libtpu: 0.0.40
codegen_flags: <defaults>
</compile_context>

<pallas_src>
import math
from functools import partial

import numpy as np
import jax
import jax.numpy as jnp
from jax.experimental import pallas as pl
from jax.experimental.pallas import tpu as pltpu

_BN_EPS = 1e-5
_VMEM = pl.BlockSpec(memory_space=pltpu.MemorySpace.VMEM)


# ----------------------------------------------------------------------------
# In-kernel helpers: single-pass train-mode BatchNorm
# ----------------------------------------------------------------------------
def _bn_rows(z, g, b, count):
    """BN with per-channel stats over axis 0. z:(M,C), g/b:(1,C)."""
    inv = 1.0 / count
    mean = jnp.sum(z, axis=0, keepdims=True) * inv
    var = jnp.maximum(jnp.sum(z * z, axis=0, keepdims=True) * inv - mean * mean, 0.0)
    return (z - mean) * (jax.lax.rsqrt(var + _BN_EPS) * g) + b


def _bn_cols(z, g, b, count):
    """BN with per-channel stats over axis 1 (lanes). z:(C,M), g/b:(C,1)."""
    inv = 1.0 / count
    mean = jnp.sum(z, axis=1, keepdims=True) * inv
    var = jnp.maximum(jnp.sum(z * z, axis=1, keepdims=True) * inv - mean * mean, 0.0)
    return (z - mean) * (jax.lax.rsqrt(var + _BN_EPS) * g) + b


# ----------------------------------------------------------------------------
# Fused inverted-residual bottleneck kernel
# ----------------------------------------------------------------------------
def _bottleneck_kernel(*refs, t, s, shortcut, N, H, W, cin, cexp, cout):
    """Fused: [1x1 expand + BN + ReLU6] -> 3x3 depthwise(stride s) + BN + ReLU6
              -> 1x1 project + BN [+ residual].

    Ref order: x_row(M,cin), [w_exp(cin,cexp), g_exp(1,cexp), b_exp(1,cexp)],
               w_dw(9,cexp), g_dw(1,cexp), b_dw(1,cexp),
               w_proj_t(cout,cexp), g_proj(cout,1), b_proj(cout,1),
               [x_cm(cout, M)  (residual, only when shortcut)],
               o_ref(cout, Mo),  pad_ref scratch (N, s, s, PH, PW, cexp).

    Row ordering of x_row / z is (n, ph, pw, i, j) with h = s*i + ph, w = s*j + pw
    (plain (n, h, w) when s == 1), prepared by the wrapper.
    """
    idx = 0
    x_row_ref = refs[idx]; idx += 1
    if t != 1:
        we_ref, ge_ref, be_ref = refs[idx:idx + 3]; idx += 3
    wd_ref, gd_ref, bd_ref, wp_ref, gp_ref, bp_ref = refs[idx:idx + 6]; idx += 6
    if shortcut:
        xcm_ref = refs[idx]; idx += 1
    o_ref = refs[idx]; idx += 1
    pad_ref = refs[idx]

    Ho, Wo = H // s, W // s
    M = N * H * W
    Mo = N * Ho * Wo

    x = x_row_ref[...]                                            # (M, cin)

    # ---- 1x1 expansion + BN + ReLU6 (skipped when t == 1, as in the module) ----
    if t != 1:
        z = jnp.dot(x, we_ref[...], preferred_element_type=jnp.float32)   # (M, cexp)
        z = jnp.clip(_bn_rows(z, ge_ref[...], be_ref[...], M), 0.0, 6.0)
    else:
        z = x                                                     # cexp == cin

    # ---- scatter activation into zero-padded (parity-deinterleaved) VMEM scratch ----
    # pad_ref[n, p%s_h, p%s_w, p//s_h, p//s_w, c] = padded activation at padded coord p.
    pad_ref[...] = jnp.zeros(pad_ref.shape, jnp.float32)
    blk = Ho * Wo
    for n in range(N):
        for ph in range(s):
            for pw in range(s):
                r0 = ((n * s + ph) * s + pw) * blk
                piece = z[r0:r0 + blk, :].reshape(Ho, Wo, cexp)
                bh, oh = (ph + 1) % s, (ph + 1) // s
                bw, ow = (pw + 1) % s, (pw + 1) // s
                pad_ref[n, bh, bw, oh:oh + Ho, ow:ow + Wo, :] = piece

    # ---- 3x3 depthwise conv: 9 unit-stride shifted-slice MACs ----
    wd = wd_ref[...]                                              # (9, cexp)
    acc = jnp.zeros((Mo, cexp), jnp.float32)
    for di in range(3):
        for dj in range(3):
            k = di * 3 + dj
            tap = pad_ref[:, di % s, dj % s,
                          di // s: di // s + Ho,
                          dj // s: dj // s + Wo, :]               # (N, Ho, Wo, cexp)
            acc = acc + tap.reshape(Mo, cexp) * wd[k:k + 1, :]

    # ---- depthwise BN + ReLU6 ----
    hdw = jnp.clip(_bn_rows(acc, gd_ref[...], bd_ref[...], Mo), 0.0, 6.0)   # (Mo, cexp)

    # ---- 1x1 projection, computed transposed so lanes carry Mo (lane-dense output) ----
    y = jax.lax.dot_general(wp_ref[...], hdw, (((1,), (1,)), ((), ())),
                            preferred_element_type=jnp.float32)   # (cout, Mo)
    y = _bn_cols(y, gp_ref[...], bp_ref[...], Mo)
    if shortcut:
        y = y + xcm_ref[...]
    o_ref[...] = y


# ----------------------------------------------------------------------------
# Per-bottleneck wrapper (one pallas_call per bottleneck)
# ----------------------------------------------------------------------------
def bottleneck_fused(x_cm, p, N, H, W, cin, cout, t, s, shortcut):
    """x_cm: (cin, N*H*W), column order (n, h, w).  Returns ((cout, N*Ho*Wo), Ho, Wo)."""
    assert H % s == 0 and W % s == 0
    cexp = cin * t
    Ho, Wo = H // s, W // s
    M, Mo = N * H * W, N * Ho * Wo
    PH = (H + 2 + s - 1) // s
    PW = (W + 2 + s - 1) // s

    if s == 1:
        x_row = x_cm.T                                           # (M, cin), (n,h,w) order
    else:
        # parity-reorder rows to (n, ph, pw, i, j) with h = s*i + ph, w = s*j + pw
        x6 = x_cm.reshape(cin, N, Ho, s, Wo, s)                  # (c, n, i, ph, j, pw)
        x_row = jnp.transpose(x6, (1, 3, 5, 2, 4, 0)).reshape(M, cin)

    inputs = [x_row]
    if t != 1:
        inputs += [p["w_exp"], p["g_exp"].reshape(1, cexp), p["b_exp"].reshape(1, cexp)]
    inputs += [p["w_dw"].reshape(9, cexp),
               p["g_dw"].reshape(1, cexp), p["b_dw"].reshape(1, cexp),
               p["w_proj"].T,
               p["g_proj"].reshape(cout, 1), p["b_proj"].reshape(cout, 1)]
    if shortcut:
        inputs.append(x_cm)                                      # residual (cout, Mo)

    y_cm = pl.pallas_call(
        partial(_bottleneck_kernel, t=t, s=s, shortcut=shortcut,
                N=N, H=H, W=W, cin=cin, cexp=cexp, cout=cout),
        out_shape=jax.ShapeDtypeStruct((cout, Mo), jnp.float32),
        in_specs=[_VMEM] * len(inputs),
        out_specs=_VMEM,
        scratch_shapes=[pltpu.VMEM((N, s, s, PH, PW, cexp), jnp.float32)],
    )(*inputs)
    return y_cm, Ho, Wo


# ----------------------------------------------------------------------------
# Block (= num x bottleneck) forward
# ----------------------------------------------------------------------------
def block_forward(x_nchw, params, in_ch, out_ch, t, stride, num):
    N, C, H, W = x_nchw.shape
    x_cm = jnp.transpose(x_nchw, (1, 0, 2, 3)).reshape(C, N * H * W)
    cin, h, w = in_ch, H, W
    for i in range(num):
        s = stride if i == 0 else 1
        shortcut = (s == 1 and cin == out_ch)
        x_cm, h, w = bottleneck_fused(x_cm, params[i], N, h, w, cin, out_ch, t, s, shortcut)
        cin = out_ch
    return jnp.transpose(x_cm.reshape(out_ch, N, h, w), (1, 0, 2, 3))   # -> NCHW


# ----------------------------------------------------------------------------
# Deterministic parameter init (synthetic; shapes follow the PyTorch module)
# ----------------------------------------------------------------------------
def _init_bottleneck(key, cin, cout, t):
    cexp = cin * t
    ks = jax.random.split(key, 9)
    p = {}
    if t != 1:
        p["w_exp"] = jax.random.normal(ks[0], (cin, cexp), jnp.float32) / math.sqrt(cin)
        p["g_exp"] = 1.0 + 0.1 * jax.random.normal(ks[1], (cexp,), jnp.float32)
        p["b_exp"] = 0.1 * jax.random.normal(ks[2], (cexp,), jnp.float32)
    p["w_dw"] = jax.random.normal(ks[3], (3, 3, cexp), jnp.float32) / 3.0
    p["g_dw"] = 1.0 + 0.1 * jax.random.normal(ks[4], (cexp,), jnp.float32)
    p["b_dw"] = 0.1 * jax.random.normal(ks[5], (cexp,), jnp.float32)
    p["w_proj"] = jax.random.normal(ks[6], (cexp, cout), jnp.float32) / math.sqrt(cexp)
    p["g_proj"] = 1.0 + 0.1 * jax.random.normal(ks[7], (cout,), jnp.float32)
    p["b_proj"] = 0.1 * jax.random.normal(ks[8], (cout,), jnp.float32)
    return p


def init_block_params(key, in_ch, out_ch, t, stride, num):
    params, cin = [], in_ch
    for _ in range(num):
        key, sub = jax.random.split(key)
        params.append(_init_bottleneck(sub, cin, out_ch, t))
        cin = out_ch
    return params


# ----------------------------------------------------------------------------
# Pure-JAX reference (independent math path) for correctness check
# ----------------------------------------------------------------------------
def _ref_bn(z, g, b):
    m = z.mean(axis=(0, 1, 2), keepdims=True)
    v = ((z - m) ** 2).mean(axis=(0, 1, 2), keepdims=True)
    return (z - m) / jnp.sqrt(v + _BN_EPS) * g.reshape(1, 1, 1, -1) + b.reshape(1, 1, 1, -1)


def ref_block_forward(x_nchw, params, in_ch, out_ch, t, stride, num):
    x = jnp.transpose(x_nchw, (0, 2, 3, 1))
    cin = in_ch
    for i in range(num):
        s = stride if i == 0 else 1
        p = params[i]
        shortcut = (s == 1 and cin == out_ch)
        h = x
        if t != 1:
            z = jnp.einsum("nhwc,cd->nhwd", h, p["w_exp"])
            h = jnp.clip(_ref_bn(z, p["g_exp"], p["b_exp"]), 0.0, 6.0)
        C = h.shape[-1]
        z = jax.lax.conv_general_dilated(
            h, p["w_dw"].reshape(3, 3, 1, C), (s, s), ((1, 1), (1, 1)),
            dimension_numbers=("NHWC", "HWIO", "NHWC"), feature_group_count=C)
        h = jnp.clip(_ref_bn(z, p["g_dw"], p["b_dw"]), 0.0, 6.0)
        z = _ref_bn(jnp.einsum("nhwc,cd->nhwd", h, p["w_proj"]), p["g_proj"], p["b_proj"])
        x = x + z if shortcut else z
        cin = out_ch
    return jnp.transpose(x, (0, 3, 1, 2))


# ----------------------------------------------------------------------------
if __name__ == "__main__":
    # Block(in_ch=4, out_ch=8, t=2, stride=2, num=2), input NCHW (2, 4, 16, 16)
    in_ch, out_ch, t, stride, num = 4, 8, 2, 2, 2
    N, H, W = 2, 16, 16

    key = jax.random.PRNGKey(0)
    kx, kp = jax.random.split(key)
    x = jax.random.normal(kx, (N, in_ch, H, W), jnp.float32)
    params = init_block_params(kp, in_ch, out_ch, t, stride, num)

    fwd = jax.jit(block_forward, static_argnums=(2, 3, 4, 5, 6))
    y = fwd(x, params, in_ch, out_ch, t, stride, num)
    y = jax.block_until_ready(y)

    y_ref = ref_block_forward(x, params, in_ch, out_ch, t, stride, num)
    np.testing.assert_allclose(np.asarray(y), np.asarray(y_ref), rtol=2e-3, atol=2e-3)
    assert y.shape == (N, out_ch, H // stride, W // stride)

    print("KERNEL_OK")
</pallas_src>

<mosaic_0001>
module attributes {stable_mosaic.version = 11 : i64} {
  func.func @_bottleneck_kernel(%arg0: memref<512x4xf32, #tpu.memory_space<vmem>>, %arg1: memref<4x8xf32, #tpu.memory_space<vmem>>, %arg2: memref<1x8xf32, #tpu.memory_space<vmem>>, %arg3: memref<1x8xf32, #tpu.memory_space<vmem>>, %arg4: memref<9x8xf32, #tpu.memory_space<vmem>>, %arg5: memref<1x8xf32, #tpu.memory_space<vmem>>, %arg6: memref<1x8xf32, #tpu.memory_space<vmem>>, %arg7: memref<8x8xf32, #tpu.memory_space<vmem>>, %arg8: memref<8x1xf32, #tpu.memory_space<vmem>>, %arg9: memref<8x1xf32, #tpu.memory_space<vmem>>, %arg10: memref<8x128xf32, #tpu.memory_space<vmem>>, %arg11: memref<2x2x2x9x9x8xf32, #tpu.memory_space<vmem>>) attributes {dimension_semantics = [], scalar_prefetch = 0 : i64, scratch_operands = 1 : i64, tpu.core_type = #tpu.core_type<tc>} {
    %c0 = arith.constant 0 : index
    %c0_0 = arith.constant 0 : index
    %0 = vector.load %arg0[%c0, %c0_0] : memref<512x4xf32, #tpu.memory_space<vmem>>, vector<512x4xf32>
    %c0_1 = arith.constant 0 : index
    %c0_2 = arith.constant 0 : index
    %1 = vector.load %arg1[%c0_1, %c0_2] : memref<4x8xf32, #tpu.memory_space<vmem>>, vector<4x8xf32>
    %cst = arith.constant dense<0.000000e+00> : vector<512x8xf32>
    %2 = tpu.matmul %0, %1, %cst {dimension_numbers = #tpu.dot_dimension_numbers<[1], [0], [0], [1], [0, 0, 1, 1], [], []>} : vector<512x4xf32>, vector<4x8xf32>, vector<512x8xf32> -> vector<512x8xf32>
    %c0_3 = arith.constant 0 : index
    %c0_4 = arith.constant 0 : index
    %3 = vector.load %arg2[%c0_3, %c0_4] : memref<1x8xf32, #tpu.memory_space<vmem>>, vector<1x8xf32>
    %c0_5 = arith.constant 0 : index
    %c0_6 = arith.constant 0 : index
    %4 = vector.load %arg3[%c0_5, %c0_6] : memref<1x8xf32, #tpu.memory_space<vmem>>, vector<1x8xf32>
    %cst_7 = arith.constant dense<0.000000e+00> : vector<8xf32>
    %5 = vector.multi_reduction <add>, %2, %cst_7 [0] : vector<512x8xf32> to vector<8xf32>
    %6 = vector.shape_cast %5 : vector<8xf32> to vector<1x8xf32>
    %cst_8 = arith.constant 0.001953125 : f32
    %7 = vector.broadcast %cst_8 : f32 to vector<1x8xf32>
    %8 = arith.mulf %6, %7 : vector<1x8xf32>
    %9 = arith.mulf %2, %2 : vector<512x8xf32>
    %cst_9 = arith.constant dense<0.000000e+00> : vector<8xf32>
    %10 = vector.multi_reduction <add>, %9, %cst_9 [0] : vector<512x8xf32> to vector<8xf32>
    %11 = vector.shape_cast %10 : vector<8xf32> to vector<1x8xf32>
    %cst_10 = arith.constant 0.001953125 : f32
    %12 = vector.broadcast %cst_10 : f32 to vector<1x8xf32>
    %13 = arith.mulf %11, %12 : vector<1x8xf32>
    %14 = arith.mulf %8, %8 : vector<1x8xf32>
    %15 = arith.subf %13, %14 : vector<1x8xf32>
    %cst_11 = arith.constant 0.000000e+00 : f32
    %16 = vector.broadcast %cst_11 : f32 to vector<1x8xf32>
    %17 = arith.maximumf %15, %16 : vector<1x8xf32>
    %18 = vector.broadcast %8 : vector<1x8xf32> to vector<512x8xf32>
    %19 = arith.subf %2, %18 : vector<512x8xf32>
    %cst_12 = arith.constant 9.99999974E-6 : f32
    %20 = vector.broadcast %cst_12 : f32 to vector<1x8xf32>
    %21 = arith.addf %17, %20 : vector<1x8xf32>
    %22 = math.rsqrt %21 : vector<1x8xf32>
    %23 = arith.mulf %22, %3 : vector<1x8xf32>
    %24 = vector.broadcast %23 : vector<1x8xf32> to vector<512x8xf32>
    %25 = arith.mulf %19, %24 : vector<512x8xf32>
    %26 = vector.broadcast %4 : vector<1x8xf32> to vector<512x8xf32>
    %27 = arith.addf %25, %26 : vector<512x8xf32>
    %cst_13 = arith.constant 0.000000e+00 : f32
    %cst_14 = arith.constant 6.000000e+00 : f32
    %28 = vector.broadcast %cst_13 : f32 to vector<512x8xf32>
    %29 = arith.maximumf %28, %27 : vector<512x8xf32>
    %30 = vector.broadcast %cst_14 : f32 to vector<512x8xf32>
    %31 = arith.minimumf %30, %29 : vector<512x8xf32>
    %cst_15 = arith.constant 0.000000e+00 : f32
    %32 = vector.broadcast %cst_15 : f32 to vector<2x2x2x9x9x8xf32>
    %c0_16 = arith.constant 0 : index
    %c0_17 = arith.constant 0 : index
    %c0_18 = arith.constant 0 : index
    %c0_19 = arith.constant 0 : index
    %c0_20 = arith.constant 0 : index
    %c0_21 = arith.constant 0 : index
    %33 = vector.load %arg11[%c0_16, %c0_17, %c0_18, %c0_19, %c0_20, %c0_21] : memref<2x2x2x9x9x8xf32, #tpu.memory_space<vmem>>, vector<2x2x2x9x9x8xf32>
    tpu.vector_store %arg11[%c0_16, %c0_17, %c0_18, %c0_19, %c0_20, %c0_21], %32 {strides = array<i32>} : memref<2x2x2x9x9x8xf32, #tpu.memory_space<vmem>>, vector<2x2x2x9x9x8xf32>,
    %34 = vector.extract_strided_slice %31 {offsets = [0, 0], sizes = [64, 8], strides = [1, 1]} : vector<512x8xf32> to vector<64x8xf32>
    %35 = vector.shape_cast %34 : vector<64x8xf32> to vector<8x8x8xf32>
    %c0_22 = arith.constant 0 : index
    %c1 = arith.constant 1 : index
    %c1_23 = arith.constant 1 : index
    %c0_24 = arith.constant 0 : index
    %c0_25 = arith.constant 0 : index
    %c0_26 = arith.constant 0 : index
    %36 = vector.load %arg11[%c0_22, %c1, %c1_23, %c0_24, %c0_25, %c0_26] : memref<2x2x2x9x9x8xf32, #tpu.memory_space<vmem>>, vector<1x1x1x8x8x8xf32>
    %37 = vector.shape_cast %36 : vector<1x1x1x8x8x8xf32> to vector<8x8x8xf32>
    %38 = vector.shape_cast %35 : vector<8x8x8xf32> to vector<1x1x1x8x8x8xf32>
    tpu.vector_store %arg11[%c0_22, %c1, %c1_23, %c0_24, %c0_25, %c0_26], %38 {strides = array<i32>} : memref<2x2x2x9x9x8xf32, #tpu.memory_space<vmem>>, vector<1x1x1x8x8x8xf32>,
    %39 = vector.extract_strided_slice %31 {offsets = [64, 0], sizes = [64, 8], strides = [1, 1]} : vector<512x8xf32> to vector<64x8xf32>
    %40 = vector.shape_cast %39 : vector<64x8xf32> to vector<8x8x8xf32>
    %c0_27 = arith.constant 0 : index
    %c1_28 = arith.constant 1 : index
    %c0_29 = arith.constant 0 : index
    %c0_30 = arith.constant 0 : index
    %c1_31 = arith.constant 1 : index
    %c0_32 = arith.constant 0 : index
    %41 = vector.load %arg11[%c0_27, %c1_28, %c0_29, %c0_30, %c1_31, %c0_32] : memref<2x2x2x9x9x8xf32, #tpu.memory_space<vmem>>, vector<1x1x1x8x8x8xf32>
    %42 = vector.shape_cast %41 : vector<1x1x1x8x8x8xf32> to vector<8x8x8xf32>
    %43 = vector.shape_cast %40 : vector<8x8x8xf32> to vector<1x1x1x8x8x8xf32>
    tpu.vector_store %arg11[%c0_27, %c1_28, %c0_29, %c0_30, %c1_31, %c0_32], %43 {strides = array<i32>} : memref<2x2x2x9x9x8xf32, #tpu.memory_space<vmem>>, vector<1x1x1x8x8x8xf32>,
    %44 = vector.extract_strided_slice %31 {offsets = [128, 0], sizes = [64, 8], strides = [1, 1]} : vector<512x8xf32> to vector<64x8xf32>
    %45 = vector.shape_cast %44 : vector<64x8xf32> to vector<8x8x8xf32>
    %c0_33 = arith.constant 0 : index
    %c0_34 = arith.constant 0 : index
    %c1_35 = arith.constant 1 : index
    %c1_36 = arith.constant 1 : index
    %c0_37 = arith.constant 0 : index
    %c0_38 = arith.constant 0 : index
    %46 = vector.load %arg11[%c0_33, %c0_34, %c1_35, %c1_36, %c0_37, %c0_38] : memref<2x2x2x9x9x8xf32, #tpu.memory_space<vmem>>, vector<1x1x1x8x8x8xf32>
    %47 = vector.shape_cast %46 : vector<1x1x1x8x8x8xf32> to vector<8x8x8xf32>
    %48 = vector.shape_cast %45 : vector<8x8x8xf32> to vector<1x1x1x8x8x8xf32>
    tpu.vector_store %arg11[%c0_33, %c0_34, %c1_35, %c1_36, %c0_37, %c0_38], %48 {strides = array<i32>} : memref<2x2x2x9x9x8xf32, #tpu.memory_space<vmem>>, vector<1x1x1x8x8x8xf32>,
    %49 = vector.extract_strided_slice %31 {offsets = [192, 0], sizes = [64, 8], strides = [1, 1]} : vector<512x8xf32> to vector<64x8xf32>
    %50 = vector.shape_cast %49 : vector<64x8xf32> to vector<8x8x8xf32>
    %c0_39 = arith.constant 0 : index
    %c0_40 = arith.constant 0 : index
    %c0_41 = arith.constant 0 : index
    %c1_42 = arith.constant 1 : index
    %c1_43 = arith.constant 1 : index
    %c0_44 = arith.constant 0 : index
    %51 = vector.load %arg11[%c0_39, %c0_40, %c0_41, %c1_42, %c1_43, %c0_44] : memref<2x2x2x9x9x8xf32, #tpu.memory_space<vmem>>, vector<1x1x1x8x8x8xf32>
    %52 = vector.shape_cast %51 : vector<1x1x1x8x8x8xf32> to vector<8x8x8xf32>
    %53 = vector.shape_cast %50 : vector<8x8x8xf32> to vector<1x1x1x8x8x8xf32>
    tpu.vector_store %arg11[%c0_39, %c0_40, %c0_41, %c1_42, %c1_43, %c0_44], %53 {strides = array<i32>} : memref<2x2x2x9x9x8xf32, #tpu.memory_space<vmem>>, vector<1x1x1x8x8x8xf32>,
    %54 = vector.extract_strided_slice %31 {offsets = [256, 0], sizes = [64, 8], strides = [1, 1]} : vector<512x8xf32> to vector<64x8xf32>
    %55 = vector.shape_cast %54 : vector<64x8xf32> to vector<8x8x8xf32>
    %c1_45 = arith.constant 1 : index
    %c1_46 = arith.constant 1 : index
    %c1_47 = arith.constant 1 : index
    %c0_48 = arith.constant 0 : index
    %c0_49 = arith.constant 0 : index
    %c0_50 = arith.constant 0 : index
    %56 = vector.load %arg11[%c1_45, %c1_46, %c1_47, %c0_48, %c0_49, %c0_50] : memref<2x2x2x9x9x8xf32, #tpu.memory_space<vmem>>, vector<1x1x1x8x8x8xf32>
    %57 = vector.shape_cast %56 : vector<1x1x1x8x8x8xf32> to vector<8x8x8xf32>
    %58 = vector.shape_cast %55 : vector<8x8x8xf32> to vector<1x1x1x8x8x8xf32>
    tpu.vector_store %arg11[%c1_45, %c1_46, %c1_47, %c0_48, %c0_49, %c0_50], %58 {strides = array<i32>} : memref<2x2x2x9x9x8xf32, #tpu.memory_space<vmem>>, vector<1x1x1x8x8x8xf32>,
    %59 = vector.extract_strided_slice %31 {offsets = [320, 0], sizes = [64, 8], strides = [1, 1]} : vector<512x8xf32> to vector<64x8xf32>
    %60 = vector.shape_cast %59 : vector<64x8xf32> to vector<8x8x8xf32>
    %c1_51 = arith.constant 1 : index
    %c1_52 = arith.constant 1 : index
    %c0_53 = arith.constant 0 : index
    %c0_54 = arith.constant 0 : index
    %c1_55 = arith.constant 1 : index
    %c0_56 = arith.constant 0 : index
    %61 = vector.load %arg11[%c1_51, %c1_52, %c0_53, %c0_54, %c1_55, %c0_56] : memref<2x2x2x9x9x8xf32, #tpu.memory_space<vmem>>, vector<1x1x1x8x8x8xf32>
    %62 = vector.shape_cast %61 : vector<1x1x1x8x8x8xf32> to vector<8x8x8xf32>
    %63 = vector.shape_cast %60 : vector<8x8x8xf32> to vector<1x1x1x8x8x8xf32>
    tpu.vector_store %arg11[%c1_51, %c1_52, %c0_53, %c0_54, %c1_55, %c0_56], %63 {strides = array<i32>} : memref<2x2x2x9x9x8xf32, #tpu.memory_space<vmem>>, vector<1x1x1x8x8x8xf32>,
    %64 = vector.extract_strided_slice %31 {offsets = [384, 0], sizes = [64, 8], strides = [1, 1]} : vector<512x8xf32> to vector<64x8xf32>
    %65 = vector.shape_cast %64 : vector<64x8xf32> to vector<8x8x8xf32>
    %c1_57 = arith.constant 1 : index
    %c0_58 = arith.constant 0 : index
    %c1_59 = arith.constant 1 : index
    %c1_60 = arith.constant 1 : index
    %c0_61 = arith.constant 0 : index
    %c0_62 = arith.constant 0 : index
    %66 = vector.load %arg11[%c1_57, %c0_58, %c1_59, %c1_60, %c0_61, %c0_62] : memref<2x2x2x9x9x8xf32, #tpu.memory_space<vmem>>, vector<1x1x1x8x8x8xf32>
    %67 = vector.shape_cast %66 : vector<1x1x1x8x8x8xf32> to vector<8x8x8xf32>
    %68 = vector.shape_cast %65 : vector<8x8x8xf32> to vector<1x1x1x8x8x8xf32>
    tpu.vector_store %arg11[%c1_57, %c0_58, %c1_59, %c1_60, %c0_61, %c0_62], %68 {strides = array<i32>} : memref<2x2x2x9x9x8xf32, #tpu.memory_space<vmem>>, vector<1x1x1x8x8x8xf32>,
    %69 = vector.extract_strided_slice %31 {offsets = [448, 0], sizes = [64, 8], strides = [1, 1]} : vector<512x8xf32> to vector<64x8xf32>
    %70 = vector.shape_cast %69 : vector<64x8xf32> to vector<8x8x8xf32>
    %c1_63 = arith.constant 1 : index
    %c0_64 = arith.constant 0 : index
    %c0_65 = arith.constant 0 : index
    %c1_66 = arith.constant 1 : index
    %c1_67 = arith.constant 1 : index
    %c0_68 = arith.constant 0 : index
    %71 = vector.load %arg11[%c1_63, %c0_64, %c0_65, %c1_66, %c1_67, %c0_68] : memref<2x2x2x9x9x8xf32, #tpu.memory_space<vmem>>, vector<1x1x1x8x8x8xf32>
    %72 = vector.shape_cast %71 : vector<1x1x1x8x8x8xf32> to vector<8x8x8xf32>
    %73 = vector.shape_cast %70 : vector<8x8x8xf32> to vector<1x1x1x8x8x8xf32>
    tpu.vector_store %arg11[%c1_63, %c0_64, %c0_65, %c1_66, %c1_67, %c0_68], %73 {strides = array<i32>} : memref<2x2x2x9x9x8xf32, #tpu.memory_space<vmem>>, vector<1x1x1x8x8x8xf32>,
    %c0_69 = arith.constant 0 : index
    %c0_70 = arith.constant 0 : index
    %74 = vector.load %arg4[%c0_69, %c0_70] : memref<9x8xf32, #tpu.memory_space<vmem>>, vector<9x8xf32>
    %cst_71 = arith.constant 0.000000e+00 : f32
    %75 = vector.broadcast %cst_71 : f32 to vector<128x8xf32>
    %c0_72 = arith.constant 0 : index
    %c0_73 = arith.constant 0 : index
    %c0_74 = arith.constant 0 : index
    %c0_75 = arith.constant 0 : index
    %c0_76 = arith.constant 0 : index
    %c0_77 = arith.constant 0 : index
    %76 = vector.load %arg11[%c0_72, %c0_73, %c0_74, %c0_75, %c0_76, %c0_77] : memref<2x2x2x9x9x8xf32, #tpu.memory_space<vmem>>, vector<2x1x1x8x8x8xf32>
    %77 = vector.shape_cast %76 : vector<2x1x1x8x8x8xf32> to vector<2x8x8x8xf32>
    %78 = vector.shape_cast %77 : vector<2x8x8x8xf32> to vector<128x8xf32>
    %79 = vector.extract_strided_slice %74 {offsets = [0, 0], sizes = [1, 8], strides = [1, 1]} : vector<9x8xf32> to vector<1x8xf32>
    %80 = vector.broadcast %79 : vector<1x8xf32> to vector<128x8xf32>
    %81 = arith.mulf %78, %80 : vector<128x8xf32>
    %82 = arith.addf %75, %81 : vector<128x8xf32>
    %c0_78 = arith.constant 0 : index
    %c0_79 = arith.constant 0 : index
    %c1_80 = arith.constant 1 : index
    %c0_81 = arith.constant 0 : index
    %c0_82 = arith.constant 0 : index
    %c0_83 = arith.constant 0 : index
    %83 = vector.load %arg11[%c0_78, %c0_79, %c1_80, %c0_81, %c0_82, %c0_83] : memref<2x2x2x9x9x8xf32, #tpu.memory_space<vmem>>, vector<2x1x1x8x8x8xf32>
    %84 = vector.shape_cast %83 : vector<2x1x1x8x8x8xf32> to vector<2x8x8x8xf32>
    %85 = vector.shape_cast %84 : vector<2x8x8x8xf32> to vector<128x8xf32>
    %86 = vector.extract_strided_slice %74 {offsets = [1, 0], sizes = [1, 8], strides = [1, 1]} : vector<9x8xf32> to vector<1x8xf32>
    %87 = vector.broadcast %86 : vector<1x8xf32> to vector<128x8xf32>
    %88 = arith.mulf %85, %87 : vector<128x8xf32>
    %89 = arith.addf %82, %88 : vector<128x8xf32>
    %c0_84 = arith.constant 0 : index
    %c0_85 = arith.constant 0 : index
    %c0_86 = arith.constant 0 : index
    %c0_87 = arith.constant 0 : index
    %c1_88 = arith.constant 1 : index
    %c0_89 = arith.constant 0 : index
    %90 = vector.load %arg11[%c0_84, %c0_85, %c0_86, %c0_87, %c1_88, %c0_89] : memref<2x2x2x9x9x8xf32, #tpu.memory_space<vmem>>, vector<2x1x1x8x8x8xf32>
    %91 = vector.shape_cast %90 : vector<2x1x1x8x8x8xf32> to vector<2x8x8x8xf32>
    %92 = vector.shape_cast %91 : vector<2x8x8x8xf32> to vector<128x8xf32>
    %93 = vector.extract_strided_slice %74 {offsets = [2, 0], sizes = [1, 8], strides = [1, 1]} : vector<9x8xf32> to vector<1x8xf32>
    %94 = vector.broadcast %93 : vector<1x8xf32> to vector<128x8xf32>
    %95 = arith.mulf %92, %94 : vector<128x8xf32>
    %96 = arith.addf %89, %95 : vector<128x8xf32>
    %c0_90 = arith.constant 0 : index
    %c1_91 = arith.constant 1 : index
    %c0_92 = arith.constant 0 : index
    %c0_93 = arith.constant 0 : index
    %c0_94 = arith.constant 0 : index
    %c0_95 = arith.constant 0 : index
    %97 = vector.load %arg11[%c0_90, %c1_91, %c0_92, %c0_93, %c0_94, %c0_95] : memref<2x2x2x9x9x8xf32, #tpu.memory_space<vmem>>, vector<2x1x1x8x8x8xf32>
    %98 = vector.shape_cast %97 : vector<2x1x1x8x8x8xf32> to vector<2x8x8x8xf32>
    %99 = vector.shape_cast %98 : vector<2x8x8x8xf32> to vector<128x8xf32>
    %100 = vector.extract_strided_slice %74 {offsets = [3, 0], sizes = [1, 8], strides = [1, 1]} : vector<9x8xf32> to vector<1x8xf32>
    %101 = vector.broadcast %100 : vector<1x8xf32> to vector<128x8xf32>
    %102 = arith.mulf %99, %101 : vector<128x8xf32>
    %103 = arith.addf %96, %102 : vector<128x8xf32>
    %c0_96 = arith.constant 0 : index
    %c1_97 = arith.constant 1 : index
    %c1_98 = arith.constant 1 : index
    %c0_99 = arith.constant 0 : index
    %c0_100 = arith.constant 0 : index
    %c0_101 = arith.constant 0 : index
    %104 = vector.load %arg11[%c0_96, %c1_97, %c1_98, %c0_99, %c0_100, %c0_101] : memref<2x2x2x9x9x8xf32, #tpu.memory_space<vmem>>, vector<2x1x1x8x8x8xf32>
    %105 = vector.shape_cast %104 : vector<2x1x1x8x8x8xf32> to vector<2x8x8x8xf32>
    %106 = vector.shape_cast %105 : vector<2x8x8x8xf32> to vector<128x8xf32>
    %107 = vector.extract_strided_slice %74 {offsets = [4, 0], sizes = [1, 8], strides = [1, 1]} : vector<9x8xf32> to vector<1x8xf32>
    %108 = vector.broadcast %107 : vector<1x8xf32> to vector<128x8xf32>
    %109 = arith.mulf %106, %108 : vector<128x8xf32>
    %110 = arith.addf %103, %109 : vector<128x8xf32>
    %c0_102 = arith.constant 0 : index
    %c1_103 = arith.constant 1 : index
    %c0_104 = arith.constant 0 : index
    %c0_105 = arith.constant 0 : index
    %c1_106 = arith.constant 1 : index
    %c0_107 = arith.constant 0 : index
    %111 = vector.load %arg11[%c0_102, %c1_103, %c0_104, %c0_105, %c1_106, %c0_107] : memref<2x2x2x9x9x8xf32, #tpu.memory_space<vmem>>, vector<2x1x1x8x8x8xf32>
    %112 = vector.shape_cast %111 : vector<2x1x1x8x8x8xf32> to vector<2x8x8x8xf32>
    %113 = vector.shape_cast %112 : vector<2x8x8x8xf32> to vector<128x8xf32>
    %114 = vector.extract_strided_slice %74 {offsets = [5, 0], sizes = [1, 8], strides = [1, 1]} : vector<9x8xf32> to vector<1x8xf32>
    %115 = vector.broadcast %114 : vector<1x8xf32> to vector<128x8xf32>
    %116 = arith.mulf %113, %115 : vector<128x8xf32>
    %117 = arith.addf %110, %116 : vector<128x8xf32>
    %c0_108 = arith.constant 0 : index
    %c0_109 = arith.constant 0 : index
    %c0_110 = arith.constant 0 : index
    %c1_111 = arith.constant 1 : index
    %c0_112 = arith.constant 0 : index
    %c0_113 = arith.constant 0 : index
    %118 = vector.load %arg11[%c0_108, %c0_109, %c0_110, %c1_111, %c0_112, %c0_113] : memref<2x2x2x9x9x8xf32, #tpu.memory_space<vmem>>, vector<2x1x1x8x8x8xf32>
    %119 = vector.shape_cast %118 : vector<2x1x1x8x8x8xf32> to vector<2x8x8x8xf32>
    %120 = vector.shape_cast %119 : vector<2x8x8x8xf32> to vector<128x8xf32>
    %121 = vector.extract_strided_slice %74 {offsets = [6, 0], sizes = [1, 8], strides = [1, 1]} : vector<9x8xf32> to vector<1x8xf32>
    %122 = vector.broadcast %121 : vector<1x8xf32> to vector<128x8xf32>
    %123 = arith.mulf %120, %122 : vector<128x8xf32>
    %124 = arith.addf %117, %123 : vector<128x8xf32>
    %c0_114 = arith.constant 0 : index
    %c0_115 = arith.constant 0 : index
    %c1_116 = arith.constant 1 : index
    %c1_117 = arith.constant 1 : index
    %c0_118 = arith.constant 0 : index
    %c0_119 = arith.constant 0 : index
    %125 = vector.load %arg11[%c0_114, %c0_115, %c1_116, %c1_117, %c0_118, %c0_119] : memref<2x2x2x9x9x8xf32, #tpu.memory_space<vmem>>, vector<2x1x1x8x8x8xf32>
    %126 = vector.shape_cast %125 : vector<2x1x1x8x8x8xf32> to vector<2x8x8x8xf32>
    %127 = vector.shape_cast %126 : vector<2x8x8x8xf32> to vector<128x8xf32>
    %128 = vector.extract_strided_slice %74 {offsets = [7, 0], sizes = [1, 8], strides = [1, 1]} : vector<9x8xf32> to vector<1x8xf32>
    %129 = vector.broadcast %128 : vector<1x8xf32> to vector<128x8xf32>
    %130 = arith.mulf %127, %129 : vector<128x8xf32>
    %131 = arith.addf %124, %130 : vector<128x8xf32>
    %c0_120 = arith.constant 0 : index
    %c0_121 = arith.constant 0 : index
    %c0_122 = arith.constant 0 : index
    %c1_123 = arith.constant 1 : index
    %c1_124 = arith.constant 1 : index
    %c0_125 = arith.constant 0 : index
    %132 = vector.load %arg11[%c0_120, %c0_121, %c0_122, %c1_123, %c1_124, %c0_125] : memref<2x2x2x9x9x8xf32, #tpu.memory_space<vmem>>, vector<2x1x1x8x8x8xf32>
    %133 = vector.shape_cast %132 : vector<2x1x1x8x8x8xf32> to vector<2x8x8x8xf32>
    %134 = vector.shape_cast %133 : vector<2x8x8x8xf32> to vector<128x8xf32>
    %135 = vector.extract_strided_slice %74 {offsets = [8, 0], sizes = [1, 8], strides = [1, 1]} : vector<9x8xf32> to vector<1x8xf32>
    %136 = vector.broadcast %135 : vector<1x8xf32> to vector<128x8xf32>
    %137 = arith.mulf %134, %136 : vector<128x8xf32>
    %138 = arith.addf %131, %137 : vector<128x8xf32>
    %c0_126 = arith.constant 0 : index
    %c0_127 = arith.constant 0 : index
    %139 = vector.load %arg5[%c0_126, %c0_127] : memref<1x8xf32, #tpu.memory_space<vmem>>, vector<1x8xf32>
    %c0_128 = arith.constant 0 : index
    %c0_129 = arith.constant 0 : index
    %140 = vector.load %arg6[%c0_128, %c0_129] : memref<1x8xf32, #tpu.memory_space<vmem>>, vector<1x8xf32>
    %cst_130 = arith.constant dense<0.000000e+00> : vector<8xf32>
    %141 = vector.multi_reduction <add>, %138, %cst_130 [0] : vector<128x8xf32> to vector<8xf32>
    %142 = vector.shape_cast %141 : vector<8xf32> to vector<1x8xf32>
    %cst_131 = arith.constant 7.812500e-03 : f32
    %143 = vector.broadcast %cst_131 : f32 to vector<1x8xf32>
    %144 = arith.mulf %142, %143 : vector<1x8xf32>
    %145 = arith.mulf %138, %138 : vector<128x8xf32>
    %cst_132 = arith.constant dense<0.000000e+00> : vector<8xf32>
    %146 = vector.multi_reduction <add>, %145, %cst_132 [0] : vector<128x8xf32> to vector<8xf32>
    %147 = vector.shape_cast %146 : vector<8xf32> to vector<1x8xf32>
    %cst_133 = arith.constant 7.812500e-03 : f32
    %148 = vector.broadcast %cst_133 : f32 to vector<1x8xf32>
    %149 = arith.mulf %147, %148 : vector<1x8xf32>
    %150 = arith.mulf %144, %144 : vector<1x8xf32>
    %151 = arith.subf %149, %150 : vector<1x8xf32>
    %cst_134 = arith.constant 0.000000e+00 : f32
    %152 = vector.broadcast %cst_134 : f32 to vector<1x8xf32>
    %153 = arith.maximumf %151, %152 : vector<1x8xf32>
    %154 = vector.broadcast %144 : vector<1x8xf32> to vector<128x8xf32>
    %155 = arith.subf %138, %154 : vector<128x8xf32>
    %cst_135 = arith.constant 9.99999974E-6 : f32
    %156 = vector.broadcast %cst_135 : f32 to vector<1x8xf32>
    %157 = arith.addf %153, %156 : vector<1x8xf32>
    %158 = math.rsqrt %157 : vector<1x8xf32>
    %159 = arith.mulf %158, %139 : vector<1x8xf32>
    %160 = vector.broadcast %159 : vector<1x8xf32> to vector<128x8xf32>
    %161 = arith.mulf %155, %160 : vector<128x8xf32>
    %162 = vector.broadcast %140 : vector<1x8xf32> to vector<128x8xf32>
    %163 = arith.addf %161, %162 : vector<128x8xf32>
    %cst_136 = arith.constant 0.000000e+00 : f32
    %cst_137 = arith.constant 6.000000e+00 : f32
    %164 = vector.broadcast %cst_136 : f32 to vector<128x8xf32>
    %165 = arith.maximumf %164, %163 : vector<128x8xf32>
    %166 = vector.broadcast %cst_137 : f32 to vector<128x8xf32>
    %167 = arith.minimumf %166, %165 : vector<128x8xf32>
    %c0_138 = arith.constant 0 : index
    %c0_139 = arith.constant 0 : index
    %168 = vector.load %arg7[%c0_138, %c0_139] : memref<8x8xf32, #tpu.memory_space<vmem>>, vector<8x8xf32>
    %cst_140 = arith.constant dense<0.000000e+00> : vector<8x128xf32>
    %169 = tpu.matmul %168, %167, %cst_140 {dimension_numbers = #tpu.dot_dimension_numbers<[1], [1], [0], [0], [0, 0, 1, 0], [], []>} : vector<8x8xf32>, vector<128x8xf32>, vector<8x128xf32> -> vector<8x128xf32>
    %c0_141 = arith.constant 0 : index
    %c0_142 = arith.constant 0 : index
    %170 = vector.load %arg8[%c0_141, %c0_142] : memref<8x1xf32, #tpu.memory_space<vmem>>, vector<8x1xf32>
    %c0_143 = arith.constant 0 : index
    %c0_144 = arith.constant 0 : index
    %171 = vector.load %arg9[%c0_143, %c0_144] : memref<8x1xf32, #tpu.memory_space<vmem>>, vector<8x1xf32>
    %cst_145 = arith.constant dense<0.000000e+00> : vector<8xf32>
    %172 = vector.multi_reduction <add>, %169, %cst_145 [1] : vector<8x128xf32> to vector<8xf32>
    %173 = vector.shape_cast %172 : vector<8xf32> to vector<8x1xf32>
    %cst_146 = arith.constant 7.812500e-03 : f32
    %174 = vector.broadcast %cst_146 : f32 to vector<8x1xf32>
    %175 = arith.mulf %173, %174 : vector<8x1xf32>
    %176 = arith.mulf %169, %169 : vector<8x128xf32>
    %cst_147 = arith.constant dense<0.000000e+00> : vector<8xf32>
    %177 = vector.multi_reduction <add>, %176, %cst_147 [1] : vector<8x128xf32> to vector<8xf32>
    %178 = vector.shape_cast %177 : vector<8xf32> to vector<8x1xf32>
    %cst_148 = arith.constant 7.812500e-03 : f32
    %179 = vector.broadcast %cst_148 : f32 to vector<8x1xf32>
    %180 = arith.mulf %178, %179 : vector<8x1xf32>
    %181 = arith.mulf %175, %175 : vector<8x1xf32>
    %182 = arith.subf %180, %181 : vector<8x1xf32>
    %cst_149 = arith.constant 0.000000e+00 : f32
    %183 = vector.broadcast %cst_149 : f32 to vector<8x1xf32>
    %184 = arith.maximumf %182, %183 : vector<8x1xf32>
    %185 = vector.broadcast %175 : vector<8x1xf32> to vector<8x128xf32>
    %186 = arith.subf %169, %185 : vector<8x128xf32>
    %cst_150 = arith.constant 9.99999974E-6 : f32
    %187 = vector.broadcast %cst_150 : f32 to vector<8x1xf32>
    %188 = arith.addf %184, %187 : vector<8x1xf32>
    %189 = math.rsqrt %188 : vector<8x1xf32>
    %190 = arith.mulf %189, %170 : vector<8x1xf32>
    %191 = vector.broadcast %190 : vector<8x1xf32> to vector<8x128xf32>
    %192 = arith.mulf %186, %191 : vector<8x128xf32>
    %193 = vector.broadcast %171 : vector<8x1xf32> to vector<8x128xf32>
    %194 = arith.addf %192, %193 : vector<8x128xf32>
    %c0_151 = arith.constant 0 : index
    %c0_152 = arith.constant 0 : index
    %195 = vector.load %arg10[%c0_151, %c0_152] : memref<8x128xf32, #tpu.memory_space<vmem>>, vector<8x128xf32>
    tpu.vector_store %arg10[%c0_151, %c0_152], %194 {strides = array<i32>} : memref<8x128xf32, #tpu.memory_space<vmem>>, vector<8x128xf32>,
    return
  }
}

module attributes {stable_mosaic.version = 11 : i64} {
  func.func @_bottleneck_kernel(%arg0: memref<128x8xf32, #tpu.memory_space<vmem>>, %arg1: memref<8x16xf32, #tpu.memory_space<vmem>>, %arg2: memref<1x16xf32, #tpu.memory_space<vmem>>, %arg3: memref<1x16xf32, #tpu.memory_space<vmem>>, %arg4: memref<9x16xf32, #tpu.memory_space<vmem>>, %arg5: memref<1x16xf32, #tpu.memory_space<vmem>>, %arg6: memref<1x16xf32, #tpu.memory_space<vmem>>, %arg7: memref<8x16xf32, #tpu.memory_space<vmem>>, %arg8: memref<8x1xf32, #tpu.memory_space<vmem>>, %arg9: memref<8x1xf32, #tpu.memory_space<vmem>>, %arg10: memref<8x128xf32, #tpu.memory_space<vmem>>, %arg11: memref<8x128xf32, #tpu.memory_space<vmem>>, %arg12: memref<2x1x1x10x10x16xf32, #tpu.memory_space<vmem>>) attributes {dimension_semantics = [], scalar_prefetch = 0 : i64, scratch_operands = 1 : i64, tpu.core_type = #tpu.core_type<tc>} {
    %c0 = arith.constant 0 : index
    %c0_0 = arith.constant 0 : index
    %0 = vector.load %arg0[%c0, %c0_0] : memref<128x8xf32, #tpu.memory_space<vmem>>, vector<128x8xf32>
    %c0_1 = arith.constant 0 : index
    %c0_2 = arith.constant 0 : index
    %1 = vector.load %arg1[%c0_1, %c0_2] : memref<8x16xf32, #tpu.memory_space<vmem>>, vector<8x16xf32>
    %cst = arith.constant dense<0.000000e+00> : vector<128x16xf32>
    %2 = tpu.matmul %0, %1, %cst {dimension_numbers = #tpu.dot_dimension_numbers<[1], [0], [0], [1], [0, 0, 1, 1], [], []>} : vector<128x8xf32>, vector<8x16xf32>, vector<128x16xf32> -> vector<128x16xf32>
    %c0_3 = arith.constant 0 : index
    %c0_4 = arith.constant 0 : index
    %3 = vector.load %arg2[%c0_3, %c0_4] : memref<1x16xf32, #tpu.memory_space<vmem>>, vector<1x16xf32>
    %c0_5 = arith.constant 0 : index
    %c0_6 = arith.constant 0 : index
    %4 = vector.load %arg3[%c0_5, %c0_6] : memref<1x16xf32, #tpu.memory_space<vmem>>, vector<1x16xf32>
    %cst_7 = arith.constant dense<0.000000e+00> : vector<16xf32>
    %5 = vector.multi_reduction <add>, %2, %cst_7 [0] : vector<128x16xf32> to vector<16xf32>
    %6 = vector.shape_cast %5 : vector<16xf32> to vector<1x16xf32>
    %cst_8 = arith.constant 7.812500e-03 : f32
    %7 = vector.broadcast %cst_8 : f32 to vector<1x16xf32>
    %8 = arith.mulf %6, %7 : vector<1x16xf32>
    %9 = arith.mulf %2, %2 : vector<128x16xf32>
    %cst_9 = arith.constant dense<0.000000e+00> : vector<16xf32>
    %10 = vector.multi_reduction <add>, %9, %cst_9 [0] : vector<128x16xf32> to vector<16xf32>
    %11 = vector.shape_cast %10 : vector<16xf32> to vector<1x16xf32>
    %cst_10 = arith.constant 7.812500e-03 : f32
    %12 = vector.broadcast %cst_10 : f32 to vector<1x16xf32>
    %13 = arith.mulf %11, %12 : vector<1x16xf32>
    %14 = arith.mulf %8, %8 : vector<1x16xf32>
    %15 = arith.subf %13, %14 : vector<1x16xf32>
    %cst_11 = arith.constant 0.000000e+00 : f32
    %16 = vector.broadcast %cst_11 : f32 to vector<1x16xf32>
    %17 = arith.maximumf %15, %16 : vector<1x16xf32>
    %18 = vector.broadcast %8 : vector<1x16xf32> to vector<128x16xf32>
    %19 = arith.subf %2, %18 : vector<128x16xf32>
    %cst_12 = arith.constant 9.99999974E-6 : f32
    %20 = vector.broadcast %cst_12 : f32 to vector<1x16xf32>
    %21 = arith.addf %17, %20 : vector<1x16xf32>
    %22 = math.rsqrt %21 : vector<1x16xf32>
    %23 = arith.mulf %22, %3 : vector<1x16xf32>
    %24 = vector.broadcast %23 : vector<1x16xf32> to vector<128x16xf32>
    %25 = arith.mulf %19, %24 : vector<128x16xf32>
    %26 = vector.broadcast %4 : vector<1x16xf32> to vector<128x16xf32>
    %27 = arith.addf %25, %26 : vector<128x16xf32>
    %cst_13 = arith.constant 0.000000e+00 : f32
    %cst_14 = arith.constant 6.000000e+00 : f32
    %28 = vector.broadcast %cst_13 : f32 to vector<128x16xf32>
    %29 = arith.maximumf %28, %27 : vector<128x16xf32>
    %30 = vector.broadcast %cst_14 : f32 to vector<128x16xf32>
    %31 = arith.minimumf %30, %29 : vector<128x16xf32>
    %cst_15 = arith.constant 0.000000e+00 : f32
    %32 = vector.broadcast %cst_15 : f32 to vector<2x1x1x10x10x16xf32>
    %c0_16 = arith.constant 0 : index
    %c0_17 = arith.constant 0 : index
    %c0_18 = arith.constant 0 : index
    %c0_19 = arith.constant 0 : index
    %c0_20 = arith.constant 0 : index
    %c0_21 = arith.constant 0 : index
    %33 = vector.load %arg12[%c0_16, %c0_17, %c0_18, %c0_19, %c0_20, %c0_21] : memref<2x1x1x10x10x16xf32, #tpu.memory_space<vmem>>, vector<2x1x1x10x10x16xf32>
    tpu.vector_store %arg12[%c0_16, %c0_17, %c0_18, %c0_19, %c0_20, %c0_21], %32 {strides = array<i32>} : memref<2x1x1x10x10x16xf32, #tpu.memory_space<vmem>>, vector<2x1x1x10x10x16xf32>,
    %34 = vector.extract_strided_slice %31 {offsets = [0, 0], sizes = [64, 16], strides = [1, 1]} : vector<128x16xf32> to vector<64x16xf32>
    %35 = vector.shape_cast %34 : vector<64x16xf32> to vector<8x8x16xf32>
    %c0_22 = arith.constant 0 : index
    %c0_23 = arith.constant 0 : index
    %c0_24 = arith.constant 0 : index
    %c1 = arith.constant 1 : index
    %c1_25 = arith.constant 1 : index
    %c0_26 = arith.constant 0 : index
    %36 = vector.load %arg12[%c0_22, %c0_23, %c0_24, %c1, %c1_25, %c0_26] : memref<2x1x1x10x10x16xf32, #tpu.memory_space<vmem>>, vector<1x1x1x8x8x16xf32>
    %37 = vector.shape_cast %36 : vector<1x1x1x8x8x16xf32> to vector<8x8x16xf32>
    %38 = vector.shape_cast %35 : vector<8x8x16xf32> to vector<1x1x1x8x8x16xf32>
    tpu.vector_store %arg12[%c0_22, %c0_23, %c0_24, %c1, %c1_25, %c0_26], %38 {strides = array<i32>} : memref<2x1x1x10x10x16xf32, #tpu.memory_space<vmem>>, vector<1x1x1x8x8x16xf32>,
    %39 = vector.extract_strided_slice %31 {offsets = [64, 0], sizes = [64, 16], strides = [1, 1]} : vector<128x16xf32> to vector<64x16xf32>
    %40 = vector.shape_cast %39 : vector<64x16xf32> to vector<8x8x16xf32>
    %c1_27 = arith.constant 1 : index
    %c0_28 = arith.constant 0 : index
    %c0_29 = arith.constant 0 : index
    %c1_30 = arith.constant 1 : index
    %c1_31 = arith.constant 1 : index
    %c0_32 = arith.constant 0 : index
    %41 = vector.load %arg12[%c1_27, %c0_28, %c0_29, %c1_30, %c1_31, %c0_32] : memref<2x1x1x10x10x16xf32, #tpu.memory_space<vmem>>, vector<1x1x1x8x8x16xf32>
    %42 = vector.shape_cast %41 : vector<1x1x1x8x8x16xf32> to vector<8x8x16xf32>
    %43 = vector.shape_cast %40 : vector<8x8x16xf32> to vector<1x1x1x8x8x16xf32>
    tpu.vector_store %arg12[%c1_27, %c0_28, %c0_29, %c1_30, %c1_31, %c0_32], %43 {strides = array<i32>} : memref<2x1x1x10x10x16xf32, #tpu.memory_space<vmem>>, vector<1x1x1x8x8x16xf32>,
    %c0_33 = arith.constant 0 : index
    %c0_34 = arith.constant 0 : index
    %44 = vector.load %arg4[%c0_33, %c0_34] : memref<9x16xf32, #tpu.memory_space<vmem>>, vector<9x16xf32>
    %cst_35 = arith.constant 0.000000e+00 : f32
    %45 = vector.broadcast %cst_35 : f32 to vector<128x16xf32>
    %c0_36 = arith.constant 0 : index
    %c0_37 = arith.constant 0 : index
    %c0_38 = arith.constant 0 : index
    %c0_39 = arith.constant 0 : index
    %c0_40 = arith.constant 0 : index
    %c0_41 = arith.constant 0 : index
    %46 = vector.load %arg12[%c0_36, %c0_37, %c0_38, %c0_39, %c0_40, %c0_41] : memref<2x1x1x10x10x16xf32, #tpu.memory_space<vmem>>, vector<2x1x1x8x8x16xf32>
    %47 = vector.shape_cast %46 : vector<2x1x1x8x8x16xf32> to vector<2x8x8x16xf32>
    %48 = vector.shape_cast %47 : vector<2x8x8x16xf32> to vector<128x16xf32>
    %49 = vector.extract_strided_slice %44 {offsets = [0, 0], sizes = [1, 16], strides = [1, 1]} : vector<9x16xf32> to vector<1x16xf32>
    %50 = vector.broadcast %49 : vector<1x16xf32> to vector<128x16xf32>
    %51 = arith.mulf %48, %50 : vector<128x16xf32>
    %52 = arith.addf %45, %51 : vector<128x16xf32>
    %c0_42 = arith.constant 0 : index
    %c0_43 = arith.constant 0 : index
    %c0_44 = arith.constant 0 : index
    %c0_45 = arith.constant 0 : index
    %c1_46 = arith.constant 1 : index
    %c0_47 = arith.constant 0 : index
    %53 = vector.load %arg12[%c0_42, %c0_43, %c0_44, %c0_45, %c1_46, %c0_47] : memref<2x1x1x10x10x16xf32, #tpu.memory_space<vmem>>, vector<2x1x1x8x8x16xf32>
    %54 = vector.shape_cast %53 : vector<2x1x1x8x8x16xf32> to vector<2x8x8x16xf32>
    %55 = vector.shape_cast %54 : vector<2x8x8x16xf32> to vector<128x16xf32>
    %56 = vector.extract_strided_slice %44 {offsets = [1, 0], sizes = [1, 16], strides = [1, 1]} : vector<9x16xf32> to vector<1x16xf32>
    %57 = vector.broadcast %56 : vector<1x16xf32> to vector<128x16xf32>
    %58 = arith.mulf %55, %57 : vector<128x16xf32>
    %59 = arith.addf %52, %58 : vector<128x16xf32>
    %c0_48 = arith.constant 0 : index
    %c0_49 = arith.constant 0 : index
    %c0_50 = arith.constant 0 : index
    %c0_51 = arith.constant 0 : index
    %c2 = arith.constant 2 : index
    %c0_52 = arith.constant 0 : index
    %60 = vector.load %arg12[%c0_48, %c0_49, %c0_50, %c0_51, %c2, %c0_52] : memref<2x1x1x10x10x16xf32, #tpu.memory_space<vmem>>, vector<2x1x1x8x8x16xf32>
    %61 = vector.shape_cast %60 : vector<2x1x1x8x8x16xf32> to vector<2x8x8x16xf32>
    %62 = vector.shape_cast %61 : vector<2x8x8x16xf32> to vector<128x16xf32>
    %63 = vector.extract_strided_slice %44 {offsets = [2, 0], sizes = [1, 16], strides = [1, 1]} : vector<9x16xf32> to vector<1x16xf32>
    %64 = vector.broadcast %63 : vector<1x16xf32> to vector<128x16xf32>
    %65 = arith.mulf %62, %64 : vector<128x16xf32>
    %66 = arith.addf %59, %65 : vector<128x16xf32>
    %c0_53 = arith.constant 0 : index
    %c0_54 = arith.constant 0 : index
    %c0_55 = arith.constant 0 : index
    %c1_56 = arith.constant 1 : index
    %c0_57 = arith.constant 0 : index
    %c0_58 = arith.constant 0 : index
    %67 = vector.load %arg12[%c0_53, %c0_54, %c0_55, %c1_56, %c0_57, %c0_58] : memref<2x1x1x10x10x16xf32, #tpu.memory_space<vmem>>, vector<2x1x1x8x8x16xf32>
    %68 = vector.shape_cast %67 : vector<2x1x1x8x8x16xf32> to vector<2x8x8x16xf32>
    %69 = vector.shape_cast %68 : vector<2x8x8x16xf32> to vector<128x16xf32>
    %70 = vector.extract_strided_slice %44 {offsets = [3, 0], sizes = [1, 16], strides = [1, 1]} : vector<9x16xf32> to vector<1x16xf32>
    %71 = vector.broadcast %70 : vector<1x16xf32> to vector<128x16xf32>
    %72 = arith.mulf %69, %71 : vector<128x16xf32>
    %73 = arith.addf %66, %72 : vector<128x16xf32>
    %c0_59 = arith.constant 0 : index
    %c0_60 = arith.constant 0 : index
    %c0_61 = arith.constant 0 : index
    %c1_62 = arith.constant 1 : index
    %c1_63 = arith.constant 1 : index
    %c0_64 = arith.constant 0 : index
    %74 = vector.load %arg12[%c0_59, %c0_60, %c0_61, %c1_62, %c1_63, %c0_64] : memref<2x1x1x10x10x16xf32, #tpu.memory_space<vmem>>, vector<2x1x1x8x8x16xf32>
    %75 = vector.shape_cast %74 : vector<2x1x1x8x8x16xf32> to vector<2x8x8x16xf32>
    %76 = vector.shape_cast %75 : vector<2x8x8x16xf32> to vector<128x16xf32>
    %77 = vector.extract_strided_slice %44 {offsets = [4, 0], sizes = [1, 16], strides = [1, 1]} : vector<9x16xf32> to vector<1x16xf32>
    %78 = vector.broadcast %77 : vector<1x16xf32> to vector<128x16xf32>
    %79 = arith.mulf %76, %78 : vector<128x16xf32>
    %80 = arith.addf %73, %79 : vector<128x16xf32>
    %c0_65 = arith.constant 0 : index
    %c0_66 = arith.constant 0 : index
    %c0_67 = arith.constant 0 : index
    %c1_68 = arith.constant 1 : index
    %c2_69 = arith.constant 2 : index
    %c0_70 = arith.constant 0 : index
    %81 = vector.load %arg12[%c0_65, %c0_66, %c0_67, %c1_68, %c2_69, %c0_70] : memref<2x1x1x10x10x16xf32, #tpu.memory_space<vmem>>, vector<2x1x1x8x8x16xf32>
    %82 = vector.shape_cast %81 : vector<2x1x1x8x8x16xf32> to vector<2x8x8x16xf32>
    %83 = vector.shape_cast %82 : vector<2x8x8x16xf32> to vector<128x16xf32>
    %84 = vector.extract_strided_slice %44 {offsets = [5, 0], sizes = [1, 16], strides = [1, 1]} : vector<9x16xf32> to vector<1x16xf32>
    %85 = vector.broadcast %84 : vector<1x16xf32> to vector<128x16xf32>
    %86 = arith.mulf %83, %85 : vector<128x16xf32>
    %87 = arith.addf %80, %86 : vector<128x16xf32>
    %c0_71 = arith.constant 0 : index
    %c0_72 = arith.constant 0 : index
    %c0_73 = arith.constant 0 : index
    %c2_74 = arith.constant 2 : index
    %c0_75 = arith.constant 0 : index
    %c0_76 = arith.constant 0 : index
    %88 = vector.load %arg12[%c0_71, %c0_72, %c0_73, %c2_74, %c0_75, %c0_76] : memref<2x1x1x10x10x16xf32, #tpu.memory_space<vmem>>, vector<2x1x1x8x8x16xf32>
    %89 = vector.shape_cast %88 : vector<2x1x1x8x8x16xf32> to vector<2x8x8x16xf32>
    %90 = vector.shape_cast %89 : vector<2x8x8x16xf32> to vector<128x16xf32>
    %91 = vector.extract_strided_slice %44 {offsets = [6, 0], sizes = [1, 16], strides = [1, 1]} : vector<9x16xf32> to vector<1x16xf32>
    %92 = vector.broadcast %91 : vector<1x16xf32> to vector<128x16xf32>
    %93 = arith.mulf %90, %92 : vector<128x16xf32>
    %94 = arith.addf %87, %93 : vector<128x16xf32>
    %c0_77 = arith.constant 0 : index
    %c0_78 = arith.constant 0 : index
    %c0_79 = arith.constant 0 : index
    %c2_80 = arith.constant 2 : index
    %c1_81 = arith.constant 1 : index
    %c0_82 = arith.constant 0 : index
    %95 = vector.load %arg12[%c0_77, %c0_78, %c0_79, %c2_80, %c1_81, %c0_82] : memref<2x1x1x10x10x16xf32, #tpu.memory_space<vmem>>, vector<2x1x1x8x8x16xf32>
    %96 = vector.shape_cast %95 : vector<2x1x1x8x8x16xf32> to vector<2x8x8x16xf32>
    %97 = vector.shape_cast %96 : vector<2x8x8x16xf32> to vector<128x16xf32>
    %98 = vector.extract_strided_slice %44 {offsets = [7, 0], sizes = [1, 16], strides = [1, 1]} : vector<9x16xf32> to vector<1x16xf32>
    %99 = vector.broadcast %98 : vector<1x16xf32> to vector<128x16xf32>
    %100 = arith.mulf %97, %99 : vector<128x16xf32>
    %101 = arith.addf %94, %100 : vector<128x16xf32>
    %c0_83 = arith.constant 0 : index
    %c0_84 = arith.constant 0 : index
    %c0_85 = arith.constant 0 : index
    %c2_86 = arith.constant 2 : index
    %c2_87 = arith.constant 2 : index
    %c0_88 = arith.constant 0 : index
    %102 = vector.load %arg12[%c0_83, %c0_84, %c0_85, %c2_86, %c2_87, %c0_88] : memref<2x1x1x10x10x16xf32, #tpu.memory_space<vmem>>, vector<2x1x1x8x8x16xf32>
    %103 = vector.shape_cast %102 : vector<2x1x1x8x8x16xf32> to vector<2x8x8x16xf32>
    %104 = vector.shape_cast %103 : vector<2x8x8x16xf32> to vector<128x16xf32>
    %105 = vector.extract_strided_slice %44 {offsets = [8, 0], sizes = [1, 16], strides = [1, 1]} : vector<9x16xf32> to vector<1x16xf32>
    %106 = vector.broadcast %105 : vector<1x16xf32> to vector<128x16xf32>
    %107 = arith.mulf %104, %106 : vector<128x16xf32>
    %108 = arith.addf %101, %107 : vector<128x16xf32>
    %c0_89 = arith.constant 0 : index
    %c0_90 = arith.constant 0 : index
    %109 = vector.load %arg5[%c0_89, %c0_90] : memref<1x16xf32, #tpu.memory_space<vmem>>, vector<1x16xf32>
    %c0_91 = arith.constant 0 : index
    %c0_92 = arith.constant 0 : index
    %110 = vector.load %arg6[%c0_91, %c0_92] : memref<1x16xf32, #tpu.memory_space<vmem>>, vector<1x16xf32>
    %cst_93 = arith.constant dense<0.000000e+00> : vector<16xf32>
    %111 = vector.multi_reduction <add>, %108, %cst_93 [0] : vector<128x16xf32> to vector<16xf32>
    %112 = vector.shape_cast %111 : vector<16xf32> to vector<1x16xf32>
    %cst_94 = arith.constant 7.812500e-03 : f32
    %113 = vector.broadcast %cst_94 : f32 to vector<1x16xf32>
    %114 = arith.mulf %112, %113 : vector<1x16xf32>
    %115 = arith.mulf %108, %108 : vector<128x16xf32>
    %cst_95 = arith.constant dense<0.000000e+00> : vector<16xf32>
    %116 = vector.multi_reduction <add>, %115, %cst_95 [0] : vector<128x16xf32> to vector<16xf32>
    %117 = vector.shape_cast %116 : vector<16xf32> to vector<1x16xf32>
    %cst_96 = arith.constant 7.812500e-03 : f32
    %118 = vector.broadcast %cst_96 : f32 to vector<1x16xf32>
    %119 = arith.mulf %117, %118 : vector<1x16xf32>
    %120 = arith.mulf %114, %114 : vector<1x16xf32>
    %121 = arith.subf %119, %120 : vector<1x16xf32>
    %cst_97 = arith.constant 0.000000e+00 : f32
    %122 = vector.broadcast %cst_97 : f32 to vector<1x16xf32>
    %123 = arith.maximumf %121, %122 : vector<1x16xf32>
    %124 = vector.broadcast %114 : vector<1x16xf32> to vector<128x16xf32>
    %125 = arith.subf %108, %124 : vector<128x16xf32>
    %cst_98 = arith.constant 9.99999974E-6 : f32
    %126 = vector.broadcast %cst_98 : f32 to vector<1x16xf32>
    %127 = arith.addf %123, %126 : vector<1x16xf32>
    %128 = math.rsqrt %127 : vector<1x16xf32>
    %129 = arith.mulf %128, %109 : vector<1x16xf32>
    %130 = vector.broadcast %129 : vector<1x16xf32> to vector<128x16xf32>
    %131 = arith.mulf %125, %130 : vector<128x16xf32>
    %132 = vector.broadcast %110 : vector<1x16xf32> to vector<128x16xf32>
    %133 = arith.addf %131, %132 : vector<128x16xf32>
    %cst_99 = arith.constant 0.000000e+00 : f32
    %cst_100 = arith.constant 6.000000e+00 : f32
    %134 = vector.broadcast %cst_99 : f32 to vector<128x16xf32>
    %135 = arith.maximumf %134, %133 : vector<128x16xf32>
    %136 = vector.broadcast %cst_100 : f32 to vector<128x16xf32>
    %137 = arith.minimumf %136, %135 : vector<128x16xf32>
    %c0_101 = arith.constant 0 : index
    %c0_102 = arith.constant 0 : index
    %138 = vector.load %arg7[%c0_101, %c0_102] : memref<8x16xf32, #tpu.memory_space<vmem>>, vector<8x16xf32>
    %cst_103 = arith.constant dense<0.000000e+00> : vector<8x128xf32>
    %139 = tpu.matmul %138, %137, %cst_103 {dimension_numbers = #tpu.dot_dimension_numbers<[1], [1], [0], [0], [0, 0, 1, 0], [], []>} : vector<8x16xf32>, vector<128x16xf32>, vector<8x128xf32> -> vector<8x128xf32>
    %c0_104 = arith.constant 0 : index
    %c0_105 = arith.constant 0 : index
    %140 = vector.load %arg8[%c0_104, %c0_105] : memref<8x1xf32, #tpu.memory_space<vmem>>, vector<8x1xf32>
    %c0_106 = arith.constant 0 : index
    %c0_107 = arith.constant 0 : index
    %141 = vector.load %arg9[%c0_106, %c0_107] : memref<8x1xf32, #tpu.memory_space<vmem>>, vector<8x1xf32>
    %cst_108 = arith.constant dense<0.000000e+00> : vector<8xf32>
    %142 = vector.multi_reduction <add>, %139, %cst_108 [1] : vector<8x128xf32> to vector<8xf32>
    %143 = vector.shape_cast %142 : vector<8xf32> to vector<8x1xf32>
    %cst_109 = arith.constant 7.812500e-03 : f32
    %144 = vector.broadcast %cst_109 : f32 to vector<8x1xf32>
    %145 = arith.mulf %143, %144 : vector<8x1xf32>
    %146 = arith.mulf %139, %139 : vector<8x128xf32>
    %cst_110 = arith.constant dense<0.000000e+00> : vector<8xf32>
    %147 = vector.multi_reduction <add>, %146, %cst_110 [1] : vector<8x128xf32> to vector<8xf32>
    %148 = vector.shape_cast %147 : vector<8xf32> to vector<8x1xf32>
    %cst_111 = arith.constant 7.812500e-03 : f32
    %149 = vector.broadcast %cst_111 : f32 to vector<8x1xf32>
    %150 = arith.mulf %148, %149 : vector<8x1xf32>
    %151 = arith.mulf %145, %145 : vector<8x1xf32>
    %152 = arith.subf %150, %151 : vector<8x1xf32>
    %cst_112 = arith.constant 0.000000e+00 : f32
    %153 = vector.broadcast %cst_112 : f32 to vector<8x1xf32>
    %154 = arith.maximumf %152, %153 : vector<8x1xf32>
    %155 = vector.broadcast %145 : vector<8x1xf32> to vector<8x128xf32>
    %156 = arith.subf %139, %155 : vector<8x128xf32>
    %cst_113 = arith.constant 9.99999974E-6 : f32
    %157 = vector.broadcast %cst_113 : f32 to vector<8x1xf32>
    %158 = arith.addf %154, %157 : vector<8x1xf32>
    %159 = math.rsqrt %158 : vector<8x1xf32>
    %160 = arith.mulf %159, %140 : vector<8x1xf32>
    %161 = vector.broadcast %160 : vector<8x1xf32> to vector<8x128xf32>
    %162 = arith.mulf %156, %161 : vector<8x128xf32>
    %163 = vector.broadcast %141 : vector<8x1xf32> to vector<8x128xf32>
    %164 = arith.addf %162, %163 : vector<8x128xf32>
    %c0_114 = arith.constant 0 : index
    %c0_115 = arith.constant 0 : index
    %165 = vector.load %arg10[%c0_114, %c0_115] : memref<8x128xf32, #tpu.memory_space<vmem>>, vector<8x128xf32>
    %166 = arith.addf %164, %165 : vector<8x128xf32>
    %c0_116 = arith.constant 0 : index
    %c0_117 = arith.constant 0 : index
    %167 = vector.load %arg11[%c0_116, %c0_117] : memref<8x128xf32, #tpu.memory_space<vmem>>, vector<8x128xf32>
    tpu.vector_store %arg11[%c0_116, %c0_117], %166 {strides = array<i32>} : memref<8x128xf32, #tpu.memory_space<vmem>>, vector<8x128xf32>,
    return
  }
}

</mosaic_0001>

<bundles_post_ra>
// kernel: block_forward.3
= control target key start
LH: loop header
LB: loop body
LE: loop exit
PB: predicated region body
PF: predicated region fallthrough
CT: control target
= control target key end

     0   :  { %vm55_vm0 = vcmask 64512   ;;  %vm171_vm1 = vcmask 130048   ;;  %vm364_vm2 = vcmask 123904   ;;  %s2292_s1 = inlined_call_operand.vmem [shape: f32[8,16], index: 1, kind: input, shape index: {}]   ;;  %s2293_s0 = inlined_call_operand.vmem [shape: f32[128,8], index: 0, kind: input, shape index: {}]   ;;  %s2294_s3 = inlined_call_operand.vmem [shape: f32[1,16], index: 3, kind: input, shape index: {}]   ;;  %s2295_s4 = inlined_call_operand.vmem [shape: f32[9,16], index: 4, kind: input, shape index: {}]   ;;  %s2296_s6 = inlined_call_operand.vmem [shape: f32[1,16], index: 6, kind: input, shape index: {}]   ;;  %s2297_s2 = inlined_call_operand.vmem [shape: f32[1,16], index: 2, kind: input, shape index: {}]   ;;  %s2298_s5 = inlined_call_operand.vmem [shape: f32[1,16], index: 5, kind: input, shape index: {}]   ;;  %s2299_s7 = inlined_call_operand.vmem [shape: f32[8,16], index: 7, kind: input, shape index: {}]   ;;  %s2300_s8 = inlined_call_operand.vmem [shape: f32[8,1], index: 8, kind: input, shape index: {}]   ;;  %s2301_s9 = inlined_call_operand.vmem [shape: f32[8,1], index: 9, kind: input, shape index: {}]   ;;  %s2302_s10 = inlined_call_operand.vmem [shape: f32[8,128], index: 10, kind: input, shape index: {}]   ;;  %s2303_s11 = inlined_call_operand.vmem [shape: f32[8,128], index: 11, kind: output, shape index: {}]  }
   0x1   :  { %v54_v0 = vld [vmem:[%s2292_s1] sm:$0xff]  ;;  %v45_v2 = vld [vmem:[%s2293_s0 + $0x38] sm:$0xff]  ;;  %v39_v3 = vld [vmem:[%s2293_s0 + $0x8] sm:$0xff] }
   0x2   :  { %v38_v1 = vld [vmem:[%s2293_s0] sm:$0xff]  ;;  %119 = vmatpush.msra.mxu0 %v54_v0  ;;  %1208 = vmatpush.msra.mxu2 %v54_v0  ;;  %v40_v5 = vld [vmem:[%s2293_s0 + $0x10] sm:$0xff]  ;;  %v47_v6 = vld [vmem:[%s2293_s0 + $0x48] sm:$0xff] }
   0x3   :  { %1175 = vmatmul.msk.f32.vlgmr.msra.gmra.mxu0 %vm55_vm0, %v38_v1  ;;  %1182 = vmatmul.msk.f32.vlgmr.msra.gmra.mxu2 %vm55_vm0, %v45_v2  ;;  %v46_v4 = vld [vmem:[%s2293_s0 + $0x40] sm:$0xff]  ;;  %v52_v7 = vld [vmem:[%s2293_s0 + $0x70] sm:$0xff]  ;;  %v41_v8 = vld [vmem:[%s2293_s0 + $0x18] sm:$0xff] }
   0x4   :  { %1209 = vmatpush.msra.mxu3 %v54_v0  ;;  %v48_v9 = vld [vmem:[%s2293_s0 + $0x50] sm:$0xff]  ;;  %v53_v10 = vld [vmem:[%s2293_s0 + $0x78] sm:$0xff]  ;;  %v42_v11 = vld [vmem:[%s2293_s0 + $0x20] sm:$0xff] }
   0x5   :  { %1189 = vmatmul.msk.f32.vlgmr.msra.gmra.mxu3 %vm55_vm0, %v52_v7  ;;  %v49_v12 = vld [vmem:[%s2293_s0 + $0x58] sm:$0xff]  ;;  %v43_v13 = vld [vmem:[%s2293_s0 + $0x28] sm:$0xff]  ;;  %v50_v14 = vld [vmem:[%s2293_s0 + $0x60] sm:$0xff] }
   0x6   :  { %v44_v15 = vld [vmem:[%s2293_s0 + $0x30] sm:$0xff]  ;;  %v51_v16 = vld [vmem:[%s2293_s0 + $0x68] sm:$0xff] }
   0xb   :  { %1176 = vmatmul.msk.f32.gmra.mxu0 %vm55_vm0, %v39_v3  ;;  %1183 = vmatmul.msk.f32.gmra.mxu2 %vm55_vm0, %v46_v4 }
   0xd   :  { %1190 = vmatmul.msk.f32.gmra.mxu3 %vm55_vm0, %v53_v10 }
  0x13   :  { %1177 = vmatmul.msk.f32.gmra.mxu0 %vm55_vm0, %v40_v5  ;;  %1184 = vmatmul.msk.f32.gmra.mxu2 %vm55_vm0, %v47_v6 }
  0x1b   :  { %1178 = vmatmul.msk.f32.gmra.mxu0 %vm55_vm0, %v41_v8  ;;  %1185 = vmatmul.msk.f32.gmra.mxu2 %vm55_vm0, %v48_v9 }
  0x23   :  { %1179 = vmatmul.msk.f32.gmra.mxu0 %vm55_vm0, %v42_v11  ;;  %1186 = vmatmul.msk.f32.gmra.mxu2 %vm55_vm0, %v49_v12 }
  0x2b   :  { %1180 = vmatmul.msk.f32.gmra.mxu0 %vm55_vm0, %v43_v13  ;;  %1187 = vmatmul.msk.f32.gmra.mxu2 %vm55_vm0, %v50_v14 }
  0x33   :  { %1181 = vmatmul.msk.f32.gmra.mxu0 %vm55_vm0, %v44_v15  ;;  %1188 = vmatmul.msk.f32.gmra.mxu2 %vm55_vm0, %v51_v16 }
  0x80   :  { %v1352_v17 = vpop.f32.mrf.mxu0 }
  0x81   :  { %v210_v27 = vmul.f32 %v1352_v17, %v1352_v17  ;;  %v172_v31 = vsel %vm171_vm1, %v1352_v17, 0.0 }
  0x83   :  { %v226_v37 = vsel %vm171_vm1, %v210_v27, 0.0 }
  0x86   :  { %v1354_v18 = vpop.f32.mrf.mxu2 }
  0x87   :  { %v217_v57 = vmul.f32 %v1354_v18, %v1354_v18  ;;  %v185_v63 = vsel %vm171_vm1, %v1354_v18, 0.0 }
  0x88   :  { %v1356_v19 = vpop.f32.mrf.mxu0  ;;  %v1414_v62 = vpop.f32.mrf.mxu3 }
  0x89   :  { %v211_v26 = vmul.f32 %v1356_v19, %v1356_v19  ;;  %v173_v28 = vsel %vm171_vm1, %v1356_v19, 0.0  ;;  %v239_v4 = vsel %vm171_vm1, %v217_v57, 0.0 }
  0x8a   :  { %v174_v35 = vadd.f32 %v173_v28, %v172_v31 }
  0x8b   :  { %v227_v32 = vsel %vm171_vm1, %v211_v26, 0.0 }
  0x8c   :  { %v228_v41 = vadd.f32 %v227_v32, %v226_v37 }
  0x8e   :  { %v1358_v20 = vpop.f32.mrf.mxu2 }
  0x8f   :  { %v218_v0 = vmul.f32 %v1358_v20, %v1358_v20  ;;  %v187_v5 = vsel %vm171_vm1, %v1358_v20, 0.0 }
  0x90   :  { %v1360_v21 = vpop.f32.mrf.mxu0  ;;  %v1445_v37 = vpop.f32.mrf.mxu3 }
  0x91   :  { %v212_v29 = vmul.f32 %v1360_v21, %v1360_v21  ;;  %v175_v33 = vsel %vm171_vm1, %v1360_v21, 0.0  ;;  %v241_v9 = vsel %vm171_vm1, %v218_v0, 0.0 }
  0x92   :  { %v176_v42 = vadd.f32 %v175_v33, %v174_v35 }
  0x93   :  { %v229_v38 = vsel %vm171_vm1, %v212_v29, 0.0 }
  0x94   :  { %v230_v46 = vadd.f32 %v229_v38, %v228_v41 }
  0x96   :  { %v1362_v22 = vpop.f32.mrf.mxu2 }
  0x97   :  { %v219_v6 = vmul.f32 %v1362_v22, %v1362_v22  ;;  %v189_v10 = vsel %vm171_vm1, %v1362_v22, 0.0 }
  0x98   :  { %v1364_v23 = vpop.f32.mrf.mxu0 }
  0x99   :  { %v213_v34 = vmul.f32 %v1364_v23, %v1364_v23  ;;  %v177_v39 = vsel %vm171_vm1, %v1364_v23, 0.0  ;;  %v243_v15 = vsel %vm171_vm1, %v219_v6, 0.0 }
  0x9a   :  { %v178_v47 = vadd.f32 %v177_v39, %v176_v42 }
  0x9b   :  { %v231_v43 = vsel %vm171_vm1, %v213_v34, 0.0 }
  0x9c   :  { %v232_v50 = vadd.f32 %v231_v43, %v230_v46  ;;  %v225_v46 = vmul.f32 %v1445_v37, %v1445_v37 }
  0x9e   :  { %v1366_v24 = vpop.f32.mrf.mxu2 }
  0x9f   :  { %v220_v11 = vmul.f32 %v1366_v24, %v1366_v24  ;;  %v191_v16 = vsel %vm171_vm1, %v1366_v24, 0.0 }
  0xa0   :  { %v1368_v25 = vpop.f32.mrf.mxu0 }
  0xa1   :  { %v214_v40 = vmul.f32 %v1368_v25, %v1368_v25  ;;  %v179_v44 = vsel %vm171_vm1, %v1368_v25, 0.0  ;;  %v245_v29 = vsel %vm171_vm1, %v220_v11, 0.0 }
  0xa2   :  { %v180_v51 = vadd.f32 %v179_v44, %v178_v47  ;;  %v224_v44 = vmul.f32 %v1414_v62, %v1414_v62 }
  0xa3   :  { %v233_v48 = vsel %vm171_vm1, %v214_v40, 0.0 }
  0xa4   :  { %v234_v54 = vadd.f32 %v233_v48, %v232_v50  ;;  %v201_v50 = vsel %vm171_vm1, %v1445_v37, 0.0 }
  0xa6   :  { %v1378_v30 = vpop.f32.mrf.mxu2 }
  0xa7   :  { %v221_v26 = vmul.f32 %v1378_v30, %v1378_v30  ;;  %v193_v31 = vsel %vm171_vm1, %v1378_v30, 0.0 }
  0xa8   :  { %v1387_v36 = vpop.f32.mrf.mxu0 }
  0xa9   :  { %v215_v45 = vmul.f32 %v1387_v36, %v1387_v36  ;;  %v181_v49 = vsel %vm171_vm1, %v1387_v36, 0.0  ;;  %v247_v38 = vsel %vm171_vm1, %v221_v26, 0.0 }
  0xaa   :  { %v182_v55 = vadd.f32 %v181_v49, %v180_v51  ;;  %v199_v49 = vsel %vm171_vm1, %v1414_v62, 0.0 }
  0xab   :  { %v235_v53 = vsel %vm171_vm1, %v215_v45, 0.0 }
  0xac   :  { %v236_v60 = vadd.f32 %v235_v53, %v234_v54  ;;  %v253_v54 = vsel %vm171_vm1, %v224_v44, 0.0 }
  0xae   :  { %v1403_v52 = vpop.f32.mrf.mxu2 }
  0xaf   :  { %v222_v32 = vmul.f32 %v1403_v52, %v1403_v52  ;;  %v195_v39 = vsel %vm171_vm1, %v1403_v52, 0.0 }
  0xb0   :  { %v1406_v56 = vpop.f32.mrf.mxu0 }
  0xb1   :  { %v183_v58 = vsel %vm171_vm1, %v1406_v56, 0.0  ;;  %v216_v59 = vmul.f32 %v1406_v56, %v1406_v56  ;;  %v249_v43 = vsel %vm171_vm1, %v222_v32, 0.0  ;;  %v169_v32 = vld [vmem:[%s2297_s2] sm:$0x1] }
  0xb2   :  { %v184_v61 = vadd.f32 %v183_v58, %v182_v55  ;;  %v255_v55 = vsel %vm171_vm1, %v225_v46, 0.0 }
  0xb3   :  { %v237_v1 = vsel %vm171_vm1, %v216_v59, 0.0 }
  0xb4   :  { %v186_v2 = vadd.f32 %v185_v63, %v184_v61  ;;  %v238_v3 = vadd.f32 %v237_v1, %v236_v60 }
  0xb6   :  { %v188_v7 = vadd.f32 %v187_v5, %v186_v2  ;;  %v240_v8 = vadd.f32 %v239_v4, %v238_v3  ;;  %v1431_v14 = vpop.f32.mrf.mxu2 }
  0xb7   :  { %v223_v33 = vmul.f32 %v1431_v14, %v1431_v14  ;;  %v197_v40 = vsel %vm171_vm1, %v1431_v14, 0.0 }
  0xb8   :  { %v190_v12 = vadd.f32 %v189_v10, %v188_v7  ;;  %v242_v13 = vadd.f32 %v241_v9, %v240_v8 }
  0xb9   :  { %v251_v45 = vsel %vm171_vm1, %v223_v33, 0.0 }
  0xba   :  { %v244_v27 = vadd.f32 %v243_v15, %v242_v13  ;;  %v192_v28 = vadd.f32 %v191_v16, %v190_v12  ;;  %v1223_v13 = vmov 0.0  }
  0xbb   :  { %400 = vst.msk [vmem:[#allocation2 + $0x120] sm:$0xff] %vm171_vm1, %v1223_v13 }
  0xbc   :  { %v194_v34 = vadd.f32 %v193_v31, %v192_v28  ;;  %v246_v35 = vadd.f32 %v245_v29, %v244_v27  ;;  %401 = vst.msk [vmem:[#allocation2 + $0x128] sm:$0x3] %vm364_vm2, %v1223_v13 }
  0xbd   :  { %363 = vst.msk [vmem:[#allocation2] sm:$0xff] %vm171_vm1, %v1223_v13 }
  0xbe   :  { %v196_v41 = vadd.f32 %v195_v39, %v194_v34  ;;  %v248_v42 = vadd.f32 %v247_v38, %v246_v35  ;;  %365 = vst.msk [vmem:[#allocation2 + $0x8] sm:$0x3] %vm364_vm2, %v1223_v13 }
  0xbf   :  { %366 = vst.msk [vmem:[#allocation2 + $0x10] sm:$0xff] %vm171_vm1, %v1223_v13 }
  0xc0   :  { %v250_v47 = vadd.f32 %v249_v43, %v248_v42  ;;  %v198_v48 = vadd.f32 %v197_v40, %v196_v41  ;;  %367 = vst.msk [vmem:[#allocation2 + $0x18] sm:$0x3] %vm364_vm2, %v1223_v13  ;;  %v1530_v40 = vld [vmem:[%s2294_s3] ss:$0 sm:$0xff] }
  0xc1   :  { %368 = vst.msk [vmem:[#allocation2 + $0x20] sm:$0xff] %vm171_vm1, %v1223_v13 }
  0xc2   :  { %v252_v51 = vadd.f32 %v251_v45, %v250_v47  ;;  %v200_v53 = vadd.f32 %v199_v49, %v198_v48  ;;  %369 = vst.msk [vmem:[#allocation2 + $0x28] sm:$0x3] %vm364_vm2, %v1223_v13 }
  0xc3   :  { %370 = vst.msk [vmem:[#allocation2 + $0x30] sm:$0xff] %vm171_vm1, %v1223_v13 }
  0xc4   :  { %v202_v57 = vadd.f32 %v201_v50, %v200_v53  ;;  %v254_v58 = vadd.f32 %v253_v54, %v252_v51  ;;  %371 = vst.msk [vmem:[#allocation2 + $0x38] sm:$0x3] %vm364_vm2, %v1223_v13 }
  0xc5   :  { %372 = vst.msk [vmem:[#allocation2 + $0x40] sm:$0xff] %vm171_vm1, %v1223_v13 }
  0xc6   :  { %v203_v59 = vrot.slane %v202_v57, 4  ;;  %v256_v60 = vadd.f32 %v255_v55, %v254_v58  ;;  %373 = vst.msk [vmem:[#allocation2 + $0x48] sm:$0x3] %vm364_vm2, %v1223_v13 }
  0xc7   :  { %374 = vst.msk [vmem:[#allocation2 + $0x50] sm:$0xff] %vm171_vm1, %v1223_v13 }
  0xc8   :  { %v204_v61 = vadd.f32 %v203_v59, %v202_v57  ;;  %v257_v63 = vrot.slane %v256_v60, 4  ;;  %375 = vst.msk [vmem:[#allocation2 + $0x58] sm:$0x3] %vm364_vm2, %v1223_v13 }
  0xc9   :  { %376 = vst.msk [vmem:[#allocation2 + $0x60] sm:$0xff] %vm171_vm1, %v1223_v13 }
  0xca   :  { %v205_v0 = vrot.slane %v204_v61, 2  ;;  %v258_v1 = vadd.f32 %v257_v63, %v256_v60  ;;  %377 = vst.msk [vmem:[#allocation2 + $0x68] sm:$0x3] %vm364_vm2, %v1223_v13 }
  0xcb   :  { %378 = vst.msk [vmem:[#allocation2 + $0x70] sm:$0xff] %vm171_vm1, %v1223_v13 }
  0xcc   :  { %v206_v2 = vadd.f32 %v205_v0, %v204_v61  ;;  %v259_v3 = vrot.slane %v258_v1, 2  ;;  %379 = vst.msk [vmem:[#allocation2 + $0x78] sm:$0x3] %vm364_vm2, %v1223_v13 }
  0xcd   :  { %380 = vst.msk [vmem:[#allocation2 + $0x80] sm:$0xff] %vm171_vm1, %v1223_v13 }
  0xce   :  { %v207_v4 = vrot.slane %v206_v2, 1  ;;  %v260_v5 = vadd.f32 %v259_v3, %v258_v1  ;;  %381 = vst.msk [vmem:[#allocation2 + $0x88] sm:$0x3] %vm364_vm2, %v1223_v13 }
  0xcf   :  { %382 = vst.msk [vmem:[#allocation2 + $0x90] sm:$0xff] %vm171_vm1, %v1223_v13 }
  0xd0   :  { %v208_v6 = vadd.f32 %v207_v4, %v206_v2  ;;  %v261_v7 = vrot.slane %v260_v5, 1  ;;  %383 = vst.msk [vmem:[#allocation2 + $0x98] sm:$0x3] %vm364_vm2, %v1223_v13 }
  0xd1   :  { %384 = vst.msk [vmem:[#allocation2 + $0xa0] sm:$0xff] %vm171_vm1, %v1223_v13 }
  0xd2   :  { %v1464_v8 = vmul.f32 0.0078125, %v208_v6  ;;  %v262_v9 = vadd.f32 %v261_v7, %v260_v5  ;;  %385 = vst.msk [vmem:[#allocation2 + $0xa8] sm:$0x3] %vm364_vm2, %v1223_v13 }
  0xd3   :  { %386 = vst.msk [vmem:[#allocation2 + $0xb0] sm:$0xff] %vm171_vm1, %v1223_v13 }
  0xd4   :  { %v263_v10 = vmul.f32 0.0078125, %v262_v9  ;;  %v264_v11 = vmul.f32 %v1464_v8, %v1464_v8  ;;  %387 = vst.msk [vmem:[#allocation2 + $0xb8] sm:$0x3] %vm364_vm2, %v1223_v13  ;;  %v282_v38 = vsub.f32 %v1445_v37, %v1464_v8  ;;  %v267_v41 = vsub.f32 %v1352_v17, %v1464_v8 }
  0xd5   :  { %388 = vst.msk [vmem:[#allocation2 + $0xc0] sm:$0xff] %vm171_vm1, %v1223_v13  ;;  %v268_v42 = vsub.f32 %v1356_v19, %v1464_v8  ;;  %v269_v37 = vsub.f32 %v1360_v21, %v1464_v8  ;;  %v270_v43 = vsub.f32 %v1364_v23, %v1464_v8  ;;  %v271_v17 = vsub.f32 %v1368_v25, %v1464_v8 }
  0xd6   :  { %v265_v12 = vsub.f32 %v263_v10, %v264_v11  ;;  %389 = vst.msk [vmem:[#allocation2 + $0xc8] sm:$0x3] %vm364_vm2, %v1223_v13  ;;  %v272_v21 = vsub.f32 %v1387_v36, %v1464_v8  ;;  %v273_v25 = vsub.f32 %v1406_v56, %v1464_v8  ;;  %v274_v48 = vsub.f32 %v1354_v18, %v1464_v8 }
  0xd7   :  { %390 = vst.msk [vmem:[#allocation2 + $0xd0] sm:$0xff] %vm171_vm1, %v1223_v13  ;;  %v275_v36 = vsub.f32 %v1358_v20, %v1464_v8  ;;  %v276_v50 = vsub.f32 %v1362_v22, %v1464_v8  ;;  %v277_v51 = vsub.f32 %v1366_v24, %v1464_v8  ;;  %v278_v20 = vsub.f32 %v1378_v30, %v1464_v8 }
  0xd8   :  { %v266_v15 = vmax.f32 %v265_v12, 0.0  ;;  %391 = vst.msk [vmem:[#allocation2 + $0xd8] sm:$0x3] %vm364_vm2, %v1223_v13  ;;  %v279_v59 = vsub.f32 %v1403_v52, %v1464_v8  ;;  %v280_v30 = vsub.f32 %v1431_v14, %v1464_v8  ;;  %v281_v52 = vsub.f32 %v1414_v62, %v1464_v8 }
  0xd9   :  { %392 = vst.msk [vmem:[#allocation2 + $0xe0] sm:$0xff] %vm171_vm1, %v1223_v13 }
  0xda   :  { %v283_v16 = vadd.f32 1e-05, %v266_v15  ;;  %393 = vst.msk [vmem:[#allocation2 + $0xe8] sm:$0x3] %vm364_vm2, %v1223_v13 }
  0xdb   :  { %394 = vst.msk [vmem:[#allocation2 + $0xf0] sm:$0xff] %vm171_vm1, %v1223_v13 }
  0xdc   :  { %1217 = vrsqrt.f32 %v283_v16  ;;  %vm290_vm4 = vweird.f32 %v283_v16  ;;  %395 = vst.msk [vmem:[#allocation2 + $0xf8] sm:$0x3] %vm364_vm2, %v1223_v13 }
  0xdd   :  { %396 = vst.msk [vmem:[#allocation2 + $0x100] sm:$0xff] %vm171_vm1, %v1223_v13 }
  0xde   :  { %397 = vst.msk [vmem:[#allocation2 + $0x108] sm:$0x3] %vm364_vm2, %v1223_v13 }
  0xdf   :  { %398 = vst.msk [vmem:[#allocation2 + $0x110] sm:$0xff] %vm171_vm1, %v1223_v13 }
  0xe0   :  { %399 = vst.msk [vmem:[#allocation2 + $0x118] sm:$0x3] %vm364_vm2, %v1223_v13 }
  0xe1   :  { %402 = vst.msk [vmem:[#allocation2 + $0x130] sm:$0xff] %vm171_vm1, %v1223_v13 }
  0xe2   :  { %v1218_v26 = vpop.eup %1217  ;;  %403 = vst.msk [vmem:[#allocation2 + $0x138] sm:$0x3] %vm364_vm2, %v1223_v13 }
  0xe3   :  { %v285_v27 = vmul.f32 %v1218_v26, %v283_v16  ;;  %vm291_vm3 = vweird.f32 %v1218_v26 }
  0xe4   :  { %vm292_vm5 = vmor %vm290_vm4, %vm291_vm3 }
  0xe5   :  { %v286_v28 = vmul.f32 %v1218_v26, %v285_v27 }
  0xe7   :  { %v287_v29 = vmul.f32 0.5, %v286_v28 }
  0xe9   :  { %v288_v31 = vsub.f32 1.5, %v287_v29 }
  0xeb   :  { %v289_v33 = vmul.f32 %v1218_v26, %v288_v31 }
  0xed   :  { %v293_v34 = vsel %vm292_vm5, %v1218_v26, %v289_v33 }
  0xee   :  { %v294_v35 = vmul.f32 %v293_v34, %v169_v32 }
  0xf0   :  { %v1525_v39 = vperm.slane %v294_v35, 0 }
  0xf2   :  { %v311_v44 = vmul.f32 %v1525_v39, %v282_v38  ;;  %v296_v45 = vmul.f32 %v1525_v39, %v267_v41  ;;  %v297_v19 = vmul.f32 %v1525_v39, %v268_v42  ;;  %v298_v23 = vmul.f32 %v1525_v39, %v269_v37 }
  0xf3   :  { %v299_v46 = vmul.f32 %v1525_v39, %v270_v43  ;;  %v300_v49 = vmul.f32 %v1525_v39, %v271_v17  ;;  %v301_v53 = vmul.f32 %v1525_v39, %v272_v21  ;;  %v302_v18 = vmul.f32 %v1525_v39, %v273_v25  ;;  %v1631_v21 = vld [vmem:[%s2295_s4] sm:$0xff] }
  0xf4   :  { %v330_v47 = vadd.f32 %v1530_v40, %v311_v44  ;;  %v315_v54 = vadd.f32 %v1530_v40, %v296_v45  ;;  %v316_v55 = vadd.f32 %v1530_v40, %v297_v19  ;;  %v303_v22 = vmul.f32 %v1525_v39, %v274_v48  ;;  %2359 = vst [vmem:[#allocation3_spill] sm:$0xff] %v1631_v21 }
  0xf5   :  { %v317_v24 = vadd.f32 %v1530_v40, %v298_v23  ;;  %v318_v57 = vadd.f32 %v1530_v40, %v299_v46  ;;  %v304_v60 = vmul.f32 %v1525_v39, %v275_v36  ;;  %v319_v61 = vadd.f32 %v1530_v40, %v300_v49 }
  0xf6   :  { %v346_v56 = vmax.f32 %v330_v47, 0.0  ;;  %v305_v63 = vmul.f32 %v1525_v39, %v276_v50  ;;  %v306_v0 = vmul.f32 %v1525_v39, %v277_v51  ;;  %v320_v1 = vadd.f32 %v1530_v40, %v301_v53  ;;  %v424_v50 = vld [vmem:[#allocation2] sm:$0xff] }
  0xf7   :  { %v321_v2 = vadd.f32 %v1530_v40, %v302_v18  ;;  %v331_v3 = vmax.f32 %v315_v54, 0.0  ;;  %v332_v4 = vmax.f32 %v316_v55, 0.0  ;;  %v307_v14 = vmul.f32 %v1525_v39, %v278_v20  ;;  %v473_v51 = vld [vmem:[#allocation2 + $0x1] sm:$0xff] }
  0xf8   :  { %v362_v58 = vmin.f32 %v346_v56, 6.0  ;;  %v322_v5 = vadd.f32 %v1530_v40, %v303_v22  ;;  %v333_v6 = vmax.f32 %v317_v24, 0.0  ;;  %v334_v7 = vmax.f32 %v318_v57, 0.0  ;;  %v432_v56 = vld [vmem:[#allocation2 + $0xa0] sm:$0xff] }
  0xf9   :  { %v308_v9 = vmul.f32 %v1525_v39, %v279_v59  ;;  %v309_v62 = vmul.f32 %v1525_v39, %v280_v30  ;;  %v323_v8 = vadd.f32 %v1530_v40, %v304_v60  ;;  %v335_v10 = vmax.f32 %v319_v61, 0.0  ;;  %v481_v18 = vld [vmem:[#allocation2 + $0xa1] sm:$0xff] }
  0xfa   :  { %421 = vst.msk [vmem:[#allocation2 + $0x121] sm:$0xff] %vm171_vm1, %v362_v58  ;;  %v310_v11 = vmul.f32 %v1525_v39, %v281_v52  ;;  %v324_v12 = vadd.f32 %v1530_v40, %v305_v63  ;;  %v325_v15 = vadd.f32 %v1530_v40, %v306_v0  ;;  %v336_v16 = vmax.f32 %v320_v1, 0.0  ;;  %v522_v58 = vld [vmem:[#allocation2 + $0x2] sm:$0xff] }
  0xfb   :  { %v337_v26 = vmax.f32 %v321_v2, 0.0  ;;  %v347_v27 = vmin.f32 %v331_v3, 6.0  ;;  %v348_v28 = vmin.f32 %v332_v4, 6.0  ;;  %v349_v29 = vmin.f32 %v333_v6, 6.0  ;;  %v530_v59 = vld [vmem:[#allocation2 + $0xa2] sm:$0xff] }
  0xfc   :  { %v326_v31 = vadd.f32 %v1530_v40, %v307_v14  ;;  %v338_v32 = vmax.f32 %v322_v5, 0.0  ;;  %v350_v33 = vmin.f32 %v334_v7, 6.0  ;;  %v327_v34 = vadd.f32 %v1530_v40, %v308_v9 }
  0xfd   :  { %v339_v35 = vmax.f32 %v323_v8, 0.0  ;;  %v351_v38 = vmin.f32 %v335_v10, 6.0  ;;  %405 = vst.msk [vmem:[#allocation2 + $0x11] sm:$0xff] %vm171_vm1, %v347_v27  ;;  %v328_v39 = vadd.f32 %v1530_v40, %v309_v62  ;;  %v340_v41 = vmax.f32 %v324_v12, 0.0 }
  0xfe   :  { %v352_v42 = vmin.f32 %v336_v16, 6.0  ;;  %406 = vst.msk [vmem:[#allocation2 + $0x21] sm:$0xff] %vm171_vm1, %v348_v28  ;;  %v329_v13 = vadd.f32 %v1530_v40, %v310_v11  ;;  %v341_v37 = vmax.f32 %v325_v15, 0.0  ;;  %v353_v43 = vmin.f32 %v337_v26, 6.0 }
  0xff   :  { %407 = vst.msk [vmem:[#allocation2 + $0x31] sm:$0xff] %vm171_vm1, %v349_v29  ;;  %v342_v44 = vmax.f32 %v326_v31, 0.0  ;;  %v354_v17 = vmin.f32 %v338_v32, 6.0  ;;  %v343_v45 = vmax.f32 %v327_v34, 0.0  ;;  %v355_v19 = vmin.f32 %v339_v35, 6.0 }
 0x100   :  { %408 = vst.msk [vmem:[#allocation2 + $0x41] sm:$0xff] %vm171_vm1, %v350_v33  ;;  %v344_v23 = vmax.f32 %v328_v39, 0.0  ;;  %v356_v46 = vmin.f32 %v340_v41, 6.0  ;;  %v345_v40 = vmax.f32 %v329_v13, 0.0  ;;  %v357_v47 = vmin.f32 %v341_v37, 6.0 }
 0x101   :  { %409 = vst.msk [vmem:[#allocation2 + $0x51] sm:$0xff] %vm171_vm1, %v351_v38  ;;  %v358_v25 = vmin.f32 %v342_v44, 6.0  ;;  %v1637_v48 = vperm.slane %v1631_v21, 0  ;;  %v1640_v49 = vperm.slane %v1631_v21, 1  ;;  %v359_v36 = vmin.f32 %v343_v45, 6.0  ;;  %v1655_v60 = vld [vmem:[#allocation2 + $0x120] sm:$0xff] }
 0x102   :  { %410 = vst.msk [vmem:[#allocation2 + $0x61] sm:$0xff] %vm171_vm1, %v352_v42  ;;  %v360_v53 = vmin.f32 %v344_v23, 6.0  ;;  %v361_v54 = vmin.f32 %v345_v40, 6.0  ;;  %v1649_v22 = vperm.slane %v1631_v21, 2  ;;  %v1658_v61 = vperm.slane %v1631_v21, 3  ;;  %v1680_v62 = vld [vmem:[#allocation2 + $0x121] sm:$0xff] }
 0x103   :  { %411 = vst.msk [vmem:[#allocation2 + $0x71] sm:$0xff] %vm171_vm1, %v353_v43  ;;  %v441_v55 = vmul.f32 %v1637_v48, %v424_v50  ;;  %v490_v20 = vmul.f32 %v1640_v49, %v473_v51  ;;  %v449_v24 = vmul.f32 %v1637_v48, %v432_v56  ;;  %v498_v57 = vmul.f32 %v1640_v49, %v481_v18 }
 0x104   :  { %412 = vst.msk [vmem:[#allocation2 + $0x81] sm:$0xff] %vm171_vm1, %v354_v17  ;;  %v425_v30 = vld [vmem:[#allocation2 + $0x10] sm:$0xff]  ;;  %v539_v4 = vmul.f32 %v1649_v22, %v522_v58  ;;  %v1673_v14 = vperm.slane %v1631_v21, 4  ;;  %v547_v9 = vmul.f32 %v1649_v22, %v530_v59  ;;  %v1693_v16 = vmul.f32 %v1658_v61, %v1655_v60 }
 0x105   :  { %414 = vst.msk [vmem:[#allocation2 + $0xb1] sm:$0xff] %vm171_vm1, %v355_v19  ;;  %v1661_v63 = vld [vmem:[#allocation2 + $0x20] sm:$0xff]  ;;  %v1663_v0 = vld [vmem:[#allocation2 + $0x11] sm:$0xff]  ;;  %v506_v3 = vadd.f32 %v490_v20, %v441_v55  ;;  %v514_v7 = vadd.f32 %v498_v57, %v449_v24  ;;  %v442_v10 = vmul.f32 %v1637_v48, %v425_v30  ;;  %v1696_v26 = vperm.slane %v1631_v21, 5 }
 0x106   :  { %415 = vst.msk [vmem:[#allocation2 + $0xc1] sm:$0xff] %vm171_vm1, %v356_v46  ;;  %v1665_v1 = vld [vmem:[#allocation2 + $0x30] sm:$0xff]  ;;  %v1667_v52 = vld [vmem:[#allocation2 + $0x21] sm:$0xff]  ;;  %v491_v12 = vmul.f32 %v1640_v49, %v1663_v0  ;;  %v443_v27 = vmul.f32 %v1637_v48, %v1661_v63  ;;  %v1726_v37 = vmul.f32 %v1673_v14, %v1680_v62  ;;  %v1751_v51 = vmul.f32 %v1658_v61, %v425_v30 }
 0x107   :  { %416 = vst.msk [vmem:[#allocation2 + $0xd1] sm:$0xff] %vm171_vm1, %v357_v47  ;;  %v1669_v2 = vld [vmem:[#allocation2 + $0x31] sm:$0xff]  ;;  %v1675_v5 = vld [vmem:[#allocation2 + $0x40] sm:$0xff]  ;;  %v444_v28 = vmul.f32 %v1637_v48, %v1665_v1  ;;  %v492_v29 = vmul.f32 %v1640_v49, %v1667_v52  ;;  %v1722_v13 = vadd.f32 %v539_v4, %v506_v3  ;;  %v1740_v46 = vadd.f32 %v547_v9, %v514_v7 }
 0x108   :  { %417 = vst.msk [vmem:[#allocation2 + $0xe1] sm:$0xff] %vm171_vm1, %v358_v25  ;;  %v1677_v6 = vld [vmem:[#allocation2 + $0x41] sm:$0xff]  ;;  %v1682_v8 = vld [vmem:[#allocation2 + $0x50] sm:$0xff]  ;;  %v493_v31 = vmul.f32 %v1640_v49, %v1669_v2  ;;  %v445_v38 = vmul.f32 %v1637_v48, %v1675_v5 }
 0x109   :  { %418 = vst.msk [vmem:[#allocation2 + $0xf1] sm:$0xff] %vm171_vm1, %v359_v36  ;;  %v1685_v11 = vld [vmem:[#allocation2 + $0x51] sm:$0xff]  ;;  %v1706_v32 = vld [vmem:[#allocation2 + $0x22] sm:$0xff]  ;;  %v494_v41 = vmul.f32 %v1640_v49, %v1677_v6  ;;  %v446_v44 = vmul.f32 %v1637_v48, %v1682_v8  ;;  %v507_v36 = vadd.f32 %v491_v12, %v442_v10  ;;  %v508_v55 = vadd.f32 %v492_v29, %v443_v27 }
 0x10a   :  { %419 = vst.msk [vmem:[#allocation2 + $0x101] sm:$0xff] %vm171_vm1, %v360_v53  ;;  %v1689_v15 = vld [vmem:[#allocation2 + $0x12] sm:$0xff]  ;;  %v1710_v34 = vld [vmem:[#allocation2 + $0x42] sm:$0xff]  ;;  %v495_v45 = vmul.f32 %v1640_v49, %v1685_v11  ;;  %v541_v50 = vmul.f32 %v1649_v22, %v1706_v32  ;;  %v1755_v53 = vmul.f32 %v1658_v61, %v1661_v63  ;;  %v509_v20 = vadd.f32 %v493_v31, %v444_v28 }
 0x10b   :  { %2360 = vst [vmem:[#allocation4_spill] sm:$0xff] %v1655_v60  ;;  %v1708_v33 = vld [vmem:[#allocation2 + $0x32] sm:$0xff]  ;;  %v1712_v35 = vld [vmem:[#allocation2 + $0x60] sm:$0xff]  ;;  %v540_v23 = vmul.f32 %v1649_v22, %v1689_v15  ;;  %v543_v57 = vmul.f32 %v1649_v22, %v1710_v34  ;;  %v510_v7 = vadd.f32 %v494_v41, %v445_v38 }
 0x10c   :  { %420 = vst.msk [vmem:[#allocation2 + $0x111] sm:$0xff] %vm171_vm1, %v361_v54  ;;  %v1716_v39 = vld [vmem:[#allocation2 + $0x61] sm:$0xff]  ;;  %v1720_v42 = vld [vmem:[#allocation2 + $0x52] sm:$0xff]  ;;  %v542_v24 = vmul.f32 %v1649_v22, %v1708_v33  ;;  %v447_v30 = vmul.f32 %v1637_v48, %v1712_v35  ;;  %v511_v31 = vadd.f32 %v495_v45, %v446_v44 }
 0x10d   :  { %2361 = vst [vmem:[#allocation5_spill] sm:$0xff] %v1661_v63  ;;  %v1728_v43 = vld [vmem:[#allocation2 + $0x70] sm:$0xff]  ;;  %v1736_v19 = vld [vmem:[#allocation2 + $0x62] sm:$0xff]  ;;  %v496_v4 = vmul.f32 %v1640_v49, %v1716_v39  ;;  %v544_v9 = vmul.f32 %v1649_v22, %v1720_v42 }
 0x10e   :  { %2362 = vst [vmem:[#allocation6_spill] sm:$0xff] %v1663_v0  ;;  %v1732_v17 = vld [vmem:[#allocation2 + $0x71] sm:$0xff]  ;;  %v1744_v47 = vld [vmem:[#allocation2 + $0xc0] sm:$0xff]  ;;  %v448_v12 = vmul.f32 %v1637_v48, %v1728_v43 }
 0x10f   :  { %2363 = vst [vmem:[#allocation7_spill] sm:$0xff] %v1667_v52  ;;  %v1742_v40 = vld [vmem:[#allocation2 + $0xb0] sm:$0xff]  ;;  %v1759_v18 = vld [vmem:[#allocation2 + $0xc1] sm:$0xff]  ;;  %v497_v29 = vmul.f32 %v1640_v49, %v1732_v17  ;;  %v451_v60 = vmul.f32 %v1637_v48, %v1744_v47  ;;  %v558_v52 = vadd.f32 %v542_v24, %v509_v20 }
 0x110   :  { %2364 = vst [vmem:[#allocation8_spill] sm:$0xff] %v1669_v2  ;;  %v1746_v25 = vld [vmem:[#allocation2 + $0xb1] sm:$0xff]  ;;  %v1767_v58 = vld [vmem:[#allocation2 + $0xe0] sm:$0xff]  ;;  %v450_v41 = vmul.f32 %v1637_v48, %v1742_v40  ;;  %v557_v2 = vadd.f32 %v541_v50, %v508_v55 }
 0x111   :  { %2365 = vst [vmem:[#allocation9_spill] sm:$0xff] %v1673_v14  ;;  %v1757_v56 = vld [vmem:[#allocation2 + $0xd0] sm:$0xff]  ;;  %v1773_v3 = vld [vmem:[#allocation2 + $0xe1] sm:$0xff]  ;;  %v499_v21 = vmul.f32 %v1640_v49, %v1746_v25 }
 0x112   :  { %2366 = vst [vmem:[#allocation10_spill] sm:$0xff] %v1677_v6  ;;  %v1761_v54 = vld [vmem:[#allocation2 + $0xd1] sm:$0xff]  ;;  %v1779_v10 = vld [vmem:[#allocation2 + $0x100] sm:$0xff]  ;;  %v452_v45 = vmul.f32 %v1637_v48, %v1757_v56 }
 0x113   :  { %2367 = vst [vmem:[#allocation11_spill] sm:$0xff] %v1680_v62  ;;  %v1769_v59 = vld [vmem:[#allocation2 + $0xf0] sm:$0xff]  ;;  %v1785_v28 = vld [vmem:[#allocation2 + $0x101] sm:$0xff]  ;;  %v545_v62 = vmul.f32 %v1649_v22, %v1736_v19  ;;  %v515_v14 = vadd.f32 %v499_v21, %v450_v41  ;;  %v591_v41 = vmul.f32 %v1658_v61, %v1675_v5 }
 0x114   :  { %2368 = vst [vmem:[#allocation12_spill] sm:$0xff] %v1685_v11  ;;  %v1783_v27 = vld [vmem:[#allocation2 + $0xf1] sm:$0xff]  ;;  %v513_v11 = vadd.f32 %v497_v29, %v448_v12 }
 0x115   :  { %2369 = vst [vmem:[#allocation13_spill] sm:$0xff] %v1689_v15  ;;  %v1791_v38 = vld [vmem:[#allocation2 + $0x110] sm:$0xff]  ;;  %v503_v15 = vmul.f32 %v1640_v49, %v1783_v27 }
 0x116   :  { %2370 = vst [vmem:[#allocation14_spill] sm:$0xff] %v1693_v16  ;;  %v1797_v63 = vld [vmem:[#allocation2 + $0x111] sm:$0xff] }
 0x117   :  { %2371 = vst [vmem:[#allocation15_spill] sm:$0xff] %v1696_v26  ;;  %v1803_v44 = vld [vmem:[#allocation2 + $0x72] sm:$0xff]  ;;  %v455_v26 = vmul.f32 %v1637_v48, %v1779_v10 }
 0x118   :  { %2372 = vst [vmem:[#allocation16_spill] sm:$0xff] %v1706_v32  ;;  %v454_v32 = vmul.f32 %v1637_v48, %v1769_v59  ;;  %v1831_v6 = vld [vmem:[#allocation2 + $0xd2] sm:$0xff] }
 0x119   :  { %2373 = vst [vmem:[#allocation17_spill] sm:$0xff] %v1708_v33  ;;  %v502_v33 = vmul.f32 %v1640_v49, %v1773_v3  ;;  %v1835_v16 = vld [vmem:[#allocation2 + $0xf2] sm:$0xff]  ;;  %v550_v21 = vmul.f32 %v1649_v22, %v1831_v6 }
 0x11a   :  { %2374 = vst [vmem:[#allocation18_spill] sm:$0xff] %v1710_v34  ;;  %v501_v34 = vmul.f32 %v1640_v49, %v1761_v54  ;;  %v519_v29 = vadd.f32 %v503_v15, %v454_v32  ;;  %v552_v50 = vmul.f32 %v1649_v22, %v1835_v16 }
 0x11b   :  { %2375 = vst [vmem:[#allocation19_spill] sm:$0xff] %v1716_v39  ;;  %v546_v39 = vmul.f32 %v1649_v22, %v1803_v44 }
 0x11c   :  { %2376 = vst [vmem:[#allocation20_spill] sm:$0xff] %v1720_v42  ;;  %v500_v42 = vmul.f32 %v1640_v49, %v1759_v18  ;;  %v568_v24 = vadd.f32 %v552_v50, %v519_v29 }
 0x11d   :  { %2377 = vst [vmem:[#allocation21_spill] sm:$0xff] %v1726_v37  ;;  %v504_v37 = vmul.f32 %v1640_v49, %v1785_v28 }
 0x11e   :  { %2378 = vst [vmem:[#allocation22_spill] sm:$0xff] %v1732_v17  ;;  %v512_v17 = vadd.f32 %v496_v4, %v447_v30  ;;  %v516_v0 = vadd.f32 %v500_v42, %v451_v60  ;;  %v517_v4 = vadd.f32 %v501_v34, %v452_v45  ;;  %v559_v42 = vadd.f32 %v543_v57, %v510_v7 }
 0x11f   :  { %2379 = vst [vmem:[#allocation23_spill] sm:$0xff] %v1736_v19  ;;  %v453_v19 = vmul.f32 %v1637_v48, %v1767_v58  ;;  %v590_v7 = vmul.f32 %v1658_v61, %v1665_v1  ;;  %v601_v45 = vmul.f32 %v1658_v61, %v1779_v10 }
 0x120   :  { %2380 = vst [vmem:[#allocation24_spill] sm:$0xff] %v1740_v46  ;;  %v1839_v46 = vld [vmem:[#allocation2 + $0x112] sm:$0xff]  ;;  %v561_v15 = vadd.f32 %v545_v62, %v512_v17  ;;  %v598_v17 = vmul.f32 %v1658_v61, %v1757_v56 }
 0x121   :  { %2381 = vst [vmem:[#allocation25_spill] sm:$0xff] %v1744_v47  ;;  %v518_v12 = vadd.f32 %v502_v33, %v453_v19  ;;  %v554_v34 = vmul.f32 %v1649_v22, %v1839_v46  ;;  %v560_v33 = vadd.f32 %v544_v9, %v511_v31  ;;  %v1855_v19 = vld [vmem:[#allocation2 + $0x80] sm:$0xff]  ;;  %v599_v9 = vmul.f32 %v1658_v61, %v1767_v58 }
 0x122   :  { %2382 = vst [vmem:[#allocation26_spill] sm:$0xff] %v1746_v25  ;;  %v1823_v25 = vld [vmem:[#allocation2 + $0xc2] sm:$0xff]  ;;  %v595_v62 = vmul.f32 %v1658_v61, %v1855_v19  ;;  %v600_v31 = vmul.f32 %v1658_v61, %v1769_v59 }
 0x123   :  { %2383 = vst [vmem:[#allocation27_spill] sm:$0xff] %v1757_v56  ;;  %v549_v30 = vmul.f32 %v1649_v22, %v1823_v25  ;;  %v1887_v56 = vld [vmem:[#allocation2 + $0x81] sm:$0xff] }
 0x124   :  { %2384 = vst [vmem:[#allocation28_spill] sm:$0xff] %v1759_v18  ;;  %v1821_v18 = vld [vmem:[#allocation2 + $0xb2] sm:$0xff] }
 0x125   :  { %2385 = vst [vmem:[#allocation29_spill] sm:$0xff] %v1761_v54  ;;  %v456_v54 = vmul.f32 %v1637_v48, %v1791_v38  ;;  %v1837_v48 = vld [vmem:[#allocation2 + $0x102] sm:$0xff] }
 0x126   :  { %2386 = vst [vmem:[#allocation30_spill] sm:$0xff] %v1767_v58  ;;  %v553_v55 = vmul.f32 %v1649_v22, %v1837_v48  ;;  %v617_v58 = vadd.f32 %v601_v45, %v568_v24  ;;  %v2408_v24 = vld [vmem:[#allocation22_spill] sm:$0xff] }
 0x127   :  { %2387 = vst [vmem:[#allocation31_spill] sm:$0xff] %v1769_v59 }
 0x128   :  { %2388 = vst [vmem:[#allocation32_spill] sm:$0xff] %v1773_v3  ;;  %v505_v3 = vmul.f32 %v1640_v49, %v1797_v63  ;;  %v548_v49 = vmul.f32 %v1649_v22, %v1821_v18 }
 0x129   :  { %2389 = vst [vmem:[#allocation33_spill] sm:$0xff] %v1779_v10 }
 0x12a   :  { %2390 = vst [vmem:[#allocation34_spill] sm:$0xff] %v1783_v27  ;;  %v1833_v27 = vld [vmem:[#allocation2 + $0xe2] sm:$0xff]  ;;  %v564_v32 = vadd.f32 %v548_v49, %v515_v14  ;;  %v593_v14 = vmul.f32 %v1658_v61, %v1712_v35  ;;  %v602_v49 = vmul.f32 %v1658_v61, %v1791_v38 }
 0x12b   :  { %2391 = vst [vmem:[#allocation35_spill] sm:$0xff] %v1785_v28  ;;  %v556_v28 = vadd.f32 %v540_v23, %v507_v36  ;;  %v520_v23 = vadd.f32 %v504_v37, %v455_v26  ;;  %v521_v36 = vadd.f32 %v505_v3, %v456_v54  ;;  %v551_v60 = vmul.f32 %v1649_v22, %v1833_v27 }
 0x12c   :  { %2392 = vst [vmem:[#allocation36_spill] sm:$0xff] %v1791_v38  ;;  %v562_v26 = vadd.f32 %v546_v39, %v513_v11  ;;  %v565_v37 = vadd.f32 %v549_v30, %v516_v0  ;;  %v566_v54 = vadd.f32 %v550_v21, %v517_v4  ;;  %v592_v22 = vmul.f32 %v1658_v61, %v1682_v8  ;;  %v2400_v38 = vld [vmem:[#allocation14_spill] sm:$0xff] }
 0x12d   :  { %2393 = vst [vmem:[#allocation37_spill] sm:$0xff] %v1833_v27  ;;  %v567_v20 = vadd.f32 %v551_v60, %v518_v12  ;;  %v569_v57 = vadd.f32 %v553_v55, %v520_v23  ;;  %v570_v3 = vadd.f32 %v554_v34, %v521_v36  ;;  %v594_v0 = vmul.f32 %v1658_v61, %v1728_v43  ;;  %v2398_v60 = vld [vmem:[#allocation24_spill] sm:$0xff] }
 0x12e   :  { %2394 = vst [vmem:[#allocation38_spill] sm:$0xff] %v1835_v16  ;;  %v596_v11 = vmul.f32 %v1658_v61, %v1742_v40  ;;  %v597_v39 = vmul.f32 %v1658_v61, %v1744_v47  ;;  %v604_v40 = vadd.f32 %v1751_v51, %v1722_v13  ;;  %v605_v30 = vadd.f32 %v1755_v53, %v556_v28  ;;  %v2401_v51 = vld [vmem:[#allocation6_spill] sm:$0xff]  ;;  %v2402_v53 = vld [vmem:[#allocation9_spill] sm:$0xff] }
 0x12f   :  { %2395 = vst [vmem:[#allocation39_spill] sm:$0xff] %v1837_v48  ;;  %v606_v4 = vadd.f32 %v590_v7, %v557_v2  ;;  %v607_v12 = vadd.f32 %v591_v41, %v558_v52  ;;  %v608_v29 = vadd.f32 %v592_v22, %v559_v42  ;;  %v609_v23 = vadd.f32 %v593_v14, %v560_v33  ;;  %v2403_v52 = vld [vmem:[#allocation7_spill] sm:$0xff]  ;;  %v2404_v42 = vld [vmem:[#allocation8_spill] sm:$0xff]  ;;  %v2411_v14 = vld [vmem:[#allocation29_spill] sm:$0xff] }
 0x130   :  { %2396 = vst [vmem:[#allocation40_spill] sm:$0xff] %v1839_v46  ;;  %v610_v36 = vadd.f32 %v594_v0, %v561_v15  ;;  %v611_v21 = vadd.f32 %v595_v62, %v562_v26  ;;  %v612_v50 = vadd.f32 %v596_v11, %v2398_v60  ;;  %v613_v55 = vadd.f32 %v597_v39, %v564_v32  ;;  %v2405_v15 = vld [vmem:[#allocation10_spill] sm:$0xff]  ;;  %v2406_v32 = vld [vmem:[#allocation12_spill] sm:$0xff] }
 0x131   :  { %2397 = vst [vmem:[#allocation41_spill] sm:$0xff] %v1855_v19  ;;  %v614_v34 = vadd.f32 %v598_v17, %v565_v37  ;;  %v615_v59 = vadd.f32 %v599_v9, %v566_v54  ;;  %v616_v10 = vadd.f32 %v600_v31, %v567_v20  ;;  %v618_v61 = vadd.f32 %v602_v49, %v569_v57  ;;  %v2407_v54 = vld [vmem:[#allocation19_spill] sm:$0xff]  ;;  %v2410_v41 = vld [vmem:[#allocation28_spill] sm:$0xff]  ;;  %v2413_v39 = vld [vmem:[#allocation34_spill] sm:$0xff] }
 0x132   :  { %2399 = vst [vmem:[#allocation24_spill] sm:$0xff] %v1887_v56  ;;  %v619_v13 = vadd.f32 %v2400_v38, %v570_v3  ;;  %v637_v2 = vmul.f32 %v2402_v53, %v2401_v51  ;;  %v638_v28 = vmul.f32 %v2402_v53, %v2403_v52  ;;  %v639_v33 = vmul.f32 %v2402_v53, %v2404_v42  ;;  %v2409_v3 = vld [vmem:[#allocation26_spill] sm:$0xff]  ;;  %v2412_v62 = vld [vmem:[#allocation32_spill] sm:$0xff]  ;;  %v2414_v9 = vld [vmem:[#allocation35_spill] sm:$0xff] }
 0x133   :  { %v640_v26 = vmul.f32 %v2402_v53, %v2405_v15  ;;  %v641_v37 = vmul.f32 %v2402_v53, %v2406_v32  ;;  %v642_v20 = vmul.f32 %v2402_v53, %v2407_v54  ;;  %v643_v38 = vmul.f32 %v2402_v53, %v2408_v24  ;;  %v1920_v42 = vld [vmem:[#allocation2 + $0x82] sm:$0xff] }
 0x134   :  { %v644_v57 = vmul.f32 %v2402_v53, %v1887_v56  ;;  %v645_v7 = vmul.f32 %v2402_v53, %v2409_v3  ;;  %v646_v22 = vmul.f32 %v2402_v53, %v2410_v41  ;;  %v647_v0 = vmul.f32 %v2402_v53, %v2411_v14 }
 0x135   :  { %v648_v11 = vmul.f32 %v2402_v53, %v2412_v62  ;;  %v649_v17 = vmul.f32 %v2402_v53, %v2413_v39  ;;  %v650_v31 = vmul.f32 %v2402_v53, %v2414_v9  ;;  %v651_v45 = vmul.f32 %v2402_v53, %v1797_v63  ;;  %v2415_v9 = vld [vmem:[#allocation21_spill] sm:$0xff] }
 0x136   :  { %v653_v49 = vadd.f32 %v637_v2, %v604_v40  ;;  %v654_v60 = vadd.f32 %v638_v28, %v605_v30  ;;  %v655_v51 = vadd.f32 %v639_v33, %v606_v4  ;;  %v656_v3 = vadd.f32 %v640_v26, %v607_v12  ;;  %v2416_v53 = vld [vmem:[#allocation13_spill] sm:$0xff]  ;;  %v2417_v40 = vld [vmem:[#allocation15_spill] sm:$0xff]  ;;  %v2418_v4 = vld [vmem:[#allocation16_spill] sm:$0xff] }
 0x137   :  { %v657_v41 = vadd.f32 %v641_v37, %v608_v29  ;;  %v658_v56 = vadd.f32 %v642_v20, %v609_v23  ;;  %v659_v24 = vadd.f32 %v643_v38, %v610_v36  ;;  %v660_v14 = vadd.f32 %v644_v57, %v611_v21  ;;  %v2419_v29 = vld [vmem:[#allocation17_spill] sm:$0xff]  ;;  %v1929_v36 = vld [vmem:[#allocation2 + $0x122] sm:$0xff]  ;;  %v2420_v21 = vld [vmem:[#allocation18_spill] sm:$0xff] }
 0x138   :  { %v661_v54 = vadd.f32 %v645_v7, %v612_v50  ;;  %v662_v32 = vadd.f32 %v646_v22, %v613_v55  ;;  %v663_v62 = vadd.f32 %v647_v0, %v614_v34  ;;  %v664_v15 = vadd.f32 %v648_v11, %v615_v59  ;;  %v2422_v50 = vld [vmem:[#allocation23_spill] sm:$0xff] }
 0x139   :  { %v665_v47 = vadd.f32 %v649_v17, %v616_v10  ;;  %v666_v39 = vadd.f32 %v650_v31, %v617_v58  ;;  %v667_v19 = vadd.f32 %v651_v45, %v618_v61  ;;  %v668_v52 = vadd.f32 %v2415_v9, %v619_v13  ;;  %v2421_v58 = vld [vmem:[#allocation20_spill] sm:$0xff]  ;;  %v2423_v7 = vld [vmem:[#allocation3_spill] sm:$0xff] }
 0x13a   :  { %v686_v30 = vmul.f32 %v2417_v40, %v2416_v53  ;;  %v687_v12 = vmul.f32 %v2417_v40, %v2418_v4  ;;  %v688_v23 = vmul.f32 %v2417_v40, %v2419_v29  ;;  %v689_v59 = vmul.f32 %v2417_v40, %v2420_v21  ;;  %v1961_v31 = vld [vmem:[%s2295_s4 + $0x8] ss:$0 sm:$0xff] }
 0x13b   :  { %v690_v10 = vmul.f32 %v2417_v40, %v2421_v58  ;;  %v691_v55 = vmul.f32 %v2417_v40, %v2422_v50  ;;  %v692_v34 = vmul.f32 %v2417_v40, %v1803_v44  ;;  %v693_v61 = vmul.f32 %v2417_v40, %v1920_v42 }
 0x13c   :  { %v694_v13 = vmul.f32 %v2417_v40, %v1821_v18  ;;  %v695_v2 = vmul.f32 %v2417_v40, %v1823_v25  ;;  %v696_v28 = vmul.f32 %v2417_v40, %v1831_v6  ;;  %v697_v33 = vmul.f32 %v2417_v40, %v1833_v27 }
 0x13d   :  { %v698_v26 = vmul.f32 %v2417_v40, %v1835_v16  ;;  %v699_v37 = vmul.f32 %v2417_v40, %v1837_v48  ;;  %v700_v20 = vmul.f32 %v2417_v40, %v1839_v46  ;;  %v701_v18 = vmul.f32 %v2417_v40, %v1929_v36 }
 0x13e   :  { %v702_v38 = vadd.f32 %v686_v30, %v653_v49  ;;  %v703_v57 = vadd.f32 %v687_v12, %v654_v60  ;;  %v735_v22 = vperm.slane %v2423_v7, 6  ;;  %v704_v0 = vadd.f32 %v688_v23, %v655_v51  ;;  %v2424_v30 = vld [vmem:[#allocation5_spill] sm:$0xff] }
 0x13f   :  { %v705_v11 = vadd.f32 %v689_v59, %v656_v3  ;;  %v706_v17 = vadd.f32 %v690_v10, %v657_v41  ;;  %v707_v9 = vadd.f32 %v691_v55, %v658_v56  ;;  %v708_v45 = vadd.f32 %v692_v34, %v659_v24  ;;  %v2429_v34 = vld [vmem:[#allocation27_spill] sm:$0xff] }
 0x140   :  { %v709_v53 = vadd.f32 %v693_v61, %v660_v14  ;;  %v710_v48 = vadd.f32 %v694_v13, %v661_v54  ;;  %v711_v46 = vadd.f32 %v695_v2, %v662_v32  ;;  %v712_v16 = vadd.f32 %v696_v28, %v663_v62  ;;  %v734_v61 = vld [vmem:[#allocation2 + $0x130] sm:$0xff] }
 0x141   :  { %v713_v27 = vadd.f32 %v697_v33, %v664_v15  ;;  %v714_v40 = vadd.f32 %v698_v26, %v665_v47  ;;  %v715_v49 = vadd.f32 %v699_v37, %v666_v39  ;;  %v716_v60 = vadd.f32 %v700_v20, %v667_v19  ;;  %v726_v47 = vld [vmem:[#allocation2 + $0x90] sm:$0xff]  ;;  %v2431_v33 = vld [vmem:[#allocation30_spill] sm:$0xff]  ;;  %v2432_v37 = vld [vmem:[#allocation31_spill] sm:$0xff] }
 0x142   :  { %v736_v12 = vmul.f32 %v735_v22, %v2424_v30  ;;  %v737_v51 = vmul.f32 %v735_v22, %v1665_v1  ;;  %v1966_v56 = vperm.slane %v2423_v7, 7  ;;  %v717_v41 = vadd.f32 %v701_v18, %v668_v52  ;;  %v2433_v18 = vld [vmem:[#allocation33_spill] sm:$0xff] }
 0x143   :  { %v834_v3 = vmul.f32 %v1961_v31, %v2418_v4  ;;  %v835_v54 = vmul.f32 %v1961_v31, %v2419_v29  ;;  %v836_v15 = vmul.f32 %v1961_v31, %v2420_v21  ;;  %v738_v19 = vmul.f32 %v735_v22, %v1675_v5  ;;  %v2425_v5 = vld [vmem:[#allocation7_spill] sm:$0xff]  ;;  %v2426_v21 = vld [vmem:[#allocation8_spill] sm:$0xff] }
 0x144   :  { %v752_v32 = vadd.f32 %v736_v12, %v702_v38  ;;  %v753_v24 = vadd.f32 %v737_v51, %v703_v57  ;;  %v837_v1 = vmul.f32 %v1961_v31, %v2421_v58  ;;  %v739_v14 = vmul.f32 %v735_v22, %v1682_v8  ;;  %v2427_v58 = vld [vmem:[#allocation41_spill] sm:$0xff]  ;;  %v2434_v57 = vld [vmem:[#allocation36_spill] sm:$0xff] }
 0x145   :  { %v740_v52 = vmul.f32 %v735_v22, %v1712_v35  ;;  %v838_v62 = vmul.f32 %v1961_v31, %v2422_v50  ;;  %v1983_v39 = vmul.f32 %v1961_v31, %v1803_v44  ;;  %v741_v4 = vmul.f32 %v735_v22, %v1728_v43  ;;  %v2428_v35 = vld [vmem:[#allocation25_spill] sm:$0xff]  ;;  %v2430_v44 = vld [vmem:[#allocation10_spill] sm:$0xff]  ;;  %v2436_v51 = vld [vmem:[#allocation12_spill] sm:$0xff] }
 0x146   :  { %v754_v29 = vadd.f32 %v738_v19, %v704_v0  ;;  %v785_v23 = vmul.f32 %v1966_v56, %v2425_v5  ;;  %v786_v59 = vmul.f32 %v1966_v56, %v2426_v21  ;;  %v742_v8 = vmul.f32 %v735_v22, %v2427_v58  ;;  %v2435_v0 = vld [vmem:[#allocation4_spill] sm:$0xff] }
 0x147   :  { %v743_v10 = vmul.f32 %v735_v22, %v726_v47  ;;  %v744_v55 = vmul.f32 %v735_v22, %v2428_v35  ;;  %v745_v50 = vmul.f32 %v735_v22, %v2429_v34  ;;  %v755_v13 = vadd.f32 %v739_v14, %v705_v11 }
 0x148   :  { %v787_v2 = vmul.f32 %v1966_v56, %v2430_v44  ;;  %v801_v43 = vadd.f32 %v785_v23, %v752_v32  ;;  %v802_v28 = vadd.f32 %v786_v59, %v753_v24  ;;  %v746_v26 = vmul.f32 %v735_v22, %v2431_v33  ;;  %v775_v24 = vld [vmem:[#allocation2 + $0x91] sm:$0xff]  ;;  %v2437_v23 = vld [vmem:[#allocation19_spill] sm:$0xff] }
 0x149   :  { %v747_v20 = vmul.f32 %v735_v22, %v2432_v37  ;;  %v748_v38 = vmul.f32 %v735_v22, %v2433_v18  ;;  %v749_v7 = vmul.f32 %v735_v22, %v2434_v57  ;;  %v750_v30 = vmul.f32 %v735_v22, %v2435_v0  ;;  %v2438_v37 = vld [vmem:[#allocation22_spill] sm:$0xff] }
 0x14a   :  { %v756_v12 = vadd.f32 %v740_v52, %v706_v17  ;;  %v788_v47 = vmul.f32 %v1966_v56, %v2436_v51  ;;  %v803_v11 = vadd.f32 %v787_v2, %v754_v29  ;;  %v751_v19 = vmul.f32 %v735_v22, %v734_v61  ;;  %v2439_v29 = vld [vmem:[#allocation24_spill] sm:$0xff] }
 0x14b   :  { %v757_v14 = vadd.f32 %v741_v4, %v707_v9  ;;  %v758_v5 = vadd.f32 %v742_v8, %v708_v45  ;;  %v759_v32 = vadd.f32 %v743_v10, %v709_v53  ;;  %v789_v21 = vmul.f32 %v1966_v56, %v2437_v23  ;;  %v824_v10 = vld [vmem:[#allocation2 + $0x92] sm:$0xff] }
 0x14c   :  { %v804_v59 = vadd.f32 %v788_v47, %v755_v13  ;;  %v2004_v58 = vadd.f32 %v834_v3, %v801_v43  ;;  %v2006_v35 = vadd.f32 %v835_v54, %v802_v28  ;;  %v760_v34 = vadd.f32 %v744_v55, %v710_v48  ;;  %v2443_v43 = vld [vmem:[#allocation34_spill] sm:$0xff]  ;;  %v2444_v28 = vld [vmem:[#allocation35_spill] sm:$0xff] }
 0x14d   :  { %v761_v44 = vadd.f32 %v745_v50, %v711_v46  ;;  %v762_v17 = vadd.f32 %v746_v26, %v712_v16  ;;  %v763_v52 = vadd.f32 %v747_v20, %v713_v27  ;;  %v764_v33 = vadd.f32 %v748_v38, %v714_v40  ;;  %v2440_v40 = vld [vmem:[#allocation28_spill] sm:$0xff]  ;;  %v783_v38 = vld [vmem:[#allocation2 + $0x131] sm:$0xff] }
 0x14e   :  { %v790_v22 = vmul.f32 %v1966_v56, %v2438_v37  ;;  %v805_v9 = vadd.f32 %v789_v21, %v756_v12  ;;  %v2010_v45 = vadd.f32 %v836_v15, %v803_v11  ;;  %v765_v53 = vadd.f32 %v749_v7, %v715_v49  ;;  %v2442_v50 = vld [vmem:[#allocation32_spill] sm:$0xff]  ;;  %v2445_v12 = vld [vmem:[#allocation11_spill] sm:$0xff] }
 0x14f   :  { %v2012_v4 = vadd.f32 %v750_v30, %v716_v60  ;;  %v791_v3 = vmul.f32 %v1966_v56, %v2439_v29  ;;  %v792_v54 = vmul.f32 %v1966_v56, %v775_v24  ;;  %v2017_v48 = vadd.f32 %v837_v1, %v804_v59  ;;  %v2441_v60 = vld [vmem:[#allocation29_spill] sm:$0xff] }
 0x150   :  { %v806_v8 = vadd.f32 %v790_v22, %v757_v14  ;;  %v868_v16 = vsel %vm171_vm1, %v2004_v58, 0.0  ;;  %v869_v46 = vsel %vm171_vm1, %v2006_v35, 0.0  ;;  %v2023_v27 = vadd.f32 %v751_v19, %v717_v41 }
 0x151   :  { %v793_v49 = vmul.f32 %v1966_v56, %v2440_v40  ;;  %v794_v15 = vmul.f32 %v1966_v56, %v2441_v60  ;;  %v870_v55 = vadd.f32 %v869_v46, %v868_v16  ;;  %v795_v1 = vmul.f32 %v1966_v56, %v2442_v50 }
 0x152   :  { %v807_v61 = vadd.f32 %v791_v3, %v758_v5  ;;  %v2031_v13 = vadd.f32 %v838_v62, %v805_v9  ;;  %v871_v2 = vsel %vm171_vm1, %v2010_v45, 0.0  ;;  %v796_v41 = vmul.f32 %v1966_v56, %v2443_v43 }
 0x153   :  { %v797_v26 = vmul.f32 %v1966_v56, %v2444_v28  ;;  %v808_v20 = vadd.f32 %v792_v54, %v759_v32  ;;  %v872_v18 = vadd.f32 %v871_v2, %v870_v55  ;;  %v840_v57 = vmul.f32 %v1961_v31, %v1920_v42  ;;  %v2446_v54 = vld [vmem:[#allocation37_spill] sm:$0xff] }
 0x154   :  { %v841_v7 = vmul.f32 %v1961_v31, %v824_v10  ;;  %v2043_v62 = vadd.f32 %v1983_v39, %v806_v8  ;;  %v873_v0 = vsel %vm171_vm1, %v2017_v48, 0.0  ;;  %v798_v30 = vmul.f32 %v1966_v56, %v1797_v63 }
 0x155   :  { %v799_v51 = vmul.f32 %v1966_v56, %v2445_v12  ;;  %v809_v47 = vadd.f32 %v793_v49, %v760_v34  ;;  %v874_v11 = vadd.f32 %v873_v0, %v872_v18  ;;  %v2051_v19 = vadd.f32 %v840_v57, %v807_v61 }
 0x156   :  { %v875_v42 = vsel %vm171_vm1, %v2031_v13, 0.0  ;;  %v906_v39 = vmul.f32 %v2004_v58, %v2004_v58  ;;  %v907_v14 = vmul.f32 %v2006_v35, %v2006_v35  ;;  %v800_v5 = vmul.f32 %v1966_v56, %v783_v38 }
 0x157   :  { %v810_v32 = vadd.f32 %v794_v15, %v761_v44  ;;  %v842_v63 = vmul.f32 %v1961_v31, %v1823_v25  ;;  %v876_v24 = vadd.f32 %v875_v42, %v874_v11  ;;  %v811_v23 = vadd.f32 %v795_v1, %v762_v17  ;;  %v2447_v15 = vld [vmem:[#allocation38_spill] sm:$0xff] }
 0x158   :  { %v2062_v21 = vadd.f32 %v841_v7, %v808_v20  ;;  %v877_v59 = vsel %vm171_vm1, %v2043_v62, 0.0  ;;  %v908_v34 = vmul.f32 %v2010_v45, %v2010_v45  ;;  %v812_v37 = vadd.f32 %v796_v41, %v763_v52  ;;  %v2448_v41 = vld [vmem:[#allocation39_spill] sm:$0xff]  ;;  %v832_v20 = vld [vmem:[#allocation2 + $0x132] sm:$0xff] }
 0x159   :  { %v843_v22 = vmul.f32 %v1961_v31, %v1831_v6  ;;  %v2070_v9 = vadd.f32 %v842_v63, %v809_v47  ;;  %v878_v56 = vadd.f32 %v877_v59, %v876_v24  ;;  %v879_v25 = vsel %vm171_vm1, %v2051_v19, 0.0 }
 0x15a   :  { %v909_v44 = vmul.f32 %v2017_v48, %v2017_v48  ;;  %v922_v17 = vsel %vm171_vm1, %v906_v39, 0.0  ;;  %v923_v29 = vsel %vm171_vm1, %v907_v14, 0.0  ;;  %v813_v3 = vadd.f32 %v797_v26, %v764_v33 }
 0x15b   :  { %v844_v52 = vmul.f32 %v1961_v31, %v2446_v54  ;;  %v880_v8 = vadd.f32 %v879_v25, %v878_v56  ;;  %v924_v16 = vadd.f32 %v923_v29, %v922_v17  ;;  %v2080_v6 = vadd.f32 %v843_v22, %v810_v32 }
 0x15c   :  { %v881_v46 = vsel %vm171_vm1, %v2062_v21, 0.0  ;;  %v910_v40 = vmul.f32 %v2031_v13, %v2031_v13  ;;  %v925_v49 = vsel %vm171_vm1, %v908_v34, 0.0  ;;  %v814_v60 = vadd.f32 %v798_v30, %v765_v53  ;;  %v2449_v30 = vld [vmem:[#allocation40_spill] sm:$0xff] }
 0x15d   :  { %v845_v10 = vmul.f32 %v1961_v31, %v2447_v15  ;;  %v882_v33 = vadd.f32 %v881_v46, %v880_v8  ;;  %v926_v55 = vadd.f32 %v925_v49, %v924_v16  ;;  %v2089_v50 = vadd.f32 %v844_v52, %v811_v23 }
 0x15e   :  { %v883_v1 = vsel %vm171_vm1, %v2070_v9, 0.0  ;;  %v911_v61 = vmul.f32 %v2043_v62, %v2043_v62  ;;  %v927_v2 = vsel %vm171_vm1, %v909_v44, 0.0  ;;  %v815_v43 = vadd.f32 %v799_v51, %v2012_v4 }
 0x15f   :  { %v846_v53 = vmul.f32 %v1961_v31, %v2448_v41  ;;  %v884_v28 = vadd.f32 %v883_v1, %v882_v33  ;;  %v928_v26 = vadd.f32 %v927_v2, %v926_v55  ;;  %v2099_v18 = vadd.f32 %v845_v10, %v812_v37 }
 0x160   :  { %v885_v38 = vsel %vm171_vm1, %v2080_v6, 0.0  ;;  %v912_v57 = vmul.f32 %v2051_v19, %v2051_v19  ;;  %v929_v7 = vsel %vm171_vm1, %v910_v40, 0.0  ;;  %v816_v0 = vadd.f32 %v800_v5, %v2023_v27 }
 0x161   :  { %v847_v4 = vmul.f32 %v1961_v31, %v2449_v30  ;;  %v886_v12 = vadd.f32 %v885_v38, %v884_v28  ;;  %v930_v51 = vadd.f32 %v929_v7, %v928_v26  ;;  %v2109_v47 = vadd.f32 %v846_v53, %v813_v3 }
 0x162   :  { %v887_v11 = vsel %vm171_vm1, %v2089_v50, 0.0  ;;  %v913_v42 = vmul.f32 %v2062_v21, %v2062_v21  ;;  %v931_v39 = vsel %vm171_vm1, %v911_v61, 0.0  ;;  %v848_v14 = vmul.f32 %v1961_v31, %v1929_v36 }
 0x163   :  { %v849_v27 = vmul.f32 %v1961_v31, %v832_v20  ;;  %v888_v5 = vadd.f32 %v887_v11, %v886_v12  ;;  %v932_v32 = vadd.f32 %v931_v39, %v930_v51  ;;  %v2119_v63 = vadd.f32 %v847_v4, %v814_v60 }
 0x164   :  { %v889_v24 = vsel %vm171_vm1, %v2099_v18, 0.0  ;;  %v914_v23 = vmul.f32 %v2070_v9, %v2070_v9  ;;  %v933_v59 = vsel %vm171_vm1, %v912_v57, 0.0  ;;  %v2126_v22 = vadd.f32 %v848_v14, %v815_v43 }
 0x165   :  { %v890_v34 = vadd.f32 %v889_v24, %v888_v5  ;;  %v934_v37 = vadd.f32 %v933_v59, %v932_v32  ;;  %v891_v36 = vsel %vm171_vm1, %v2109_v47, 0.0  ;;  %v915_v31 = vmul.f32 %v2080_v6, %v2080_v6 }
 0x166   :  { %v935_v56 = vsel %vm171_vm1, %v913_v42, 0.0  ;;  %v2133_v17 = vadd.f32 %v849_v27, %v816_v0  ;;  %v893_v29 = vsel %vm171_vm1, %v2119_v63, 0.0  ;;  %v916_v3 = vmul.f32 %v2089_v50, %v2089_v50 }
 0x167   :  { %v892_v25 = vadd.f32 %v891_v36, %v890_v34  ;;  %v936_v44 = vadd.f32 %v935_v56, %v934_v37  ;;  %v937_v54 = vsel %vm171_vm1, %v914_v23, 0.0  ;;  %v895_v16 = vsel %vm171_vm1, %v2126_v22, 0.0 }
 0x168   :  { %v917_v46 = vmul.f32 %v2099_v18, %v2099_v18  ;;  %v939_v40 = vsel %vm171_vm1, %v915_v31, 0.0  ;;  %v897_v15 = vsel %vm171_vm1, %v2133_v17, 0.0  ;;  %v918_v10 = vmul.f32 %v2109_v47, %v2109_v47 }
 0x169   :  { %v894_v52 = vadd.f32 %v893_v29, %v892_v25  ;;  %v938_v8 = vadd.f32 %v937_v54, %v936_v44  ;;  %v941_v33 = vsel %vm171_vm1, %v916_v3, 0.0  ;;  %v919_v61 = vmul.f32 %v2119_v63, %v2119_v63 }
 0x16a   :  { %v943_v2 = vsel %vm171_vm1, %v917_v46, 0.0  ;;  %v920_v53 = vmul.f32 %v2126_v22, %v2126_v22  ;;  %v945_v28 = vsel %vm171_vm1, %v918_v10, 0.0  ;;  %v921_v38 = vmul.f32 %v2133_v17, %v2133_v17 }
 0x16b   :  { %v896_v49 = vadd.f32 %v895_v16, %v894_v52  ;;  %v940_v60 = vadd.f32 %v939_v40, %v938_v8  ;;  %v947_v57 = vsel %vm171_vm1, %v919_v61, 0.0 }
 0x16c   :  { %v949_v30 = vsel %vm171_vm1, %v920_v53, 0.0  ;;  %v951_v51 = vsel %vm171_vm1, %v921_v38, 0.0 }
 0x16d   :  { %v898_v55 = vadd.f32 %v897_v15, %v896_v49  ;;  %v942_v1 = vadd.f32 %v941_v33, %v940_v60  ;;  %v866_v15 = vld [vmem:[%s2298_s5] sm:$0x1] }
 0x16f   :  { %v899_v43 = vrot.slane %v898_v55, 4  ;;  %v944_v41 = vadd.f32 %v943_v2, %v942_v1  ;;  %v2189_v2 = vld [vmem:[%s2296_s6] ss:$0 sm:$0xff] }
 0x171   :  { %v900_v26 = vadd.f32 %v899_v43, %v898_v55  ;;  %v946_v20 = vadd.f32 %v945_v28, %v944_v41 }
 0x173   :  { %v901_v7 = vrot.slane %v900_v26, 2  ;;  %v948_v0 = vadd.f32 %v947_v57, %v946_v20 }
 0x175   :  { %v902_v4 = vadd.f32 %v901_v7, %v900_v26  ;;  %v950_v12 = vadd.f32 %v949_v30, %v948_v0 }
 0x177   :  { %v903_v11 = vrot.slane %v902_v4, 1  ;;  %v952_v42 = vadd.f32 %v951_v51, %v950_v12 }
 0x179   :  { %v904_v39 = vadd.f32 %v903_v11, %v902_v4  ;;  %v953_v14 = vrot.slane %v952_v42, 4 }
 0x17b   :  { %v954_v27 = vadd.f32 %v953_v14, %v952_v42  ;;  %v2161_v5 = vmul.f32 0.0078125, %v904_v39 }
 0x17d   :  { %v955_v32 = vrot.slane %v954_v27, 2  ;;  %v969_v23 = vsub.f32 %v2051_v19, %v2161_v5  ;;  %v968_v59 = vsub.f32 %v2043_v62, %v2161_v5  ;;  %v967_v34 = vsub.f32 %v2031_v13, %v2161_v5 }
 0x17e   :  { %v966_v37 = vsub.f32 %v2017_v48, %v2161_v5  ;;  %v965_v31 = vsub.f32 %v2010_v45, %v2161_v5  ;;  %v964_v56 = vsub.f32 %v2006_v35, %v2161_v5  ;;  %v963_v25 = vsub.f32 %v2004_v58, %v2161_v5  ;;  %v1059_v58 = vld [vmem:[%s2299_s7] sm:$0xff] }
 0x17f   :  { %v956_v24 = vadd.f32 %v955_v32, %v954_v27  ;;  %v960_v29 = vmul.f32 %v2161_v5, %v2161_v5  ;;  %v978_v1 = vsub.f32 %v2133_v17, %v2161_v5  ;;  %v977_v43 = vsub.f32 %v2126_v22, %v2161_v5 }
 0x180   :  { %v976_v28 = vsub.f32 %v2119_v63, %v2161_v5  ;;  %v975_v57 = vsub.f32 %v2109_v47, %v2161_v5  ;;  %v974_v63 = vsub.f32 %v2099_v18, %v2161_v5  ;;  %v973_v47 = vsub.f32 %v2089_v50, %v2161_v5 }
 0x181   :  { %v957_v36 = vrot.slane %v956_v24, 1  ;;  %v972_v18 = vsub.f32 %v2080_v6, %v2161_v5  ;;  %v971_v50 = vsub.f32 %v2070_v9, %v2161_v5  ;;  %v970_v6 = vsub.f32 %v2062_v21, %v2161_v5 }
 0x183   :  { %v958_v44 = vadd.f32 %v957_v36, %v956_v24 }
 0x185   :  { %v959_v3 = vmul.f32 0.0078125, %v958_v44 }
 0x187   :  { %v961_v54 = vsub.f32 %v959_v3, %v960_v29 }
 0x189   :  { %v962_v52 = vmax.f32 %v961_v54, 0.0 }
 0x18b   :  { %v979_v8 = vadd.f32 1e-05, %v962_v52 }
 0x18d   :  { %1219 = vrsqrt.f32 %v979_v8  ;;  %vm986_vm7 = vweird.f32 %v979_v8 }
 0x193   :  { %v1220_v16 = vpop.eup %1219 }
 0x194   :  { %v981_v46 = vmul.f32 %v1220_v16, %v979_v8  ;;  %vm987_vm6 = vweird.f32 %v1220_v16 }
 0x195   :  { %vm988_vm8 = vmor %vm986_vm7, %vm987_vm6 }
 0x196   :  { %v982_v40 = vmul.f32 %v1220_v16, %v981_v46 }
 0x198   :  { %v983_v49 = vmul.f32 0.5, %v982_v40 }
 0x19a   :  { %v984_v60 = vsub.f32 1.5, %v983_v49 }
 0x19c   :  { %v985_v10 = vmul.f32 %v1220_v16, %v984_v60 }
 0x19e   :  { %v989_v33 = vsel %vm988_vm8, %v1220_v16, %v985_v10 }
 0x19f   :  { %v990_v55 = vmul.f32 %v989_v33, %v866_v15 }
 0x1a1   :  { %v2184_v61 = vperm.slane %v990_v55, 0 }
 0x1a3   :  { %v1007_v41 = vmul.f32 %v2184_v61, %v978_v1  ;;  %v1006_v53 = vmul.f32 %v2184_v61, %v977_v43  ;;  %v1005_v20 = vmul.f32 %v2184_v61, %v976_v28  ;;  %v1004_v30 = vmul.f32 %v2184_v61, %v975_v57 }
 0x1a4   :  { %v1003_v11 = vmul.f32 %v2184_v61, %v974_v63  ;;  %v1002_v27 = vmul.f32 %v2184_v61, %v973_v47  ;;  %v1001_v44 = vmul.f32 %v2184_v61, %v972_v18  ;;  %v1000_v52 = vmul.f32 %v2184_v61, %v971_v50 }
 0x1a5   :  { %v1026_v26 = vadd.f32 %v2189_v2, %v1007_v41  ;;  %v1025_v17 = vadd.f32 %v2189_v2, %v1006_v53  ;;  %v1024_v22 = vadd.f32 %v2189_v2, %v1005_v20  ;;  %v1023_v51 = vadd.f32 %v2189_v2, %v1004_v30 }
 0x1a6   :  { %v1022_v14 = vadd.f32 %v2189_v2, %v1003_v11  ;;  %v1021_v36 = vadd.f32 %v2189_v2, %v1002_v27  ;;  %v1020_v54 = vadd.f32 %v2189_v2, %v1001_v44  ;;  %v1019_v46 = vadd.f32 %v2189_v2, %v1000_v52 }
 0x1a7   :  { %v1042_v38 = vmax.f32 %v1026_v26, 0.0  ;;  %v1041_v0 = vmax.f32 %v1025_v17, 0.0  ;;  %v1040_v12 = vmax.f32 %v1024_v22, 0.0  ;;  %v1039_v39 = vmax.f32 %v1023_v51, 0.0 }
 0x1a8   :  { %v1038_v24 = vmax.f32 %v1022_v14, 0.0  ;;  %v1037_v3 = vmax.f32 %v1021_v36, 0.0  ;;  %v1036_v16 = vmax.f32 %v1020_v54, 0.0  ;;  %v999_v40 = vmul.f32 %v2184_v61, %v970_v6  ;;  %v1168_v6 = vld [vmem:[%s2302_s10] sm:$0xff] }
 0x1a9   :  { %v1058_v7 = vmin.f32 %v1042_v38, 6.0  ;;  %v1057_v4 = vmin.f32 %v1041_v0, 6.0  ;;  %v1056_v42 = vmin.f32 %v1040_v12, 6.0  ;;  %v1055_v32 = vmin.f32 %v1039_v39, 6.0 }
 0x1aa   :  { %v1054_v29 = vmin.f32 %v1038_v24, 6.0  ;;  %v1053_v8 = vmin.f32 %v1037_v3, 6.0  ;;  %v1052_v9 = vmin.f32 %v1036_v16, 6.0  ;;  %v1035_v49 = vmax.f32 %v1019_v46, 0.0  ;;  %v1131_v24 = vld [vmem:[%s2300_s8] sm:$0xff] }
 0x1ab   :  { %1191 = vmatpush.xpose.msk.msra.mxu1 %vm171_vm1, %v1058_v7  ;;  %v1018_v60 = vadd.f32 %v2189_v2, %v999_v40  ;;  %v998_v15 = vmul.f32 %v2184_v61, %v969_v23  ;;  %v997_v55 = vmul.f32 %v2184_v61, %v968_v59  ;;  %v996_v19 = vmul.f32 %v2184_v61, %v967_v34 }
 0x1ac   :  { %v1051_v21 = vmin.f32 %v1035_v49, 6.0  ;;  %v995_v62 = vmul.f32 %v2184_v61, %v966_v37  ;;  %v994_v13 = vmul.f32 %v2184_v61, %v965_v31  ;;  %v993_v48 = vmul.f32 %v2184_v61, %v964_v56 }
 0x1ad   :  { %v1034_v10 = vmax.f32 %v1018_v60, 0.0  ;;  %v1017_v33 = vadd.f32 %v2189_v2, %v998_v15  ;;  %v1016_v41 = vadd.f32 %v2189_v2, %v997_v55  ;;  %v1015_v28 = vadd.f32 %v2189_v2, %v996_v19 }
 0x1ae   :  { %v1014_v17 = vadd.f32 %v2189_v2, %v995_v62  ;;  %v1013_v38 = vadd.f32 %v2189_v2, %v994_v13  ;;  %v1012_v7 = vadd.f32 %v2189_v2, %v993_v48  ;;  %v992_v45 = vmul.f32 %v2184_v61, %v963_v25 }
 0x1af   :  { %1192 = vmatpush.xpose.msk.msra.mxu1 %vm171_vm1, %v1057_v4  ;;  %v1050_v1 = vmin.f32 %v1034_v10, 6.0  ;;  %v1033_v43 = vmax.f32 %v1017_v33, 0.0  ;;  %v1032_v53 = vmax.f32 %v1016_v41, 0.0  ;;  %v1031_v26 = vmax.f32 %v1015_v28, 0.0 }
 0x1b0   :  { %v1030_v20 = vmax.f32 %v1014_v17, 0.0  ;;  %v1029_v57 = vmax.f32 %v1013_v38, 0.0  ;;  %v1028_v0 = vmax.f32 %v1012_v7, 0.0  ;;  %v1011_v22 = vadd.f32 %v2189_v2, %v992_v45 }
 0x1b1   :  { %v1049_v23 = vmin.f32 %v1033_v43, 6.0  ;;  %v1048_v59 = vmin.f32 %v1032_v53, 6.0  ;;  %v1047_v34 = vmin.f32 %v1031_v26, 6.0  ;;  %v1224_v61 = vmov 0  }
 0x1b2   :  { %v1046_v37 = vmin.f32 %v1030_v20, 6.0  ;;  %v1045_v31 = vmin.f32 %v1029_v57, 6.0  ;;  %v1044_v35 = vmin.f32 %v1028_v0, 6.0  ;;  %v1027_v56 = vmax.f32 %v1011_v22, 0.0  ;;  %1212 = vset.pattern.permute.xlu1 %v1224_v61  ;;  %1213 = vset.pattern.permute.xlu0 %v1224_v61 }
 0x1b3   :  { %1193 = vmatpush.xpose.msk.msra.mxu1 %vm171_vm1, %v1056_v42 }
 0x1b4   :  { %v1043_v30 = vmin.f32 %v1027_v56, 6.0 }
 0x1b7   :  { %1194 = vmatpush.xpose.msk.msra.mxu1 %vm171_vm1, %v1055_v32 }
 0x1bb   :  { %1195 = vmatpush.xpose.msk.msra.mxu1 %vm171_vm1, %v1054_v29  ;;  %v1132_v29 = vld [vmem:[%s2301_s9] sm:$0xff] }
 0x1bf   :  { %1196 = vmatpush.xpose.msk.msra.mxu1 %vm171_vm1, %v1053_v8 }
 0x1c3   :  { %1197 = vmatpush.xpose.msk.msra.mxu1 %vm171_vm1, %v1052_v9 }
 0x1c7   :  { %1198 = vmatpush.xpose.msk.msra.mxu1 %vm171_vm1, %v1051_v21 }
 0x1cb   :  { %1199 = vmatpush.xpose.msk.msra.mxu1 %vm171_vm1, %v1050_v1 }
 0x1cf   :  { %1200 = vmatpush.xpose.msk.msra.mxu1 %vm171_vm1, %v1049_v23 }
 0x1d3   :  { %1201 = vmatpush.xpose.msk.msra.mxu1 %vm171_vm1, %v1048_v59 }
 0x1d7   :  { %1202 = vmatpush.xpose.msk.msra.mxu1 %vm171_vm1, %v1047_v34 }
 0x1db   :  { %1203 = vmatpush.xpose.msk.msra.mxu1 %vm171_vm1, %v1046_v37 }
 0x1df   :  { %1204 = vmatpush.xpose.msk.msra.mxu1 %vm171_vm1, %v1045_v31 }
 0x1e3   :  { %1205 = vmatpush.xpose.msk.msra.mxu1 %vm171_vm1, %v1044_v35 }
 0x1e7   :  { %1206 = vmatpush.xpose.msk.msra.mxu1 %vm171_vm1, %v1043_v30 }
 0x1ea   :  { %1207 = vmatmul.msk.f32.vlgmr.msra.gmra.mxu1 %vm171_vm1, %v1059_v58 }
 0x267   :  { %v1128_v5 = vpop.f32.mrf.mxu1 }
 0x268   :  { %1133 = vadd.xlane.f32.xlu0 %v1128_v5  ;;  %v1136_v25 = vmul.f32 %v1128_v5, %v1128_v5 }
 0x270   :  { %1137 = vadd.xlane.f32.xlu0 %v1136_v25 }
 0x2db   :  { %v1134_v2 = vpop.xlane.xlu0 %1133 }
 0x2dc   :  { %v1135_v63 = vmul.f32 0.0078125, %v1134_v2 }
 0x2de   :  { %v1140_v12 = vmul.f32 %v1135_v63, %v1135_v63  ;;  %v1143_v54 = vsub.f32 %v1128_v5, %v1135_v63 }
 0x2e3   :  { %v1138_v4 = vpop.xlane.xlu0 %1137 }
 0x2e4   :  { %v1139_v51 = vmul.f32 0.0078125, %v1138_v4 }
 0x2e6   :  { %v1141_v11 = vsub.f32 %v1139_v51, %v1140_v12 }
 0x2e8   :  { %v1142_v47 = vmax.f32 %v1141_v11, 0.0 }
 0x2ea   :  { %v1144_v42 = vadd.f32 1e-05, %v1142_v47 }
 0x2ec   :  { %1221 = vrsqrt.f32 %v1144_v42  ;;  %vm1151_vm10 = vweird.f32 %v1144_v42 }
 0x2f2   :  { %v1222_v39 = vpop.eup %1221 }
 0x2f3   :  { %v1146_v14 = vmul.f32 %v1222_v39, %v1144_v42  ;;  %vm1152_vm9 = vweird.f32 %v1222_v39 }
 0x2f4   :  { %vm1153_vm11 = vmor %vm1151_vm10, %vm1152_vm9 }
 0x2f5   :  { %v1147_v27 = vmul.f32 %v1222_v39, %v1146_v14 }
 0x2f7   :  { %v1148_v18 = vmul.f32 0.5, %v1147_v27 }
 0x2f9   :  { %v1149_v32 = vsub.f32 1.5, %v1148_v18 }
 0x2fb   :  { %v1150_v36 = vmul.f32 %v1222_v39, %v1149_v32 }
 0x2fd   :  { %v1154_v44 = vsel %vm1153_vm11, %v1222_v39, %v1150_v36 }
 0x2fe   :  { %v1155_v50 = vmul.f32 %v1154_v44, %v1131_v24 }
 0x300   :  { %1158 = vperm.xlu1 %1212, %v1155_v50  }
 0x308   :  { %1164 = vperm.xlu1 %1212, %v1132_v29  }
 0x372   :  { %v1159_v3 = vpop.permute.xlu1 %1158 }
 0x373   :  { %v1161_v52 = vmul.f32 %v1159_v3, %v1143_v54 }
 0x37a   :  { %v1165_v8 = vpop.permute.xlu1 %1164 }
 0x37b   :  { %v1167_v16 = vadd.f32 %v1165_v8, %v1161_v52 }
 0x37d   :  { %v1169_v46 = vadd.f32 %v1168_v6, %v1167_v16 }
 0x37f   :  { %1170 = vst [vmem:[%s2303_s11] sm:$0xff] %v1169_v46 }

// kernel: block_forward.2
= control target key start
LH: loop header
LB: loop body
LE: loop exit
PB: predicated region body
PF: predicated region fallthrough
CT: control target
= control target key end

     0   :  { %vm293_vm0 = vcmask 1043456   ;;  %vm100_vm1 = vcmask 31744   ;;  %vm508_vm2 = vcmask 64512   ;;  %v2246_v32 = vmov 0.0   ;;  %s4406_s1 = inlined_call_operand.vmem [shape: f32[4,8], index: 1, kind: input, shape index: {}]   ;;  %s4407_s0 = inlined_call_operand.vmem [shape: f32[512,4], index: 0, kind: input, shape index: {}]   ;;  %s4408_s3 = inlined_call_operand.vmem [shape: f32[1,8], index: 3, kind: input, shape index: {}]   ;;  %s4409_s4 = inlined_call_operand.vmem [shape: f32[9,8], index: 4, kind: input, shape index: {}]   ;;  %s4410_s6 = inlined_call_operand.vmem [shape: f32[1,8], index: 6, kind: input, shape index: {}]   ;;  %s4411_s2 = inlined_call_operand.vmem [shape: f32[1,8], index: 2, kind: input, shape index: {}]   ;;  %s4412_s5 = inlined_call_operand.vmem [shape: f32[1,8], index: 5, kind: input, shape index: {}]   ;;  %s4413_s7 = inlined_call_operand.vmem [shape: f32[8,8], index: 7, kind: input, shape index: {}]   ;;  %s4414_s8 = inlined_call_operand.vmem [shape: f32[8,1], index: 8, kind: input, shape index: {}]   ;;  %s4415_s9 = inlined_call_operand.vmem [shape: f32[8,1], index: 9, kind: input, shape index: {}]   ;;  %s4416_s10 = inlined_call_operand.vmem [shape: f32[8,128], index: 10, kind: output, shape index: {}]  }
   0x1   :  { %v99_v0 = vld [vmem:[%s4406_s1] sm:$0xf]  ;;  %v36_v2 = vld [vmem:[%s4407_s0 + $0x8] sm:$0xff]  ;;  %v37_v3 = vld [vmem:[%s4407_s0 + $0x10] sm:$0xff]  ;;  %1235 = vst.msk [vmem:[#allocation2 + $0x1b0] sm:$0xff] %vm508_vm2, %v2246_v32  ;;  %vm1181_vm3 = vcmask 57344  }
   0x2   :  { %v35_v1 = vld [vmem:[%s4407_s0] sm:$0xff]  ;;  %2148 = vmatpush.msk.msra.mxu0 %vm293_vm0, %v99_v0  ;;  %2231 = vmatpush.msk.msra.mxu2 %vm293_vm0, %v99_v0  ;;  %v38_v5 = vld [vmem:[%s4407_s0 + $0x18] sm:$0xff]  ;;  %v64_v6 = vld [vmem:[%s4407_s0 + $0xe8] sm:$0xff]  ;;  %1180 = vst.msk [vmem:[#allocation2] sm:$0xff] %vm508_vm2, %v2246_v32 }
   0x3   :  { %2149 = vmatmul.msk.f32.vlgmr.msra.gmra.mxu0 %vm100_vm1, %v35_v1  ;;  %2230 = vmatpush.msk.msra.mxu1 %vm293_vm0, %v99_v0  ;;  %v63_v4 = vld [vmem:[%s4407_s0 + $0xe0] sm:$0xff]  ;;  %v65_v8 = vld [vmem:[%s4407_s0 + $0xf0] sm:$0xff]  ;;  %v40_v9 = vld [vmem:[%s4407_s0 + $0x28] sm:$0xff]  ;;  %1183 = vst.msk [vmem:[#allocation2 + $0x10] sm:$0xff] %vm508_vm2, %v2246_v32 }
   0x4   :  { %2232 = vmatpush.msk.msra.mxu3 %vm293_vm0, %v99_v0  ;;  %2177 = vmatmul.msk.f32.vlgmr.msra.gmra.mxu2 %vm100_vm1, %v63_v4  ;;  %v39_v7 = vld [vmem:[%s4407_s0 + $0x20] sm:$0xff]  ;;  %v66_v10 = vld [vmem:[%s4407_s0 + $0xf8] sm:$0xff]  ;;  %v41_v11 = vld [vmem:[%s4407_s0 + $0x30] sm:$0xff]  ;;  %1185 = vst.msk [vmem:[#allocation2 + $0x20] sm:$0xff] %vm508_vm2, %v2246_v32 }
   0x5   :  { %v67_v12 = vld [vmem:[%s4407_s0 + $0x100] sm:$0xff]  ;;  %v42_v13 = vld [vmem:[%s4407_s0 + $0x38] sm:$0xff]  ;;  %v68_v14 = vld [vmem:[%s4407_s0 + $0x108] sm:$0xff]  ;;  %1187 = vst.msk [vmem:[#allocation2 + $0x30] sm:$0xff] %vm508_vm2, %v2246_v32 }
   0x6   :  { %v43_v15 = vld [vmem:[%s4407_s0 + $0x40] sm:$0xff]  ;;  %v54_v16 = vld [vmem:[%s4407_s0 + $0x98] sm:$0xff]  ;;  %v69_v17 = vld [vmem:[%s4407_s0 + $0x110] sm:$0xff]  ;;  %1189 = vst.msk [vmem:[#allocation2 + $0x40] sm:$0xff] %vm508_vm2, %v2246_v32 }
   0x7   :  { %v82_v18 = vld [vmem:[%s4407_s0 + $0x178] sm:$0xff]  ;;  %2168 = vmatmul.msk.f32.vlgmr.msra.gmra.mxu1 %vm100_vm1, %v54_v16  ;;  %v44_v19 = vld [vmem:[%s4407_s0 + $0x48] sm:$0xff]  ;;  %v55_v20 = vld [vmem:[%s4407_s0 + $0xa0] sm:$0xff]  ;;  %1191 = vst.msk [vmem:[#allocation2 + $0x50] sm:$0xff] %vm508_vm2, %v2246_v32 }
   0x8   :  { %2196 = vmatmul.msk.f32.vlgmr.msra.gmra.mxu3 %vm100_vm1, %v82_v18  ;;  %v70_v21 = vld [vmem:[%s4407_s0 + $0x118] sm:$0xff]  ;;  %v83_v22 = vld [vmem:[%s4407_s0 + $0x180] sm:$0xff]  ;;  %v45_v23 = vld [vmem:[%s4407_s0 + $0x50] sm:$0xff]  ;;  %1193 = vst.msk [vmem:[#allocation2 + $0x60] sm:$0xff] %vm508_vm2, %v2246_v32 }
   0x9   :  { %v56_v24 = vld [vmem:[%s4407_s0 + $0xa8] sm:$0xff]  ;;  %v71_v25 = vld [vmem:[%s4407_s0 + $0x120] sm:$0xff]  ;;  %v46_v27 = vld [vmem:[%s4407_s0 + $0x58] sm:$0xff]  ;;  %1195 = vst.msk [vmem:[#allocation2 + $0x70] sm:$0xff] %vm508_vm2, %v2246_v32 }
   0xa   :  { %v84_v26 = vld [vmem:[%s4407_s0 + $0x188] sm:$0xff]  ;;  %v57_v28 = vld [vmem:[%s4407_s0 + $0xb0] sm:$0xff]  ;;  %v47_v31 = vld [vmem:[%s4407_s0 + $0x60] sm:$0xff]  ;;  %1197 = vst.msk [vmem:[#allocation2 + $0x80] sm:$0xff] %vm508_vm2, %v2246_v32 }
   0xb   :  { %2150 = vmatmul.msk.f32.gmra.mxu0 %vm100_vm1, %v36_v2  ;;  %v72_v29 = vld [vmem:[%s4407_s0 + $0x128] sm:$0xff]  ;;  %v85_v30 = vld [vmem:[%s4407_s0 + $0x190] sm:$0xff]  ;;  %v58_v33 = vld [vmem:[%s4407_s0 + $0xb8] sm:$0xff]  ;;  %1199 = vst.msk [vmem:[#allocation2 + $0x90] sm:$0xff] %vm508_vm2, %v2246_v32 }
   0xc   :  { %2178 = vmatmul.msk.f32.gmra.mxu2 %vm100_vm1, %v64_v6  ;;  %v73_v34 = vld [vmem:[%s4407_s0 + $0x130] sm:$0xff]  ;;  %v86_v35 = vld [vmem:[%s4407_s0 + $0x198] sm:$0xff]  ;;  %v48_v36 = vld [vmem:[%s4407_s0 + $0x68] sm:$0xff]  ;;  %1201 = vst.msk [vmem:[#allocation2 + $0xa0] sm:$0xff] %vm508_vm2, %v2246_v32 }
   0xd   :  { %v59_v37 = vld [vmem:[%s4407_s0 + $0xc0] sm:$0xff]  ;;  %v74_v38 = vld [vmem:[%s4407_s0 + $0x138] sm:$0xff]  ;;  %v49_v40 = vld [vmem:[%s4407_s0 + $0x70] sm:$0xff]  ;;  %1203 = vst.msk [vmem:[#allocation2 + $0xb0] sm:$0xff] %vm508_vm2, %v2246_v32 }
   0xe   :  { %v87_v39 = vld [vmem:[%s4407_s0 + $0x1a0] sm:$0xff]  ;;  %1205 = vst.msk [vmem:[#allocation2 + $0xc0] sm:$0xff] %vm508_vm2, %v2246_v32  ;;  %v60_v41 = vld [vmem:[%s4407_s0 + $0xc8] sm:$0xff]  ;;  %v50_v44 = vld [vmem:[%s4407_s0 + $0x78] sm:$0xff] }
   0xf   :  { %2169 = vmatmul.msk.f32.gmra.mxu1 %vm100_vm1, %v55_v20  ;;  %1207 = vst.msk [vmem:[#allocation2 + $0xd0] sm:$0xff] %vm508_vm2, %v2246_v32  ;;  %v75_v42 = vld [vmem:[%s4407_s0 + $0x140] sm:$0xff]  ;;  %v88_v43 = vld [vmem:[%s4407_s0 + $0x1a8] sm:$0xff]  ;;  %v61_v45 = vld [vmem:[%s4407_s0 + $0xd0] sm:$0xff] }
  0x10   :  { %2197 = vmatmul.msk.f32.gmra.mxu3 %vm100_vm1, %v83_v22  ;;  %1209 = vst.msk [vmem:[#allocation2 + $0xe0] sm:$0xff] %vm508_vm2, %v2246_v32  ;;  %v76_v46 = vld [vmem:[%s4407_s0 + $0x148] sm:$0xff]  ;;  %v89_v47 = vld [vmem:[%s4407_s0 + $0x1b0] sm:$0xff]  ;;  %v51_v49 = vld [vmem:[%s4407_s0 + $0x80] sm:$0xff] }
  0x11   :  { %1211 = vst.msk [vmem:[#allocation2 + $0xf0] sm:$0xff] %vm508_vm2, %v2246_v32  ;;  %v62_v50 = vld [vmem:[%s4407_s0 + $0xd8] sm:$0xff]  ;;  %v77_v51 = vld [vmem:[%s4407_s0 + $0x150] sm:$0xff]  ;;  %v52_v54 = vld [vmem:[%s4407_s0 + $0x88] sm:$0xff] }
  0x12   :  { %1213 = vst.msk [vmem:[#allocation2 + $0x100] sm:$0xff] %vm508_vm2, %v2246_v32  ;;  %v90_v52 = vld [vmem:[%s4407_s0 + $0x1b8] sm:$0xff]  ;;  %v91_v56 = vld [vmem:[%s4407_s0 + $0x1c0] sm:$0xff]  ;;  %v53_v58 = vld [vmem:[%s4407_s0 + $0x90] sm:$0xff] }
  0x13   :  { %2151 = vmatmul.msk.f32.gmra.mxu0 %vm100_vm1, %v37_v3  ;;  %1215 = vst.msk [vmem:[#allocation2 + $0x110] sm:$0xff] %vm508_vm2, %v2246_v32  ;;  %v78_v55 = vld [vmem:[%s4407_s0 + $0x158] sm:$0xff]  ;;  %v79_v59 = vld [vmem:[%s4407_s0 + $0x160] sm:$0xff]  ;;  %v92_v60 = vld [vmem:[%s4407_s0 + $0x1c8] sm:$0xff] }
  0x14   :  { %2179 = vmatmul.msk.f32.gmra.mxu2 %vm100_vm1, %v65_v8  ;;  %1217 = vst.msk [vmem:[#allocation2 + $0x120] sm:$0xff] %vm508_vm2, %v2246_v32  ;;  %v80_v63 = vld [vmem:[%s4407_s0 + $0x168] sm:$0xff]  ;;  %v93_v0 = vld [vmem:[%s4407_s0 + $0x1d0] sm:$0xff]  ;;  %v94_v4 = vld [vmem:[%s4407_s0 + $0x1d8] sm:$0xff] }
  0x15   :  { %1219 = vst.msk [vmem:[#allocation2 + $0x130] sm:$0xff] %vm508_vm2, %v2246_v32  ;;  %v81_v3 = vld [vmem:[%s4407_s0 + $0x170] sm:$0xff] }
  0x16   :  { %1221 = vst.msk [vmem:[#allocation2 + $0x140] sm:$0xff] %vm508_vm2, %v2246_v32 }
  0x17   :  { %2170 = vmatmul.msk.f32.gmra.mxu1 %vm100_vm1, %v56_v24  ;;  %1223 = vst.msk [vmem:[#allocation2 + $0x150] sm:$0xff] %vm508_vm2, %v2246_v32 }
  0x18   :  { %2198 = vmatmul.msk.f32.gmra.mxu3 %vm100_vm1, %v84_v26  ;;  %1225 = vst.msk [vmem:[#allocation2 + $0x160] sm:$0xff] %vm508_vm2, %v2246_v32 }
  0x19   :  { %1227 = vst.msk [vmem:[#allocation2 + $0x170] sm:$0xff] %vm508_vm2, %v2246_v32 }
  0x1a   :  { %1229 = vst.msk [vmem:[#allocation2 + $0x180] sm:$0xff] %vm508_vm2, %v2246_v32 }
  0x1b   :  { %2152 = vmatmul.msk.f32.gmra.mxu0 %vm100_vm1, %v38_v5  ;;  %1231 = vst.msk [vmem:[#allocation2 + $0x190] sm:$0xff] %vm508_vm2, %v2246_v32 }
  0x1c   :  { %2180 = vmatmul.msk.f32.gmra.mxu2 %vm100_vm1, %v66_v10  ;;  %1237 = vst.msk [vmem:[#allocation2 + $0x1c0] sm:$0xff] %vm508_vm2, %v2246_v32 }
  0x1d   :  { %1239 = vst.msk [vmem:[#allocation2 + $0x1d0] sm:$0xff] %vm508_vm2, %v2246_v32 }
  0x1e   :  { %1241 = vst.msk [vmem:[#allocation2 + $0x1e0] sm:$0xff] %vm508_vm2, %v2246_v32 }
  0x1f   :  { %2171 = vmatmul.msk.f32.gmra.mxu1 %vm100_vm1, %v57_v28  ;;  %1243 = vst.msk [vmem:[#allocation2 + $0x1f0] sm:$0xff] %vm508_vm2, %v2246_v32 }
  0x20   :  { %2199 = vmatmul.msk.f32.gmra.mxu3 %vm100_vm1, %v85_v30  ;;  %1245 = vst.msk [vmem:[#allocation2 + $0x200] sm:$0xff] %vm508_vm2, %v2246_v32 }
  0x21   :  { %1247 = vst.msk [vmem:[#allocation2 + $0x210] sm:$0xff] %vm508_vm2, %v2246_v32 }
  0x22   :  { %1249 = vst.msk [vmem:[#allocation2 + $0x220] sm:$0xff] %vm508_vm2, %v2246_v32 }
  0x23   :  { %2153 = vmatmul.msk.f32.gmra.mxu0 %vm100_vm1, %v39_v7  ;;  %1253 = vst.msk [vmem:[#allocation2 + $0x240] sm:$0xff] %vm508_vm2, %v2246_v32  ;;  %v95_v7 = vld [vmem:[%s4407_s0 + $0x1e0] sm:$0xff] }
  0x24   :  { %2181 = vmatmul.msk.f32.gmra.mxu2 %vm100_vm1, %v67_v12  ;;  %1255 = vst.msk [vmem:[#allocation2 + $0x250] sm:$0xff] %vm508_vm2, %v2246_v32 }
  0x25   :  { %1257 = vst.msk [vmem:[#allocation2 + $0x260] sm:$0xff] %vm508_vm2, %v2246_v32 }
  0x26   :  { %1259 = vst.msk [vmem:[#allocation2 + $0x270] sm:$0xff] %vm508_vm2, %v2246_v32 }
  0x27   :  { %2172 = vmatmul.msk.f32.gmra.mxu1 %vm100_vm1, %v58_v33  ;;  %1261 = vst.msk [vmem:[#allocation2 + $0x280] sm:$0xff] %vm508_vm2, %v2246_v32 }
  0x28   :  { %2200 = vmatmul.msk.f32.gmra.mxu3 %vm100_vm1, %v86_v35  ;;  %1263 = vst.msk [vmem:[#allocation2 + $0x290] sm:$0xff] %vm508_vm2, %v2246_v32 }
  0x29   :  { %1265 = vst.msk [vmem:[#allocation2 + $0x2a0] sm:$0xff] %vm508_vm2, %v2246_v32 }
  0x2a   :  { %1267 = vst.msk [vmem:[#allocation2 + $0x2b0] sm:$0xff] %vm508_vm2, %v2246_v32 }
  0x2b   :  { %2154 = vmatmul.msk.f32.gmra.mxu0 %vm100_vm1, %v40_v9  ;;  %1269 = vst.msk [vmem:[#allocation2 + $0x2c0] sm:$0xff] %vm508_vm2, %v2246_v32 }
  0x2c   :  { %2182 = vmatmul.msk.f32.gmra.mxu2 %vm100_vm1, %v68_v14  ;;  %1271 = vst.msk [vmem:[#allocation2 + $0x2d0] sm:$0xff] %vm508_vm2, %v2246_v32  ;;  %v97_v14 = vld [vmem:[%s4407_s0 + $0x1f0] sm:$0xff] }
  0x2d   :  { %1273 = vst.msk [vmem:[#allocation2 + $0x2e0] sm:$0xff] %vm508_vm2, %v2246_v32 }
  0x2e   :  { %1275 = vst.msk [vmem:[#allocation2 + $0x2f0] sm:$0xff] %vm508_vm2, %v2246_v32 }
  0x2f   :  { %2173 = vmatmul.msk.f32.gmra.mxu1 %vm100_vm1, %v59_v37  ;;  %1277 = vst.msk [vmem:[#allocation2 + $0x300] sm:$0xff] %vm508_vm2, %v2246_v32 }
  0x30   :  { %2201 = vmatmul.msk.f32.gmra.mxu3 %vm100_vm1, %v87_v39  ;;  %1279 = vst.msk [vmem:[#allocation2 + $0x310] sm:$0xff] %vm508_vm2, %v2246_v32 }
  0x31   :  { %1281 = vst.msk [vmem:[#allocation2 + $0x320] sm:$0xff] %vm508_vm2, %v2246_v32 }
  0x32   :  { %1283 = vst.msk [vmem:[#allocation2 + $0x330] sm:$0xff] %vm508_vm2, %v2246_v32 }
  0x33   :  { %2155 = vmatmul.msk.f32.gmra.mxu0 %vm100_vm1, %v41_v11  ;;  %1285 = vst.msk [vmem:[#allocation2 + $0x340] sm:$0xff] %vm508_vm2, %v2246_v32  ;;  %v96_v11 = vld [vmem:[%s4407_s0 + $0x1e8] sm:$0xff] }
  0x34   :  { %2183 = vmatmul.msk.f32.gmra.mxu2 %vm100_vm1, %v69_v17  ;;  %1287 = vst.msk [vmem:[#allocation2 + $0x350] sm:$0xff] %vm508_vm2, %v2246_v32  ;;  %v98_v17 = vld [vmem:[%s4407_s0 + $0x1f8] sm:$0xff] }
  0x35   :  { %1289 = vst.msk [vmem:[#allocation2 + $0x360] sm:$0xff] %vm508_vm2, %v2246_v32 }
  0x36   :  { %1291 = vst.msk [vmem:[#allocation2 + $0x370] sm:$0xff] %vm508_vm2, %v2246_v32 }
  0x37   :  { %2174 = vmatmul.msk.f32.gmra.mxu1 %vm100_vm1, %v60_v41  ;;  %1293 = vst.msk [vmem:[#allocation2 + $0x380] sm:$0xff] %vm508_vm2, %v2246_v32 }
  0x38   :  { %2202 = vmatmul.msk.f32.gmra.mxu3 %vm100_vm1, %v88_v43  ;;  %1295 = vst.msk [vmem:[#allocation2 + $0x390] sm:$0xff] %vm508_vm2, %v2246_v32 }
  0x39   :  { %1297 = vst.msk [vmem:[#allocation2 + $0x3a0] sm:$0xff] %vm508_vm2, %v2246_v32 }
  0x3a   :  { %1299 = vst.msk [vmem:[#allocation2 + $0x3b0] sm:$0xff] %vm508_vm2, %v2246_v32 }
  0x3b   :  { %2156 = vmatmul.msk.f32.gmra.mxu0 %vm100_vm1, %v42_v13  ;;  %1301 = vst.msk [vmem:[#allocation2 + $0x3c0] sm:$0xff] %vm508_vm2, %v2246_v32 }
  0x3c   :  { %2184 = vmatmul.msk.f32.gmra.mxu2 %vm100_vm1, %v70_v21  ;;  %1303 = vst.msk [vmem:[#allocation2 + $0x3d0] sm:$0xff] %vm508_vm2, %v2246_v32 }
  0x3d   :  { %1307 = vst.msk [vmem:[#allocation2 + $0x3f0] sm:$0xff] %vm508_vm2, %v2246_v32 }
  0x3e   :  { %1309 = vst.msk [vmem:[#allocation2 + $0x400] sm:$0xff] %vm508_vm2, %v2246_v32 }
  0x3f   :  { %2175 = vmatmul.msk.f32.gmra.mxu1 %vm100_vm1, %v61_v45  ;;  %1311 = vst.msk [vmem:[#allocation2 + $0x410] sm:$0xff] %vm508_vm2, %v2246_v32 }
  0x40   :  { %2203 = vmatmul.msk.f32.gmra.mxu3 %vm100_vm1, %v89_v47  ;;  %1313 = vst.msk [vmem:[#allocation2 + $0x420] sm:$0xff] %vm508_vm2, %v2246_v32 }
  0x41   :  { %1315 = vst.msk [vmem:[#allocation2 + $0x430] sm:$0xff] %vm508_vm2, %v2246_v32 }
  0x42   :  { %1317 = vst.msk [vmem:[#allocation2 + $0x440] sm:$0xff] %vm508_vm2, %v2246_v32 }
  0x43   :  { %2157 = vmatmul.msk.f32.gmra.mxu0 %vm100_vm1, %v43_v15  ;;  %1319 = vst.msk [vmem:[#allocation2 + $0x450] sm:$0xff] %vm508_vm2, %v2246_v32 }
  0x44   :  { %2185 = vmatmul.msk.f32.gmra.mxu2 %vm100_vm1, %v71_v25  ;;  %1321 = vst.msk [vmem:[#allocation2 + $0x460] sm:$0xff] %vm508_vm2, %v2246_v32 }
  0x45   :  { %1192 = vst.msk [vmem:[#allocation2 + $0x58] sm:$0x1] %vm1181_vm3, %v2246_v32 }
  0x46   :  { %1182 = vst.msk [vmem:[#allocation2 + $0x8] sm:$0x1] %vm1181_vm3, %v2246_v32 }
  0x47   :  { %2176 = vmatmul.msk.f32.gmra.mxu1 %vm100_vm1, %v62_v50  ;;  %1184 = vst.msk [vmem:[#allocation2 + $0x18] sm:$0x1] %vm1181_vm3, %v2246_v32 }
  0x48   :  { %2204 = vmatmul.msk.f32.gmra.mxu3 %vm100_vm1, %v90_v52  ;;  %1186 = vst.msk [vmem:[#allocation2 + $0x28] sm:$0x1] %vm1181_vm3, %v2246_v32 }
  0x49   :  { %1188 = vst.msk [vmem:[#allocation2 + $0x38] sm:$0x1] %vm1181_vm3, %v2246_v32 }
  0x4a   :  { %1190 = vst.msk [vmem:[#allocation2 + $0x48] sm:$0x1] %vm1181_vm3, %v2246_v32 }
  0x4b   :  { %2158 = vmatmul.msk.f32.gmra.mxu0 %vm100_vm1, %v44_v19  ;;  %1194 = vst.msk [vmem:[#allocation2 + $0x68] sm:$0x1] %vm1181_vm3, %v2246_v32 }
  0x4c   :  { %2186 = vmatmul.msk.f32.gmra.mxu2 %vm100_vm1, %v72_v29  ;;  %1196 = vst.msk [vmem:[#allocation2 + $0x78] sm:$0x1] %vm1181_vm3, %v2246_v32 }
  0x4d   :  { %1198 = vst.msk [vmem:[#allocation2 + $0x88] sm:$0x1] %vm1181_vm3, %v2246_v32 }
  0x4e   :  { %1218 = vst.msk [vmem:[#allocation2 + $0x128] sm:$0x1] %vm1181_vm3, %v2246_v32 }
  0x4f   :  { %1220 = vst.msk [vmem:[#allocation2 + $0x138] sm:$0x1] %vm1181_vm3, %v2246_v32 }
  0x50   :  { %2205 = vmatmul.msk.f32.gmra.mxu3 %vm100_vm1, %v91_v56  ;;  %1222 = vst.msk [vmem:[#allocation2 + $0x148] sm:$0x1] %vm1181_vm3, %v2246_v32 }
  0x51   :  { %1224 = vst.msk [vmem:[#allocation2 + $0x158] sm:$0x1] %vm1181_vm3, %v2246_v32 }
  0x52   :  { %1226 = vst.msk [vmem:[#allocation2 + $0x168] sm:$0x1] %vm1181_vm3, %v2246_v32 }
  0x53   :  { %2159 = vmatmul.msk.f32.gmra.mxu0 %vm100_vm1, %v45_v23  ;;  %1228 = vst.msk [vmem:[#allocation2 + $0x178] sm:$0x1] %vm1181_vm3, %v2246_v32 }
  0x54   :  { %2187 = vmatmul.msk.f32.gmra.mxu2 %vm100_vm1, %v73_v34  ;;  %1230 = vst.msk [vmem:[#allocation2 + $0x188] sm:$0x1] %vm1181_vm3, %v2246_v32 }
  0x55   :  { %1232 = vst.msk [vmem:[#allocation2 + $0x198] sm:$0x1] %vm1181_vm3, %v2246_v32 }
  0x56   :  { %1254 = vst.msk [vmem:[#allocation2 + $0x248] sm:$0x1] %vm1181_vm3, %v2246_v32 }
  0x57   :  { %1256 = vst.msk [vmem:[#allocation2 + $0x258] sm:$0x1] %vm1181_vm3, %v2246_v32 }
  0x58   :  { %2206 = vmatmul.msk.f32.gmra.mxu3 %vm100_vm1, %v92_v60  ;;  %1258 = vst.msk [vmem:[#allocation2 + $0x268] sm:$0x1] %vm1181_vm3, %v2246_v32 }
  0x59   :  { %1260 = vst.msk [vmem:[#allocation2 + $0x278] sm:$0x1] %vm1181_vm3, %v2246_v32 }
  0x5a   :  { %1262 = vst.msk [vmem:[#allocation2 + $0x288] sm:$0x1] %vm1181_vm3, %v2246_v32 }
  0x5b   :  { %2160 = vmatmul.msk.f32.gmra.mxu0 %vm100_vm1, %v46_v27  ;;  %1264 = vst.msk [vmem:[#allocation2 + $0x298] sm:$0x1] %vm1181_vm3, %v2246_v32 }
  0x5c   :  { %2188 = vmatmul.msk.f32.gmra.mxu2 %vm100_vm1, %v74_v38  ;;  %1266 = vst.msk [vmem:[#allocation2 + $0x2a8] sm:$0x1] %vm1181_vm3, %v2246_v32 }
  0x5d   :  { %1268 = vst.msk [vmem:[#allocation2 + $0x2b8] sm:$0x1] %vm1181_vm3, %v2246_v32 }
  0x5e   :  { %1270 = vst.msk [vmem:[#allocation2 + $0x2c8] sm:$0x1] %vm1181_vm3, %v2246_v32 }
  0x5f   :  { %1290 = vst.msk [vmem:[#allocation2 + $0x368] sm:$0x1] %vm1181_vm3, %v2246_v32 }
  0x60   :  { %2207 = vmatmul.msk.f32.gmra.mxu3 %vm100_vm1, %v93_v0  ;;  %1292 = vst.msk [vmem:[#allocation2 + $0x378] sm:$0x1] %vm1181_vm3, %v2246_v32 }
  0x61   :  { %1294 = vst.msk [vmem:[#allocation2 + $0x388] sm:$0x1] %vm1181_vm3, %v2246_v32 }
  0x62   :  { %1296 = vst.msk [vmem:[#allocation2 + $0x398] sm:$0x1] %vm1181_vm3, %v2246_v32 }
  0x63   :  { %2161 = vmatmul.msk.f32.gmra.mxu0 %vm100_vm1, %v47_v31  ;;  %1298 = vst.msk [vmem:[#allocation2 + $0x3a8] sm:$0x1] %vm1181_vm3, %v2246_v32 }
  0x64   :  { %2189 = vmatmul.msk.f32.gmra.mxu2 %vm100_vm1, %v75_v42  ;;  %1300 = vst.msk [vmem:[#allocation2 + $0x3b8] sm:$0x1] %vm1181_vm3, %v2246_v32 }
  0x65   :  { %1302 = vst.msk [vmem:[#allocation2 + $0x3c8] sm:$0x1] %vm1181_vm3, %v2246_v32 }
  0x66   :  { %1304 = vst.msk [vmem:[#allocation2 + $0x3d8] sm:$0x1] %vm1181_vm3, %v2246_v32 }
  0x68   :  { %2208 = vmatmul.msk.f32.gmra.mxu3 %vm100_vm1, %v94_v4 }
  0x6b   :  { %2162 = vmatmul.msk.f32.gmra.mxu0 %vm100_vm1, %v48_v36 }
  0x6c   :  { %2190 = vmatmul.msk.f32.gmra.mxu2 %vm100_vm1, %v76_v46 }
  0x70   :  { %2209 = vmatmul.msk.f32.gmra.mxu3 %vm100_vm1, %v95_v7 }
  0x73   :  { %2163 = vmatmul.msk.f32.gmra.mxu0 %vm100_vm1, %v49_v40 }
  0x74   :  { %2191 = vmatmul.msk.f32.gmra.mxu2 %vm100_vm1, %v77_v51 }
  0x78   :  { %2210 = vmatmul.msk.f32.gmra.mxu3 %vm100_vm1, %v96_v11 }
  0x7b   :  { %2164 = vmatmul.msk.f32.gmra.mxu0 %vm100_vm1, %v50_v44 }
  0x7c   :  { %2192 = vmatmul.msk.f32.gmra.mxu2 %vm100_vm1, %v78_v55 }
  0x80   :  { %v2544_v48 = vpop.f32.mrf.mxu0  ;;  %2211 = vmatmul.msk.f32.gmra.mxu3 %vm100_vm1, %v97_v14 }
  0x81   :  { %4481 = vst [vmem:[#allocation3_spill] sm:$0xff] %v2544_v48  ;;  %v643_v37 = vmul.f32 %v2544_v48, %v2544_v48  ;;  %v509_v40 = vsel %vm508_vm2, %v2544_v48, 0.0 }
  0x83   :  { %2165 = vmatmul.msk.f32.gmra.mxu0 %vm100_vm1, %v51_v49  ;;  %v707_v45 = vsel %vm508_vm2, %v643_v37, 0.0 }
  0x84   :  { %2193 = vmatmul.msk.f32.gmra.mxu2 %vm100_vm1, %v79_v59  ;;  %v2766_v19 = vpop.f32.mrf.mxu1 }
  0x85   :  { %4491 = vst [vmem:[#allocation13_spill] sm:$0xff] %v2766_v19 }
  0x87   :  { %v2640_v62 = vpop.f32.mrf.mxu2 }
  0x88   :  { %v2578_v53 = vpop.f32.mrf.mxu0  ;;  %2212 = vmatmul.msk.f32.gmra.mxu3 %vm100_vm1, %v98_v17 }
  0x89   :  { %4482 = vst [vmem:[#allocation4_spill] sm:$0xff] %v2578_v53  ;;  %v644_v35 = vmul.f32 %v2578_v53, %v2578_v53  ;;  %v510_v38 = vsel %vm508_vm2, %v2578_v53, 0.0 }
  0x8a   :  { %v511_v43 = vadd.f32 %v510_v38, %v509_v40 }
  0x8b   :  { %2166 = vmatmul.msk.f32.gmra.mxu0 %vm100_vm1, %v52_v54  ;;  %v2768_v20 = vpop.f32.mrf.mxu3  ;;  %v708_v32 = vsel %vm508_vm2, %v644_v35, 0.0 }
  0x8c   :  { %2194 = vmatmul.msk.f32.gmra.mxu2 %vm100_vm1, %v80_v63  ;;  %v2790_v24 = vpop.f32.mrf.mxu1  ;;  %v709_v50 = vadd.f32 %v708_v32, %v707_v45 }
  0x8d   :  { %4493 = vst [vmem:[#allocation15_spill] sm:$0xff] %v2790_v24 }
  0x8f   :  { %v2668_v2 = vpop.f32.mrf.mxu2 }
  0x90   :  { %v2608_v57 = vpop.f32.mrf.mxu0 }
  0x91   :  { %4483 = vst [vmem:[#allocation5_spill] sm:$0xff] %v2608_v57  ;;  %v645_v39 = vmul.f32 %v2608_v57, %v2608_v57  ;;  %v512_v41 = vsel %vm508_vm2, %v2608_v57, 0.0 }
  0x92   :  { %v513_v51 = vadd.f32 %v512_v41, %v511_v43 }
  0x93   :  { %2167 = vmatmul.msk.f32.gmra.mxu0 %vm100_vm1, %v53_v58  ;;  %v2784_v23 = vpop.f32.mrf.mxu3  ;;  %v710_v46 = vsel %vm508_vm2, %v645_v39, 0.0 }
  0x94   :  { %2195 = vmatmul.msk.f32.gmra.mxu2 %vm100_vm1, %v81_v3  ;;  %v2804_v29 = vpop.f32.mrf.mxu1  ;;  %v711_v58 = vadd.f32 %v710_v46, %v709_v50 }
  0x97   :  { %v2694_v6 = vpop.f32.mrf.mxu2 }
  0x98   :  { %v2638_v61 = vpop.f32.mrf.mxu0 }
  0x99   :  { %4484 = vst [vmem:[#allocation6_spill] sm:$0xff] %v2638_v61  ;;  %v646_v42 = vmul.f32 %v2638_v61, %v2638_v61  ;;  %v514_v47 = vsel %vm508_vm2, %v2638_v61, 0.0 }
  0x9a   :  { %v515_v59 = vadd.f32 %v514_v47, %v513_v51 }
  0x9b   :  { %v2798_v26 = vpop.f32.mrf.mxu3  ;;  %v712_v54 = vsel %vm508_vm2, %v646_v42, 0.0 }
  0x9c   :  { %v2828_v34 = vpop.f32.mrf.mxu1  ;;  %v713_v4 = vadd.f32 %v712_v54, %v711_v58 }
  0x9f   :  { %v2720_v9 = vpop.f32.mrf.mxu2 }
  0xa0   :  { %v2666_v1 = vpop.f32.mrf.mxu0 }
  0xa1   :  { %4485 = vst [vmem:[#allocation7_spill] sm:$0xff] %v2666_v1  ;;  %v647_v49 = vmul.f32 %v2666_v1, %v2666_v1  ;;  %v516_v55 = vsel %vm508_vm2, %v2666_v1, 0.0 }
  0xa2   :  { %v517_v7 = vadd.f32 %v516_v55, %v515_v59 }
  0xa3   :  { %v2812_v30 = vpop.f32.mrf.mxu3  ;;  %v714_v63 = vsel %vm508_vm2, %v647_v49, 0.0 }
  0xa4   :  { %v2862_v60 = vpop.f32.mrf.mxu1  ;;  %v715_v37 = vadd.f32 %v714_v63, %v713_v4 }
  0xa7   :  { %v2732_v12 = vpop.f32.mrf.mxu2 }
  0xa8   :  { %v2692_v5 = vpop.f32.mrf.mxu0 }
  0xa9   :  { %4486 = vst [vmem:[#allocation8_spill] sm:$0xff] %v2692_v5  ;;  %v648_v56 = vmul.f32 %v2692_v5, %v2692_v5  ;;  %v518_v0 = vsel %vm508_vm2, %v2692_v5, 0.0 }
  0xaa   :  { %v519_v38 = vadd.f32 %v518_v0, %v517_v7 }
  0xab   :  { %v2832_v36 = vpop.f32.mrf.mxu3  ;;  %v716_v14 = vsel %vm508_vm2, %v648_v56, 0.0 }
  0xac   :  { %v717_v42 = vadd.f32 %v716_v14, %v715_v37  ;;  %v2895_v63 = vpop.f32.mrf.mxu1 }
  0xaf   :  { %v2750_v15 = vpop.f32.mrf.mxu2 }
  0xb0   :  { %v2712_v8 = vpop.f32.mrf.mxu0 }
  0xb1   :  { %4487 = vst [vmem:[#allocation9_spill] sm:$0xff] %v2712_v8  ;;  %v649_v3 = vmul.f32 %v2712_v8, %v2712_v8  ;;  %v520_v17 = vsel %vm508_vm2, %v2712_v8, 0.0 }
  0xb2   :  { %v521_v43 = vadd.f32 %v520_v17, %v519_v38 }
  0xb3   :  { %v2869_v11 = vpop.f32.mrf.mxu3  ;;  %v718_v40 = vsel %vm508_vm2, %v649_v3, 0.0 }
  0xb4   :  { %v719_v49 = vadd.f32 %v718_v40, %v717_v42 }
  0xb7   :  { %v2764_v18 = vpop.f32.mrf.mxu2 }
  0xb8   :  { %v2726_v10 = vpop.f32.mrf.mxu0 }
  0xb9   :  { %4488 = vst [vmem:[#allocation10_spill] sm:$0xff] %v2726_v10  ;;  %v650_v35 = vmul.f32 %v2726_v10, %v2726_v10  ;;  %v522_v32 = vsel %vm508_vm2, %v2726_v10, 0.0 }
  0xba   :  { %v523_v50 = vadd.f32 %v522_v32, %v521_v43 }
  0xbb   :  { %v720_v45 = vsel %vm508_vm2, %v650_v35, 0.0  ;;  %v2904_v35 = vpop.f32.mrf.mxu3 }
  0xbc   :  { %v721_v58 = vadd.f32 %v720_v45, %v719_v49 }
  0xbf   :  { %v2782_v22 = vpop.f32.mrf.mxu2 }
  0xc0   :  { %v2740_v13 = vpop.f32.mrf.mxu0 }
  0xc1   :  { %4489 = vst [vmem:[#allocation11_spill] sm:$0xff] %v2740_v13  ;;  %v651_v41 = vmul.f32 %v2740_v13, %v2740_v13  ;;  %v524_v46 = vsel %vm508_vm2, %v2740_v13, 0.0 }
  0xc2   :  { %v525_v59 = vadd.f32 %v524_v46, %v523_v50 }
  0xc3   :  { %v722_v54 = vsel %vm508_vm2, %v651_v41, 0.0 }
  0xc4   :  { %v723_v7 = vadd.f32 %v722_v54, %v721_v58 }
  0xc7   :  { %v2800_v27 = vpop.f32.mrf.mxu2 }
  0xc8   :  { %v2758_v16 = vpop.f32.mrf.mxu0 }
  0xc9   :  { %4490 = vst [vmem:[#allocation12_spill] sm:$0xff] %v2758_v16  ;;  %v652_v47 = vmul.f32 %v2758_v16, %v2758_v16  ;;  %v526_v55 = vsel %vm508_vm2, %v2758_v16, 0.0 }
  0xca   :  { %v527_v14 = vadd.f32 %v526_v55, %v525_v59 }
  0xcb   :  { %v724_v0 = vsel %vm508_vm2, %v652_v47, 0.0 }
  0xcc   :  { %v725_v32 = vadd.f32 %v724_v0, %v723_v7 }
  0xcf   :  { %v2824_v33 = vpop.f32.mrf.mxu2 }
  0xd0   :  { %v2772_v21 = vpop.f32.mrf.mxu0 }
  0xd1   :  { %4492 = vst [vmem:[#allocation14_spill] sm:$0xff] %v2772_v21  ;;  %v653_v56 = vmul.f32 %v2772_v21, %v2772_v21  ;;  %v528_v3 = vsel %vm508_vm2, %v2772_v21, 0.0 }
  0xd2   :  { %v529_v41 = vadd.f32 %v528_v3, %v527_v14 }
  0xd3   :  { %v726_v37 = vsel %vm508_vm2, %v653_v56, 0.0 }
  0xd4   :  { %v727_v46 = vadd.f32 %v726_v37, %v725_v32  ;;  %v2930_v37 = vpop.f32.mrf.mxu1 }
  0xd7   :  { %v2855_v52 = vpop.f32.mrf.mxu2 }
  0xd8   :  { %v2796_v25 = vpop.f32.mrf.mxu0 }
  0xd9   :  { %4494 = vst [vmem:[#allocation16_spill] sm:$0xff] %v2796_v25  ;;  %v654_v4 = vmul.f32 %v2796_v25, %v2796_v25  ;;  %v530_v38 = vsel %vm508_vm2, %v2796_v25, 0.0 }
  0xda   :  { %v531_v47 = vadd.f32 %v530_v38, %v529_v41 }
  0xdb   :  { %v728_v42 = vsel %vm508_vm2, %v654_v4, 0.0 }
  0xdc   :  { %v729_v55 = vadd.f32 %v728_v42, %v727_v46 }
  0xdf   :  { %v2888_v51 = vpop.f32.mrf.mxu2 }
  0xe0   :  { %v2802_v28 = vpop.f32.mrf.mxu0 }
  0xe1   :  { %4495 = vst [vmem:[#allocation17_spill] sm:$0xff] %v2802_v28  ;;  %v655_v40 = vmul.f32 %v2802_v28, %v2802_v28  ;;  %v532_v43 = vsel %vm508_vm2, %v2802_v28, 0.0  ;;  %v681_v28 = vmul.f32 %v2855_v52, %v2855_v52 }
  0xe2   :  { %v533_v56 = vadd.f32 %v532_v43, %v531_v47  ;;  %v2937_v43 = vpop.f32.mrf.mxu3 }
  0xe3   :  { %v730_v49 = vsel %vm508_vm2, %v655_v40, 0.0 }
  0xe4   :  { %v731_v4 = vadd.f32 %v730_v49, %v729_v55 }
  0xe7   :  { %v2921_v58 = vpop.f32.mrf.mxu2 }
  0xe8   :  { %v2822_v31 = vpop.f32.mrf.mxu0  ;;  %v588_v25 = vsel %vm508_vm2, %v2921_v58, 0.0 }
  0xe9   :  { %4496 = vst [vmem:[#allocation18_spill] sm:$0xff] %v2822_v31  ;;  %v656_v45 = vmul.f32 %v2822_v31, %v2822_v31  ;;  %v534_v50 = vsel %vm508_vm2, %v2822_v31, 0.0  ;;  %v578_v31 = vsel %vm508_vm2, %v2782_v22, 0.0 }
  0xea   :  { %v535_v7 = vadd.f32 %v534_v50, %v533_v56 }
  0xeb   :  { %v732_v59 = vsel %vm508_vm2, %v656_v45, 0.0 }
  0xec   :  { %v733_v41 = vadd.f32 %v732_v59, %v731_v4 }
  0xf0   :  { %v2847_v44 = vpop.f32.mrf.mxu0 }
  0xf1   :  { %4497 = vst [vmem:[#allocation19_spill] sm:$0xff] %v2847_v44  ;;  %v657_v54 = vmul.f32 %v2847_v44, %v2847_v44  ;;  %v536_v0 = vsel %vm508_vm2, %v2847_v44, 0.0 }
  0xf2   :  { %v537_v42 = vadd.f32 %v536_v0, %v535_v7 }
  0xf3   :  { %v734_v38 = vsel %vm508_vm2, %v657_v54, 0.0 }
  0xf4   :  { %v735_v49 = vadd.f32 %v734_v38, %v733_v41 }
  0xf8   :  { %v2876_v39 = vpop.f32.mrf.mxu0 }
  0xf9   :  { %4498 = vst [vmem:[#allocation20_spill] sm:$0xff] %v2876_v39  ;;  %v658_v3 = vmul.f32 %v2876_v39, %v2876_v39  ;;  %v538_v40 = vsel %vm508_vm2, %v2876_v39, 0.0  ;;  %v2950_v39 = vpop.f32.mrf.mxu2 }
  0xfa   :  { %v539_v50 = vadd.f32 %v538_v40, %v537_v42  ;;  %v2958_v42 = vpop.f32.mrf.mxu1 }
  0xfb   :  { %v736_v45 = vsel %vm508_vm2, %v658_v3, 0.0 }
  0xfc   :  { %v737_v56 = vadd.f32 %v736_v45, %v735_v49  ;;  %v546_v45 = vsel %vm508_vm2, %v2766_v19, 0.0 }
 0x100   :  { %v2902_v17 = vpop.f32.mrf.mxu0 }
 0x101   :  { %4499 = vst [vmem:[#allocation21_spill] sm:$0xff] %v2902_v17  ;;  %v659_v32 = vmul.f32 %v2902_v17, %v2902_v17  ;;  %v540_v46 = vsel %vm508_vm2, %v2902_v17, 0.0  ;;  %v662_v17 = vmul.f32 %v2766_v19, %v2766_v19 }
 0x102   :  { %v541_v59 = vadd.f32 %v540_v46, %v539_v50  ;;  %v663_v46 = vmul.f32 %v2790_v24, %v2790_v24 }
 0x103   :  { %v738_v54 = vsel %vm508_vm2, %v659_v32, 0.0 }
 0x104   :  { %v739_v4 = vadd.f32 %v738_v54, %v737_v56  ;;  %v2965_v54 = vpop.f32.mrf.mxu3  ;;  %v548_v56 = vsel %vm508_vm2, %v2790_v24, 0.0 }
 0x108   :  { %v2928_v14 = vpop.f32.mrf.mxu0 }
 0x109   :  { %4500 = vst [vmem:[#allocation22_spill] sm:$0xff] %v2928_v14  ;;  %v660_v47 = vmul.f32 %v2928_v14, %v2928_v14  ;;  %v542_v55 = vsel %vm508_vm2, %v2928_v14, 0.0 }
 0x10a   :  { %v543_v7 = vadd.f32 %v542_v55, %v541_v59  ;;  %v744_v55 = vsel %vm508_vm2, %v662_v17, 0.0  ;;  %v664_v59 = vmul.f32 %v2804_v29, %v2804_v29 }
 0x10b   :  { %v740_v0 = vsel %vm508_vm2, %v660_v47, 0.0 }
 0x10c   :  { %v741_v32 = vadd.f32 %v740_v0, %v739_v4  ;;  %v748_v17 = vsel %vm508_vm2, %v664_v59, 0.0 }
 0x110   :  { %v2948_v3 = vpop.f32.mrf.mxu0 }
 0x111   :  { %4501 = vst [vmem:[#allocation23_spill] sm:$0xff] %v2948_v3  ;;  %v544_v38 = vsel %vm508_vm2, %v2948_v3, 0.0  ;;  %v661_v40 = vmul.f32 %v2948_v3, %v2948_v3 }
 0x112   :  { %v545_v41 = vadd.f32 %v544_v38, %v543_v7  ;;  %v746_v7 = vsel %vm508_vm2, %v663_v46, 0.0  ;;  %v550_v38 = vsel %vm508_vm2, %v2804_v29, 0.0 }
 0x113   :  { %v742_v47 = vsel %vm508_vm2, %v661_v40, 0.0  ;;  %v665_v40 = vmul.f32 %v2828_v34, %v2828_v34 }
 0x114   :  { %v547_v49 = vadd.f32 %v546_v45, %v545_v41  ;;  %v743_v50 = vadd.f32 %v742_v47, %v741_v32  ;;  %v552_v45 = vsel %vm508_vm2, %v2828_v34, 0.0  ;;  %v666_v47 = vmul.f32 %v2862_v60, %v2862_v60 }
 0x115   :  { %v750_v46 = vsel %vm508_vm2, %v665_v40, 0.0 }
 0x116   :  { %v549_v0 = vadd.f32 %v548_v56, %v547_v49  ;;  %v745_v4 = vadd.f32 %v744_v55, %v743_v50  ;;  %v2982_v55 = vpop.f32.mrf.mxu2  ;;  %v554_v56 = vsel %vm508_vm2, %v2862_v60, 0.0 }
 0x118   :  { %v551_v32 = vadd.f32 %v550_v38, %v549_v0  ;;  %v747_v41 = vadd.f32 %v746_v7, %v745_v4  ;;  %v667_v0 = vmul.f32 %v2895_v63, %v2895_v63  ;;  %v2989_v7 = vpop.f32.mrf.mxu1  ;;  %v752_v38 = vsel %vm508_vm2, %v666_v47, 0.0 }
 0x119   :  { %v670_v47 = vmul.f32 %v2989_v7, %v2989_v7 }
 0x11a   :  { %v749_v49 = vadd.f32 %v748_v17, %v747_v41  ;;  %v553_v50 = vadd.f32 %v552_v45, %v551_v32  ;;  %v556_v41 = vsel %vm508_vm2, %v2895_v63, 0.0  ;;  %v668_v32 = vmul.f32 %v2930_v37, %v2930_v37  ;;  %v2996_v45 = vpop.f32.mrf.mxu3 }
 0x11b   :  { %v754_v24 = vsel %vm508_vm2, %v667_v0, 0.0  ;;  %v760_v14 = vsel %vm508_vm2, %v670_v47, 0.0 }
 0x11c   :  { %v555_v4 = vadd.f32 %v554_v56, %v553_v50  ;;  %v751_v59 = vadd.f32 %v750_v46, %v749_v49  ;;  %v558_v50 = vsel %vm508_vm2, %v2930_v37, 0.0  ;;  %v669_v49 = vmul.f32 %v2958_v42, %v2958_v42 }
 0x11d   :  { %v756_v19 = vsel %vm508_vm2, %v668_v32, 0.0  ;;  %v564_v32 = vsel %vm508_vm2, %v2640_v62, 0.0 }
 0x11e   :  { %v557_v17 = vadd.f32 %v556_v41, %v555_v4  ;;  %v753_v40 = vadd.f32 %v752_v38, %v751_v59  ;;  %v560_v4 = vsel %vm508_vm2, %v2958_v42, 0.0  ;;  %v562_v59 = vsel %vm508_vm2, %v2989_v7, 0.0 }
 0x11f   :  { %v671_v41 = vmul.f32 %v2640_v62, %v2640_v62  ;;  %v758_v3 = vsel %vm508_vm2, %v669_v49, 0.0  ;;  %v673_v49 = vmul.f32 %v2694_v6, %v2694_v6 }
 0x120   :  { %v559_v46 = vadd.f32 %v558_v50, %v557_v17  ;;  %v755_v56 = vadd.f32 %v754_v24, %v753_v40  ;;  %v3014_v24 = vpop.f32.mrf.mxu2  ;;  %v672_v40 = vmul.f32 %v2668_v2, %v2668_v2 }
 0x121   :  { %v686_v21 = vmul.f32 %v3014_v24, %v3014_v24 }
 0x122   :  { %v757_v0 = vadd.f32 %v756_v19, %v755_v56  ;;  %v561_v38 = vadd.f32 %v560_v4, %v559_v46  ;;  %v762_v46 = vsel %vm508_vm2, %v671_v41, 0.0  ;;  %v566_v56 = vsel %vm508_vm2, %v2668_v2, 0.0  ;;  %v3025_v4 = vpop.f32.mrf.mxu3 }
 0x123   :  { %v766_v41 = vsel %vm508_vm2, %v673_v49, 0.0 }
 0x124   :  { %v759_v44 = vadd.f32 %v758_v3, %v757_v0  ;;  %v563_v17 = vadd.f32 %v562_v59, %v561_v38  ;;  %v764_v59 = vsel %vm508_vm2, %v672_v40, 0.0  ;;  %v568_v0 = vsel %vm508_vm2, %v2694_v6, 0.0 }
 0x126   :  { %v565_v50 = vadd.f32 %v564_v32, %v563_v17  ;;  %v761_v19 = vadd.f32 %v760_v14, %v759_v44  ;;  %v674_v44 = vmul.f32 %v2720_v9, %v2720_v9  ;;  %v570_v17 = vsel %vm508_vm2, %v2720_v9, 0.0 }
 0x127   :  { %v675_v32 = vmul.f32 %v2732_v12, %v2732_v12 }
 0x128   :  { %v567_v3 = vadd.f32 %v566_v56, %v565_v50  ;;  %v763_v47 = vadd.f32 %v762_v46, %v761_v19  ;;  %v768_v40 = vsel %vm508_vm2, %v674_v44, 0.0  ;;  %v572_v46 = vsel %vm508_vm2, %v2732_v12, 0.0 }
 0x129   :  { %v676_v56 = vmul.f32 %v2750_v15, %v2750_v15  ;;  %v770_v49 = vsel %vm508_vm2, %v675_v32, 0.0 }
 0x12a   :  { %v569_v14 = vadd.f32 %v568_v0, %v567_v3  ;;  %v765_v38 = vadd.f32 %v764_v59, %v763_v47  ;;  %v3042_v59 = vpop.f32.mrf.mxu2  ;;  %v574_v0 = vsel %vm508_vm2, %v2750_v15, 0.0 }
 0x12c   :  { %v571_v50 = vadd.f32 %v570_v17, %v569_v14  ;;  %v767_v19 = vadd.f32 %v766_v41, %v765_v38  ;;  %v677_v14 = vmul.f32 %v2764_v18, %v2764_v18  ;;  %v772_v41 = vsel %vm508_vm2, %v676_v56, 0.0 }
 0x12d   :  { %v576_v17 = vsel %vm508_vm2, %v2764_v18, 0.0 }
 0x12e   :  { %v573_v3 = vadd.f32 %v572_v46, %v571_v50  ;;  %v769_v47 = vadd.f32 %v768_v40, %v767_v19  ;;  %v678_v50 = vmul.f32 %v2782_v22, %v2782_v22  ;;  %v3054_v46 = vpop.f32.mrf.mxu3  ;;  %v774_v32 = vsel %vm508_vm2, %v677_v14, 0.0 }
 0x130   :  { %v575_v38 = vadd.f32 %v574_v0, %v573_v3  ;;  %v771_v44 = vadd.f32 %v770_v49, %v769_v47  ;;  %v679_v3 = vmul.f32 %v2800_v27, %v2800_v27  ;;  %v776_v49 = vsel %vm508_vm2, %v678_v50, 0.0 }
 0x131   :  { %v580_v0 = vsel %vm508_vm2, %v2800_v27, 0.0 }
 0x132   :  { %v577_v19 = vadd.f32 %v576_v17, %v575_v38  ;;  %v773_v40 = vadd.f32 %v772_v41, %v771_v44  ;;  %v680_v38 = vmul.f32 %v2824_v33, %v2824_v33  ;;  %v778_v14 = vsel %vm508_vm2, %v679_v3, 0.0 }
 0x133   :  { %v582_v17 = vsel %vm508_vm2, %v2824_v33, 0.0 }
 0x134   :  { %v775_v47 = vadd.f32 %v774_v32, %v773_v40  ;;  %v579_v56 = vadd.f32 %v578_v31, %v577_v19  ;;  %v3071_v19 = vpop.f32.mrf.mxu2  ;;  %v780_v50 = vsel %vm508_vm2, %v680_v38, 0.0  ;;  %v584_v32 = vsel %vm508_vm2, %v2855_v52, 0.0 }
 0x136   :  { %v581_v44 = vadd.f32 %v580_v0, %v579_v56  ;;  %v777_v41 = vadd.f32 %v776_v49, %v775_v47  ;;  %v682_v47 = vmul.f32 %v2888_v51, %v2888_v51  ;;  %v782_v49 = vsel %vm508_vm2, %v681_v28, 0.0 }
 0x137   :  { %v586_v0 = vsel %vm508_vm2, %v2888_v51, 0.0 }
 0x138   :  { %v583_v40 = vadd.f32 %v582_v17, %v581_v44  ;;  %v779_v31 = vadd.f32 %v778_v14, %v777_v41  ;;  %v683_v44 = vmul.f32 %v2921_v58, %v2921_v58  ;;  %v3083_v17 = vpop.f32.mrf.mxu3  ;;  %v784_v38 = vsel %vm508_vm2, %v682_v47, 0.0 }
 0x139   :  { %4502 = vst [vmem:[#allocation24_spill] sm:$0xff] %v3083_v17 }
 0x13a   :  { %v585_v56 = vadd.f32 %v584_v32, %v583_v40  ;;  %v781_v3 = vadd.f32 %v780_v50, %v779_v31  ;;  %v684_v40 = vmul.f32 %v2950_v39, %v2950_v39  ;;  %v786_v50 = vsel %vm508_vm2, %v683_v44, 0.0 }
 0x13b   :  { %v590_v32 = vsel %vm508_vm2, %v2950_v39, 0.0 }
 0x13c   :  { %v587_v41 = vadd.f32 %v586_v0, %v585_v56  ;;  %v783_v14 = vadd.f32 %v782_v49, %v781_v3  ;;  %v685_v56 = vmul.f32 %v2982_v55, %v2982_v55  ;;  %v788_v47 = vsel %vm508_vm2, %v684_v40, 0.0 }
 0x13d   :  { %v592_v0 = vsel %vm508_vm2, %v2982_v55, 0.0 }
 0x13e   :  { %v589_v31 = vadd.f32 %v588_v25, %v587_v41  ;;  %v785_v28 = vadd.f32 %v784_v38, %v783_v14  ;;  %v3100_v14 = vpop.f32.mrf.mxu2  ;;  %v790_v44 = vsel %vm508_vm2, %v685_v56, 0.0  ;;  %v594_v38 = vsel %vm508_vm2, %v3014_v24, 0.0 }
 0x140   :  { %v591_v3 = vadd.f32 %v590_v32, %v589_v31  ;;  %v787_v49 = vadd.f32 %v786_v50, %v785_v28  ;;  %v687_v31 = vmul.f32 %v3042_v59, %v3042_v59  ;;  %v792_v50 = vsel %vm508_vm2, %v686_v21, 0.0 }
 0x141   :  { %v596_v32 = vsel %vm508_vm2, %v3042_v59, 0.0  ;;  %v600_v21 = vsel %vm508_vm2, %v3100_v14, 0.0 }
 0x142   :  { %v593_v25 = vadd.f32 %v592_v0, %v591_v3  ;;  %v789_v41 = vadd.f32 %v788_v47, %v787_v49  ;;  %v688_v3 = vmul.f32 %v3071_v19, %v3071_v19  ;;  %v689_v49 = vmul.f32 %v3100_v14, %v3100_v14  ;;  %v3114_v0 = vpop.f32.mrf.mxu3 }
 0x143   :  { %4503 = vst [vmem:[#allocation25_spill] sm:$0xff] %v3114_v0  ;;  %v794_v16 = vsel %vm508_vm2, %v687_v31, 0.0  ;;  %v602_v31 = vsel %vm508_vm2, %v2768_v20, 0.0 }
 0x144   :  { %v791_v28 = vadd.f32 %v790_v44, %v789_v41  ;;  %v595_v40 = vadd.f32 %v594_v38, %v593_v25  ;;  %v598_v25 = vsel %vm508_vm2, %v3071_v19, 0.0  ;;  %v690_v38 = vmul.f32 %v2768_v20, %v2768_v20 }
 0x145   :  { %v796_v13 = vsel %vm508_vm2, %v688_v3, 0.0  ;;  %v692_v3 = vmul.f32 %v2798_v26, %v2798_v26 }
 0x146   :  { %v793_v56 = vadd.f32 %v792_v50, %v791_v28  ;;  %v597_v47 = vadd.f32 %v596_v32, %v595_v40  ;;  %v798_v28 = vsel %vm508_vm2, %v689_v49, 0.0  ;;  %v691_v32 = vmul.f32 %v2784_v23, %v2784_v23 }
 0x148   :  { %v795_v41 = vadd.f32 %v794_v16, %v793_v56  ;;  %v599_v44 = vadd.f32 %v598_v25, %v597_v47  ;;  %v800_v16 = vsel %vm508_vm2, %v690_v38, 0.0  ;;  %v604_v56 = vsel %vm508_vm2, %v2784_v23, 0.0 }
 0x149   :  { %v606_v25 = vsel %vm508_vm2, %v2798_v26, 0.0  ;;  %v804_v38 = vsel %vm508_vm2, %v692_v3, 0.0 }
 0x14a   :  { %v797_v40 = vadd.f32 %v796_v13, %v795_v41  ;;  %v601_v50 = vadd.f32 %v600_v21, %v599_v44  ;;  %v802_v13 = vsel %vm508_vm2, %v691_v32, 0.0  ;;  %v693_v21 = vmul.f32 %v2812_v30, %v2812_v30 }
 0x14b   :  { %v610_v32 = vsel %vm508_vm2, %v2832_v36, 0.0 }
 0x14c   :  { %v603_v10 = vadd.f32 %v602_v31, %v601_v50  ;;  %v799_v8 = vadd.f32 %v798_v28, %v797_v40  ;;  %v3139_v28 = vpop.f32.mrf.mxu3  ;;  %v608_v40 = vsel %vm508_vm2, %v2812_v30, 0.0  ;;  %v806_v31 = vsel %vm508_vm2, %v693_v21, 0.0 }
 0x14d   :  { %4504 = vst [vmem:[#allocation26_spill] sm:$0xff] %v3139_v28 }
 0x14e   :  { %v605_v47 = vadd.f32 %v604_v56, %v603_v10  ;;  %v801_v49 = vadd.f32 %v800_v16, %v799_v8  ;;  %v694_v8 = vmul.f32 %v2832_v36, %v2832_v36  ;;  %v695_v16 = vmul.f32 %v2869_v11, %v2869_v11 }
 0x150   :  { %v607_v41 = vadd.f32 %v606_v25, %v605_v47  ;;  %v803_v44 = vadd.f32 %v802_v13, %v801_v49  ;;  %v808_v3 = vsel %vm508_vm2, %v694_v8, 0.0  ;;  %v612_v49 = vsel %vm508_vm2, %v2869_v11, 0.0 }
 0x151   :  { %v696_v13 = vmul.f32 %v2904_v35, %v2904_v35  ;;  %v810_v21 = vsel %vm508_vm2, %v695_v16, 0.0 }
 0x152   :  { %v609_v10 = vadd.f32 %v608_v40, %v607_v41  ;;  %v805_v50 = vadd.f32 %v804_v38, %v803_v44  ;;  %v614_v44 = vsel %vm508_vm2, %v2904_v35, 0.0  ;;  %v697_v38 = vmul.f32 %v2937_v43, %v2937_v43 }
 0x153   :  { %v812_v8 = vsel %vm508_vm2, %v696_v13, 0.0 }
 0x154   :  { %v611_v56 = vadd.f32 %v610_v32, %v609_v10  ;;  %v807_v47 = vadd.f32 %v806_v31, %v805_v50  ;;  %v616_v50 = vsel %vm508_vm2, %v2937_v43, 0.0  ;;  %v698_v31 = vmul.f32 %v2965_v54, %v2965_v54 }
 0x155   :  { %v814_v16 = vsel %vm508_vm2, %v697_v38, 0.0 }
 0x156   :  { %v613_v25 = vadd.f32 %v612_v49, %v611_v56  ;;  %v809_v41 = vadd.f32 %v808_v3, %v807_v47  ;;  %v3166_v47 = vpop.f32.mrf.mxu3  ;;  %v618_v3 = vsel %vm508_vm2, %v2965_v54, 0.0  ;;  %v699_v49 = vmul.f32 %v2996_v45, %v2996_v45 }
 0x157   :  { %4505 = vst [vmem:[#allocation27_spill] sm:$0xff] %v3166_v47  ;;  %v632_v5 = vsel %vm508_vm2, %v3166_v47, 0.0 }
 0x158   :  { %v811_v40 = vadd.f32 %v810_v21, %v809_v41  ;;  %v615_v10 = vadd.f32 %v614_v44, %v613_v25  ;;  %v816_v41 = vsel %vm508_vm2, %v698_v31, 0.0  ;;  %v620_v21 = vsel %vm508_vm2, %v2996_v45, 0.0 }
 0x159   :  { %v700_v44 = vmul.f32 %v3025_v4, %v3025_v4  ;;  %v818_v38 = vsel %vm508_vm2, %v699_v49, 0.0 }
 0x15a   :  { %v617_v32 = vadd.f32 %v616_v50, %v615_v10  ;;  %v813_v56 = vadd.f32 %v812_v8, %v811_v40  ;;  %v622_v8 = vsel %vm508_vm2, %v3025_v4, 0.0  ;;  %v701_v50 = vmul.f32 %v3054_v46, %v3054_v46 }
 0x15b   :  { %v820_v31 = vsel %vm508_vm2, %v700_v44, 0.0 }
 0x15c   :  { %v619_v25 = vadd.f32 %v618_v3, %v617_v32  ;;  %v815_v13 = vadd.f32 %v814_v16, %v813_v56  ;;  %v624_v16 = vsel %vm508_vm2, %v3054_v46, 0.0  ;;  %v702_v3 = vmul.f32 %v3083_v17, %v3083_v17 }
 0x15d   :  { %v822_v49 = vsel %vm508_vm2, %v701_v50, 0.0 }
 0x15e   :  { %v621_v40 = vadd.f32 %v620_v21, %v619_v25  ;;  %v817_v10 = vadd.f32 %v816_v41, %v815_v13  ;;  %v626_v41 = vsel %vm508_vm2, %v3083_v17, 0.0  ;;  %v703_v21 = vmul.f32 %v3114_v0, %v3114_v0 }
 0x15f   :  { %v824_v44 = vsel %vm508_vm2, %v702_v3, 0.0 }
 0x160   :  { %v623_v32 = vadd.f32 %v622_v8, %v621_v40  ;;  %v819_v56 = vadd.f32 %v818_v38, %v817_v10  ;;  %v3193_v38 = vpop.f32.mrf.mxu3  ;;  %v628_v8 = vsel %vm508_vm2, %v3114_v0, 0.0 }
 0x162   :  { %v625_v25 = vadd.f32 %v624_v16, %v623_v32  ;;  %v821_v13 = vadd.f32 %v820_v31, %v819_v56  ;;  %v704_v32 = vmul.f32 %v3139_v28, %v3139_v28  ;;  %v826_v31 = vsel %vm508_vm2, %v703_v21, 0.0 }
 0x163   :  { %v630_v16 = vsel %vm508_vm2, %v3139_v28, 0.0 }
 0x164   :  { %v627_v40 = vadd.f32 %v626_v41, %v625_v25  ;;  %v823_v10 = vadd.f32 %v822_v49, %v821_v13  ;;  %v705_v25 = vmul.f32 %v3166_v47, %v3166_v47  ;;  %v706_v13 = vmul.f32 %v3193_v38, %v3193_v38 }
 0x165   :  { %v828_v41 = vsel %vm508_vm2, %v704_v32, 0.0 }
 0x166   :  { %v825_v56 = vadd.f32 %v824_v44, %v823_v10  ;;  %v629_v50 = vadd.f32 %v628_v8, %v627_v40  ;;  %v634_v40 = vsel %vm508_vm2, %v3193_v38, 0.0  ;;  %v830_v44 = vsel %vm508_vm2, %v705_v25, 0.0 }
 0x167   :  { %v832_v8 = vsel %vm508_vm2, %v706_v13, 0.0 }
 0x168   :  { %v827_v3 = vadd.f32 %v826_v31, %v825_v56  ;;  %v631_v49 = vadd.f32 %v630_v16, %v629_v50 }
 0x16a   :  { %v829_v21 = vadd.f32 %v828_v41, %v827_v3  ;;  %v633_v10 = vadd.f32 %v632_v5, %v631_v49 }
 0x16c   :  { %v831_v1 = vadd.f32 %v830_v44, %v829_v21  ;;  %v635_v61 = vadd.f32 %v634_v40, %v633_v10 }
 0x16e   :  { %v636_v57 = vrot.slane %v635_v61, 4  ;;  %v833_v53 = vadd.f32 %v832_v8, %v831_v1 }
 0x170   :  { %v637_v56 = vadd.f32 %v636_v57, %v635_v61  ;;  %v834_v50 = vrot.slane %v833_v53, 4 }
 0x172   :  { %v638_v31 = vrot.slane %v637_v56, 2  ;;  %v835_v32 = vadd.f32 %v834_v50, %v833_v53 }
 0x174   :  { %v639_v16 = vadd.f32 %v638_v31, %v637_v56  ;;  %v836_v48 = vrot.slane %v835_v32, 2 }
 0x176   :  { %v640_v47 = vrot.slane %v639_v16, 1  ;;  %v837_v28 = vadd.f32 %v836_v48, %v835_v32  ;;  %v506_v48 = vld [vmem:[%s4411_s2] sm:$0x1] }
 0x178   :  { %v641_v0 = vadd.f32 %v640_v47, %v639_v16  ;;  %v838_v17 = vrot.slane %v837_v28, 1 }
 0x17a   :  { %v3214_v3 = vmul.f32 0.001953125, %v641_v0  ;;  %v839_v5 = vadd.f32 %v838_v17, %v837_v28 }
 0x17c   :  { %v840_v25 = vmul.f32 0.001953125, %v839_v5  ;;  %v841_v13 = vmul.f32 %v3214_v3, %v3214_v3  ;;  %v907_v17 = vsub.f32 %v3193_v38, %v3214_v3  ;;  %v865_v28 = vsub.f32 %v2804_v29, %v3214_v3 }
 0x17d   :  { %v866_v47 = vsub.f32 %v2828_v34, %v3214_v3  ;;  %v867_v10 = vsub.f32 %v2862_v60, %v3214_v3  ;;  %v868_v44 = vsub.f32 %v2895_v63, %v3214_v3  ;;  %v869_v56 = vsub.f32 %v2930_v37, %v3214_v3 }
 0x17e   :  { %v842_v49 = vsub.f32 %v840_v25, %v841_v13  ;;  %v870_v38 = vsub.f32 %v2958_v42, %v3214_v3  ;;  %v871_v50 = vsub.f32 %v2989_v7, %v3214_v3  ;;  %v872_v34 = vsub.f32 %v2640_v62, %v3214_v3  ;;  %v3254_v62 = vld [vmem:[%s4408_s3] ss:$0 sm:$0xff] }
 0x17f   :  { %v873_v60 = vsub.f32 %v2668_v2, %v3214_v3  ;;  %v874_v63 = vsub.f32 %v2694_v6, %v3214_v3  ;;  %v875_v31 = vsub.f32 %v2720_v9, %v3214_v3  ;;  %v876_v37 = vsub.f32 %v2732_v12, %v3214_v3 }
 0x180   :  { %v843_v41 = vmax.f32 %v842_v49, 0.0  ;;  %v877_v42 = vsub.f32 %v2750_v15, %v3214_v3  ;;  %v878_v7 = vsub.f32 %v2764_v18, %v3214_v3  ;;  %v879_v6 = vsub.f32 %v2782_v22, %v3214_v3 }
 0x181   :  { %v880_v9 = vsub.f32 %v2800_v27, %v3214_v3  ;;  %v881_v12 = vsub.f32 %v2824_v33, %v3214_v3  ;;  %v882_v15 = vsub.f32 %v2855_v52, %v3214_v3  ;;  %v883_v18 = vsub.f32 %v2888_v51, %v3214_v3 }
 0x182   :  { %v908_v1 = vadd.f32 1e-05, %v843_v41  ;;  %v884_v32 = vsub.f32 %v2921_v58, %v3214_v3  ;;  %v885_v16 = vsub.f32 %v2950_v39, %v3214_v3  ;;  %v886_v27 = vsub.f32 %v2982_v55, %v3214_v3 }
 0x183   :  { %v887_v33 = vsub.f32 %v3014_v24, %v3214_v3  ;;  %v888_v52 = vsub.f32 %v3042_v59, %v3214_v3  ;;  %v889_v51 = vsub.f32 %v3071_v19, %v3214_v3  ;;  %v890_v58 = vsub.f32 %v3100_v14, %v3214_v3 }
 0x184   :  { %2240 = vrsqrt.f32 %v908_v1  ;;  %vm915_vm5 = vweird.f32 %v908_v1  ;;  %v891_v39 = vsub.f32 %v2768_v20, %v3214_v3  ;;  %v892_v5 = vsub.f32 %v2784_v23, %v3214_v3 }
 0x185   :  { %v893_v24 = vsub.f32 %v2798_v26, %v3214_v3  ;;  %v894_v59 = vsub.f32 %v2812_v30, %v3214_v3  ;;  %v895_v19 = vsub.f32 %v2832_v36, %v3214_v3  ;;  %v896_v14 = vsub.f32 %v2869_v11, %v3214_v3  ;;  %v4506_v11 = vld [vmem:[#allocation24_spill] sm:$0xff] }
 0x186   :  { %v897_v20 = vsub.f32 %v2904_v35, %v3214_v3  ;;  %v898_v23 = vsub.f32 %v2937_v43, %v3214_v3  ;;  %v899_v25 = vsub.f32 %v2965_v54, %v3214_v3  ;;  %v900_v26 = vsub.f32 %v2996_v45, %v3214_v3  ;;  %v4507_v35 = vld [vmem:[#allocation25_spill] sm:$0xff]  ;;  %v4508_v43 = vld [vmem:[#allocation26_spill] sm:$0xff]  ;;  %v4509_v54 = vld [vmem:[#allocation27_spill] sm:$0xff] }
 0x187   :  { %v901_v30 = vsub.f32 %v3025_v4, %v3214_v3  ;;  %v902_v36 = vsub.f32 %v3054_v46, %v3214_v3  ;;  %v903_v49 = vsub.f32 %v4506_v11, %v3214_v3  ;;  %v904_v41 = vsub.f32 %v4507_v35, %v3214_v3 }
 0x18a   :  { %v2241_v57 = vpop.eup %2240 }
 0x18b   :  { %v910_v61 = vmul.f32 %v2241_v57, %v908_v1  ;;  %vm916_vm4 = vweird.f32 %v2241_v57  ;;  %v905_v1 = vsub.f32 %v4508_v43, %v3214_v3 }
 0x18c   :  { %vm917_vm6 = vmor %vm915_vm5, %vm916_vm4 }
 0x18d   :  { %v911_v53 = vmul.f32 %v2241_v57, %v910_v61 }
 0x18f   :  { %v912_v40 = vmul.f32 0.5, %v911_v53 }
 0x191   :  { %v913_v21 = vsub.f32 1.5, %v912_v40 }
 0x193   :  { %v914_v0 = vmul.f32 %v2241_v57, %v913_v21 }
 0x195   :  { %v918_v8 = vsel %vm917_vm6, %v2241_v57, %v914_v0  ;;  %v906_v57 = vsub.f32 %v4509_v54, %v3214_v3 }
 0x196   :  { %v919_v29 = vmul.f32 %v918_v8, %v506_v48 }
 0x198   :  { %v3256_v2 = vperm.slane %v919_v29, 0 }
 0x19a   :  { %v984_v22 = vmul.f32 %v3256_v2, %v907_v17  ;;  %v942_v45 = vmul.f32 %v3256_v2, %v865_v28  ;;  %v943_v4 = vmul.f32 %v3256_v2, %v866_v47  ;;  %v944_v53 = vmul.f32 %v3256_v2, %v867_v10 }
 0x19b   :  { %v945_v46 = vmul.f32 %v3256_v2, %v868_v44  ;;  %v946_v40 = vmul.f32 %v3256_v2, %v869_v56  ;;  %v947_v21 = vmul.f32 %v3256_v2, %v870_v38  ;;  %v948_v48 = vmul.f32 %v3256_v2, %v871_v50 }
 0x19c   :  { %v1051_v55 = vadd.f32 %v3254_v62, %v984_v22  ;;  %v949_v17 = vmul.f32 %v3256_v2, %v872_v34  ;;  %v950_v0 = vmul.f32 %v3256_v2, %v873_v60  ;;  %v951_v28 = vmul.f32 %v3256_v2, %v874_v63 }
 0x19d   :  { %v952_v47 = vmul.f32 %v3256_v2, %v875_v31  ;;  %v953_v10 = vmul.f32 %v3256_v2, %v876_v37  ;;  %v954_v44 = vmul.f32 %v3256_v2, %v877_v42  ;;  %v955_v8 = vmul.f32 %v3256_v2, %v878_v7 }
 0x19e   :  { %v1115_v13 = vmax.f32 %v1051_v55, 0.0  ;;  %v956_v56 = vmul.f32 %v3256_v2, %v879_v6  ;;  %v957_v38 = vmul.f32 %v3256_v2, %v880_v9  ;;  %v958_v50 = vmul.f32 %v3256_v2, %v881_v12 }
 0x19f   :  { %v959_v29 = vmul.f32 %v3256_v2, %v882_v15  ;;  %v960_v34 = vmul.f32 %v3256_v2, %v883_v18  ;;  %v961_v60 = vmul.f32 %v3256_v2, %v884_v32  ;;  %v962_v63 = vmul.f32 %v3256_v2, %v885_v16 }
 0x1a0   :  { %v1179_v61 = vmin.f32 %v1115_v13, 6.0  ;;  %v963_v31 = vmul.f32 %v3256_v2, %v886_v27  ;;  %v964_v37 = vmul.f32 %v3256_v2, %v887_v33  ;;  %v965_v42 = vmul.f32 %v3256_v2, %v888_v52 }
 0x1a1   :  { %v966_v7 = vmul.f32 %v3256_v2, %v889_v51  ;;  %v967_v6 = vmul.f32 %v3256_v2, %v890_v58  ;;  %v968_v9 = vmul.f32 %v3256_v2, %v891_v39  ;;  %v969_v12 = vmul.f32 %v3256_v2, %v892_v5 }
 0x1a2   :  { %1396 = vst.msk [vmem:[#allocation2 + $0x2c1] sm:$0xff] %vm508_vm2, %v1179_v61  ;;  %v970_v15 = vmul.f32 %v3256_v2, %v893_v24  ;;  %v971_v18 = vmul.f32 %v3256_v2, %v894_v59  ;;  %v972_v32 = vmul.f32 %v3256_v2, %v895_v19  ;;  %v973_v16 = vmul.f32 %v3256_v2, %v896_v14 }
 0x1a3   :  { %v974_v22 = vmul.f32 %v3256_v2, %v897_v20  ;;  %v975_v27 = vmul.f32 %v3256_v2, %v898_v23  ;;  %v976_v33 = vmul.f32 %v3256_v2, %v899_v25  ;;  %v977_v52 = vmul.f32 %v3256_v2, %v900_v26 }
 0x1a4   :  { %v978_v51 = vmul.f32 %v3256_v2, %v901_v30  ;;  %v979_v58 = vmul.f32 %v3256_v2, %v902_v36  ;;  %v980_v39 = vmul.f32 %v3256_v2, %v903_v49  ;;  %v981_v5 = vmul.f32 %v3256_v2, %v904_v41 }
 0x1a5   :  { %v982_v55 = vmul.f32 %v3256_v2, %v905_v1  ;;  %v983_v24 = vmul.f32 %v3256_v2, %v906_v57  ;;  %v3360_v59 = vadd.f32 %v3254_v62, %v942_v45  ;;  %v3363_v19 = vadd.f32 %v3254_v62, %v943_v4 }
 0x1a6   :  { %v3366_v14 = vadd.f32 %v3254_v62, %v944_v53  ;;  %v3369_v20 = vadd.f32 %v3254_v62, %v945_v46  ;;  %v3372_v23 = vadd.f32 %v3254_v62, %v946_v40  ;;  %v3375_v25 = vadd.f32 %v3254_v62, %v947_v21 }
 0x1a7   :  { %v3378_v13 = vadd.f32 %v3254_v62, %v948_v48  ;;  %v3381_v26 = vadd.f32 %v3254_v62, %v949_v17  ;;  %v3384_v30 = vadd.f32 %v3254_v62, %v950_v0  ;;  %v3387_v36 = vadd.f32 %v3254_v62, %v951_v28 }
 0x1a8   :  { %v3390_v11 = vadd.f32 %v3254_v62, %v952_v47  ;;  %v3393_v49 = vadd.f32 %v3254_v62, %v953_v10  ;;  %v3396_v35 = vadd.f32 %v3254_v62, %v954_v44  ;;  %v3399_v41 = vadd.f32 %v3254_v62, %v955_v8 }
 0x1a9   :  { %v3402_v43 = vadd.f32 %v3254_v62, %v956_v56  ;;  %v3405_v1 = vadd.f32 %v3254_v62, %v957_v38  ;;  %v3408_v54 = vadd.f32 %v3254_v62, %v958_v50  ;;  %v3411_v57 = vadd.f32 %v3254_v62, %v959_v29 }
 0x1aa   :  { %v3414_v61 = vadd.f32 %v3254_v62, %v960_v34  ;;  %v3417_v45 = vadd.f32 %v3254_v62, %v961_v60  ;;  %v3420_v4 = vadd.f32 %v3254_v62, %v962_v63  ;;  %v3423_v53 = vadd.f32 %v3254_v62, %v963_v31 }
 0x1ab   :  { %v3426_v46 = vadd.f32 %v3254_v62, %v964_v37  ;;  %v3429_v40 = vadd.f32 %v3254_v62, %v965_v42  ;;  %v3432_v21 = vadd.f32 %v3254_v62, %v966_v7  ;;  %v3435_v48 = vadd.f32 %v3254_v62, %v967_v6  ;;  %v4526_v42 = vld [vmem:[#allocation3_spill] sm:$0xff]  ;;  %v4527_v6 = vld [vmem:[#allocation4_spill] sm:$0xff] }
 0x1ac   :  { %v3438_v17 = vadd.f32 %v3254_v62, %v968_v9  ;;  %v3441_v0 = vadd.f32 %v3254_v62, %v969_v12  ;;  %v3444_v28 = vadd.f32 %v3254_v62, %v970_v15  ;;  %v3447_v47 = vadd.f32 %v3254_v62, %v971_v18  ;;  %v4528_v12 = vld [vmem:[#allocation5_spill] sm:$0xff]  ;;  %v4529_v18 = vld [vmem:[#allocation6_spill] sm:$0xff] }
 0x1ad   :  { %v3450_v10 = vadd.f32 %v3254_v62, %v972_v32  ;;  %v3453_v44 = vadd.f32 %v3254_v62, %v973_v16  ;;  %v3456_v8 = vadd.f32 %v3254_v62, %v974_v22  ;;  %v3459_v56 = vadd.f32 %v3254_v62, %v975_v27  ;;  %v4530_v16 = vld [vmem:[#allocation7_spill] sm:$0xff]  ;;  %v4531_v27 = vld [vmem:[#allocation8_spill] sm:$0xff] }
 0x1ae   :  { %4510 = vst [vmem:[#allocation24_spill] sm:$0xff] %v3438_v17  ;;  %v3462_v38 = vadd.f32 %v3254_v62, %v976_v33  ;;  %v3465_v50 = vadd.f32 %v3254_v62, %v977_v52  ;;  %v3468_v29 = vadd.f32 %v3254_v62, %v978_v51  ;;  %v3471_v34 = vadd.f32 %v3254_v62, %v979_v58 }
 0x1af   :  { %4511 = vst [vmem:[#allocation25_spill] sm:$0xff] %v3441_v0  ;;  %v3474_v60 = vadd.f32 %v3254_v62, %v980_v39  ;;  %v3477_v63 = vadd.f32 %v3254_v62, %v981_v5  ;;  %v3480_v31 = vadd.f32 %v3254_v62, %v982_v55  ;;  %v3483_v37 = vadd.f32 %v3254_v62, %v983_v24  ;;  %v4532_v39 = vld [vmem:[#allocation9_spill] sm:$0xff]  ;;  %v4533_v55 = vld [vmem:[#allocation10_spill] sm:$0xff] }
 0x1b0   :  { %4512 = vst [vmem:[#allocation26_spill] sm:$0xff] %v3444_v28  ;;  %v844_v7 = vsub.f32 %v4526_v42, %v3214_v3  ;;  %v845_v9 = vsub.f32 %v4527_v6, %v3214_v3  ;;  %v846_v15 = vsub.f32 %v4528_v12, %v3214_v3  ;;  %v847_v32 = vsub.f32 %v4529_v18, %v3214_v3  ;;  %v4534_v42 = vld [vmem:[#allocation11_spill] sm:$0xff]  ;;  %v4535_v18 = vld [vmem:[#allocation12_spill] sm:$0xff] }
 0x1b1   :  { %4513 = vst [vmem:[#allocation27_spill] sm:$0xff] %v3447_v47  ;;  %v848_v22 = vsub.f32 %v4530_v16, %v3214_v3  ;;  %v849_v33 = vsub.f32 %v4531_v27, %v3214_v3  ;;  %v850_v5 = vsub.f32 %v4532_v39, %v3214_v3  ;;  %v851_v24 = vsub.f32 %v4533_v55, %v3214_v3  ;;  %v4538_v39 = vld [vmem:[#allocation17_spill] sm:$0xff]  ;;  %v4539_v55 = vld [vmem:[#allocation18_spill] sm:$0xff] }
 0x1b2   :  { %4514 = vst [vmem:[#allocation28_spill] sm:$0xff] %v3450_v10  ;;  %v921_v52 = vmul.f32 %v3256_v2, %v844_v7  ;;  %v922_v51 = vmul.f32 %v3256_v2, %v845_v9  ;;  %v923_v58 = vmul.f32 %v3256_v2, %v846_v15  ;;  %v852_v6 = vsub.f32 %v4534_v42, %v3214_v3  ;;  %v4536_v7 = vld [vmem:[#allocation14_spill] sm:$0xff]  ;;  %v4537_v9 = vld [vmem:[#allocation16_spill] sm:$0xff]  ;;  %v4540_v42 = vld [vmem:[#allocation19_spill] sm:$0xff] }
 0x1b3   :  { %4515 = vst [vmem:[#allocation29_spill] sm:$0xff] %v3453_v44  ;;  %v924_v12 = vmul.f32 %v3256_v2, %v847_v32  ;;  %v853_v16 = vsub.f32 %v4535_v18, %v3214_v3  ;;  %v854_v27 = vsub.f32 %v4536_v7, %v3214_v3  ;;  %v855_v15 = vsub.f32 %v4537_v9, %v3214_v3 }
 0x1b4   :  { %4516 = vst [vmem:[#allocation30_spill] sm:$0xff] %v3456_v8  ;;  %v858_v32 = vsub.f32 %v4540_v42, %v3214_v3  ;;  %v927_v18 = vmul.f32 %v3256_v2, %v850_v5  ;;  %v988_v7 = vadd.f32 %v3254_v62, %v921_v52  ;;  %v990_v9 = vadd.f32 %v3254_v62, %v923_v58  ;;  %v4544_v5 = vld [vmem:[#allocation23_spill] sm:$0xff] }
 0x1b5   :  { %4517 = vst [vmem:[#allocation31_spill] sm:$0xff] %v3459_v56  ;;  %v991_v42 = vadd.f32 %v3254_v62, %v924_v12  ;;  %v862_v52 = vsub.f32 %v4544_v5, %v3214_v3  ;;  %v4545_v56 = vld [vmem:[#allocation13_spill] sm:$0xff]  ;;  %v930_v8 = vmul.f32 %v3256_v2, %v853_v16  ;;  %v4546_v5 = vld [vmem:[#allocation15_spill] sm:$0xff] }
 0x1b6   :  { %4518 = vst [vmem:[#allocation32_spill] sm:$0xff] %v3462_v38  ;;  %v994_v12 = vadd.f32 %v3254_v62, %v927_v18  ;;  %v1052_v44 = vmax.f32 %v988_v7, 0.0  ;;  %v1054_v10 = vmax.f32 %v990_v9, 0.0  ;;  %v864_v47 = vsub.f32 %v4546_v5, %v3214_v3 }
 0x1b7   :  { %4519 = vst [vmem:[#allocation33_spill] sm:$0xff] %v3465_v50  ;;  %v1055_v28 = vmax.f32 %v991_v42, 0.0  ;;  %v935_v18 = vmul.f32 %v3256_v2, %v858_v32 }
 0x1b8   :  { %4520 = vst [vmem:[#allocation34_spill] sm:$0xff] %v3468_v29  ;;  %v1116_v5 = vmin.f32 %v1052_v44, 6.0  ;;  %v1118_v0 = vmin.f32 %v1054_v10, 6.0 }
 0x1b9   :  { %4521 = vst [vmem:[#allocation35_spill] sm:$0xff] %v3471_v34  ;;  %v989_v34 = vadd.f32 %v3254_v62, %v922_v51  ;;  %v929_v51 = vmul.f32 %v3256_v2, %v852_v6  ;;  %v932_v6 = vmul.f32 %v3256_v2, %v855_v15 }
 0x1ba   :  { %4522 = vst [vmem:[#allocation36_spill] sm:$0xff] %v3474_v60  ;;  %v926_v60 = vmul.f32 %v3256_v2, %v849_v33  ;;  %v4543_v33 = vld [vmem:[#allocation22_spill] sm:$0xff] }
 0x1bb   :  { %4523 = vst [vmem:[#allocation37_spill] sm:$0xff] %v3477_v63  ;;  %v857_v63 = vsub.f32 %v4539_v55, %v3214_v3  ;;  %v928_v55 = vmul.f32 %v3256_v2, %v851_v24  ;;  %v861_v38 = vsub.f32 %v4543_v33, %v3214_v3  ;;  %v1053_v33 = vmax.f32 %v989_v34, 0.0 }
 0x1bc   :  { %4524 = vst [vmem:[#allocation38_spill] sm:$0xff] %v3480_v31  ;;  %v856_v31 = vsub.f32 %v4538_v39, %v3214_v3  ;;  %v4542_v39 = vld [vmem:[#allocation21_spill] sm:$0xff]  ;;  %v993_v24 = vadd.f32 %v3254_v62, %v926_v60  ;;  %v997_v34 = vadd.f32 %v3254_v62, %v930_v8 }
 0x1bd   :  { %4525 = vst [vmem:[#allocation39_spill] sm:$0xff] %v3483_v37  ;;  %v925_v37 = vmul.f32 %v3256_v2, %v848_v22  ;;  %v4541_v22 = vld [vmem:[#allocation20_spill] sm:$0xff]  ;;  %v860_v50 = vsub.f32 %v4542_v39, %v3214_v3  ;;  %v931_v39 = vmul.f32 %v3256_v2, %v854_v27  ;;  %v934_v16 = vmul.f32 %v3256_v2, %v857_v63 }
 0x1be   :  { %v859_v29 = vsub.f32 %v4541_v22, %v3214_v3  ;;  %v863_v22 = vsub.f32 %v4545_v56, %v3214_v3  ;;  %v933_v56 = vmul.f32 %v3256_v2, %v856_v31  ;;  %v996_v27 = vadd.f32 %v3254_v62, %v929_v51  ;;  %1326 = vst.msk [vmem:[#allocation2 + $0x1b0] sm:$0xff] %vm508_vm2, %v1116_v5 }
 0x1bf   :  { %v992_v58 = vadd.f32 %v3254_v62, %v925_v37  ;;  %v995_v37 = vadd.f32 %v3254_v62, %v928_v55  ;;  %v998_v7 = vadd.f32 %v3254_v62, %v931_v39  ;;  %v1057_v9 = vmax.f32 %v993_v24, 0.0  ;;  %1328 = vst.msk [vmem:[#allocation2 + $0x1d0] sm:$0xff] %vm508_vm2, %v1118_v0 }
 0x1c0   :  { %v1058_v3 = vmax.f32 %v994_v12, 0.0  ;;  %v1117_v15 = vmin.f32 %v1053_v33, 6.0  ;;  %v936_v55 = vmul.f32 %v3256_v2, %v859_v29  ;;  %v999_v31 = vadd.f32 %v3254_v62, %v932_v6 }
 0x1c1   :  { %v1056_v60 = vmax.f32 %v992_v58, 0.0  ;;  %v1059_v42 = vmax.f32 %v995_v37, 0.0  ;;  %v1119_v63 = vmin.f32 %v1055_v28, 6.0  ;;  %v937_v51 = vmul.f32 %v3256_v2, %v860_v50 }
 0x1c2   :  { %v1000_v58 = vadd.f32 %v3254_v62, %v933_v56  ;;  %v1060_v32 = vmax.f32 %v996_v27, 0.0  ;;  %v938_v8 = vmul.f32 %v3256_v2, %v861_v38  ;;  %v1001_v44 = vadd.f32 %v3254_v62, %v934_v16  ;;  %1327 = vst.msk [vmem:[#allocation2 + $0x1c0] sm:$0xff] %vm508_vm2, %v1117_v15 }
 0x1c3   :  { %v1120_v17 = vmin.f32 %v1056_v60, 6.0  ;;  %v1061_v39 = vmax.f32 %v997_v34, 0.0  ;;  %v1121_v10 = vmin.f32 %v1057_v9, 6.0  ;;  %v939_v29 = vmul.f32 %v3256_v2, %v862_v52  ;;  %1329 = vst.msk [vmem:[#allocation2 + $0x1e0] sm:$0xff] %vm508_vm2, %v1119_v63 }
 0x1c4   :  { %v1002_v28 = vadd.f32 %v3254_v62, %v935_v18  ;;  %v1062_v24 = vmax.f32 %v998_v7, 0.0  ;;  %v1122_v50 = vmin.f32 %v1058_v3, 6.0  ;;  %v940_v12 = vmul.f32 %v3256_v2, %v863_v22 }
 0x1c5   :  { %v1003_v33 = vadd.f32 %v3254_v62, %v936_v55  ;;  %v1063_v6 = vmax.f32 %v999_v31, 0.0  ;;  %v1123_v38 = vmin.f32 %v1059_v42, 6.0  ;;  %v941_v37 = vmul.f32 %v3256_v2, %v864_v47  ;;  %1330 = vst.msk [vmem:[#allocation2 + $0x1f0] sm:$0xff] %vm508_vm2, %v1120_v17 }
 0x1c6   :  { %v1004_v56 = vadd.f32 %v3254_v62, %v937_v51  ;;  %v1064_v16 = vmax.f32 %v1000_v58, 0.0  ;;  %v1124_v52 = vmin.f32 %v1060_v32, 6.0  ;;  %v1005_v27 = vadd.f32 %v3254_v62, %v938_v8  ;;  %1331 = vst.msk [vmem:[#allocation2 + $0x200] sm:$0xff] %vm508_vm2, %v1121_v10 }
 0x1c7   :  { %v1065_v60 = vmax.f32 %v1001_v44, 0.0  ;;  %v1125_v0 = vmin.f32 %v1061_v39, 6.0  ;;  %v1006_v22 = vadd.f32 %v3254_v62, %v939_v29  ;;  %v1066_v18 = vmax.f32 %v1002_v28, 0.0  ;;  %1332 = vst.msk [vmem:[#allocation2 + $0x210] sm:$0xff] %vm508_vm2, %v1122_v50 }
 0x1c8   :  { %v1126_v34 = vmin.f32 %v1062_v24, 6.0  ;;  %v1007_v2 = vadd.f32 %v3254_v62, %v940_v12  ;;  %v1067_v47 = vmax.f32 %v1003_v33, 0.0  ;;  %v1127_v7 = vmin.f32 %v1063_v6, 6.0  ;;  %1333 = vst.msk [vmem:[#allocation2 + $0x220] sm:$0xff] %vm508_vm2, %v1123_v38 }
 0x1c9   :  { %v1008_v17 = vadd.f32 %v3254_v62, %v941_v37  ;;  %v1068_v9 = vmax.f32 %v1004_v56, 0.0  ;;  %v1128_v3 = vmin.f32 %v1064_v16, 6.0  ;;  %1335 = vst.msk [vmem:[#allocation2 + $0x121] sm:$0xff] %vm508_vm2, %v1124_v52  ;;  %v1069_v5 = vmax.f32 %v1005_v27, 0.0 }
 0x1ca   :  { %v1129_v15 = vmin.f32 %v1065_v60, 6.0  ;;  %1336 = vst.msk [vmem:[#allocation2 + $0x131] sm:$0xff] %vm508_vm2, %v1125_v0  ;;  %v1070_v55 = vmax.f32 %v1006_v22, 0.0  ;;  %v1130_v31 = vmin.f32 %v1066_v18, 6.0  ;;  %v1071_v42 = vmax.f32 %v1007_v2, 0.0 }
 0x1cb   :  { %1337 = vst.msk [vmem:[#allocation2 + $0x141] sm:$0xff] %vm508_vm2, %v1126_v34  ;;  %v1131_v63 = vmin.f32 %v1067_v47, 6.0  ;;  %v1072_v51 = vmax.f32 %v1008_v17, 0.0  ;;  %v1132_v58 = vmin.f32 %v1068_v9, 6.0  ;;  %v1073_v62 = vmax.f32 %v3360_v59, 0.0 }
 0x1cc   :  { %1338 = vst.msk [vmem:[#allocation2 + $0x151] sm:$0xff] %vm508_vm2, %v1127_v7  ;;  %v1133_v32 = vmin.f32 %v1069_v5, 6.0  ;;  %v1074_v8 = vmax.f32 %v3363_v19, 0.0  ;;  %v1134_v44 = vmin.f32 %v1070_v55, 6.0  ;;  %v1075_v39 = vmax.f32 %v3366_v14, 0.0 }
 0x1cd   :  { %1339 = vst.msk [vmem:[#allocation2 + $0x161] sm:$0xff] %vm508_vm2, %v1128_v3  ;;  %v1135_v10 = vmin.f32 %v1071_v42, 6.0  ;;  %v1076_v29 = vmax.f32 %v3369_v20, 0.0  ;;  %v1136_v28 = vmin.f32 %v1072_v51, 6.0  ;;  %v1077_v59 = vmax.f32 %v3372_v23, 0.0 }
 0x1ce   :  { %1340 = vst.msk [vmem:[#allocation2 + $0x171] sm:$0xff] %vm508_vm2, %v1129_v15  ;;  %v1137_v24 = vmin.f32 %v1073_v62, 6.0  ;;  %v1078_v19 = vmax.f32 %v3375_v25, 0.0  ;;  %v1138_v50 = vmin.f32 %v1074_v8, 6.0  ;;  %v1079_v14 = vmax.f32 %v3378_v13, 0.0  ;;  %v1397_v13 = vld [vmem:[%s4409_s4] sm:$0xff] }
 0x1cf   :  { %1341 = vst.msk [vmem:[#allocation2 + $0x181] sm:$0xff] %vm508_vm2, %v1130_v31  ;;  %v1139_v12 = vmin.f32 %v1075_v39, 6.0  ;;  %v1080_v20 = vmax.f32 %v3381_v26, 0.0  ;;  %v1140_v33 = vmin.f32 %v1076_v29, 6.0  ;;  %v1081_v23 = vmax.f32 %v3384_v30, 0.0  ;;  %v4550_v29 = vld [vmem:[#allocation26_spill] sm:$0xff] }
 0x1d0   :  { %1342 = vst.msk [vmem:[#allocation2 + $0x191] sm:$0xff] %vm508_vm2, %v1131_v63  ;;  %v1141_v6 = vmin.f32 %v1077_v59, 6.0  ;;  %v1082_v25 = vmax.f32 %v3387_v36, 0.0  ;;  %v1142_v38 = vmin.f32 %v1078_v19, 6.0  ;;  %v1083_v37 = vmax.f32 %v3390_v11, 0.0  ;;  %v1399_v11 = vld [vmem:[#allocation2] sm:$0xff] }
 0x1d1   :  { %1344 = vst.msk [vmem:[#allocation2 + $0xa0] sm:$0xff] %vm508_vm2, %v1132_v58  ;;  %v1143_v26 = vmin.f32 %v1079_v14, 6.0  ;;  %v1084_v56 = vmax.f32 %v3393_v49, 0.0  ;;  %v1144_v30 = vmin.f32 %v1080_v20, 6.0  ;;  %v1085_v16 = vmax.f32 %v3396_v35, 0.0  ;;  %v1449_v35 = vld [vmem:[#allocation2 + $0x90] sm:$0xff] }
 0x1d2   :  { %1345 = vst.msk [vmem:[#allocation2 + $0xb0] sm:$0xff] %vm508_vm2, %v1133_v32  ;;  %v1145_v36 = vmin.f32 %v1081_v23, 6.0  ;;  %v3611_v52 = vperm.slane %v1397_v13, 0  ;;  %v1086_v27 = vmax.f32 %v3399_v41, 0.0  ;;  %v1146_v60 = vmin.f32 %v1082_v25, 6.0  ;;  %v4553_v19 = vld [vmem:[#allocation29_spill] sm:$0xff] }
 0x1d3   :  { %1346 = vst.msk [vmem:[#allocation2 + $0xc0] sm:$0xff] %vm508_vm2, %v1134_v44  ;;  %v3615_v0 = vperm.slane %v1397_v13, 1  ;;  %v1087_v49 = vmax.f32 %v3402_v43, 0.0  ;;  %v1147_v22 = vmin.f32 %v1083_v37, 6.0  ;;  %v3619_v18 = vperm.slane %v1397_v13, 4  ;;  %v4548_v44 = vld [vmem:[#allocation24_spill] sm:$0xff] }
 0x1d4   :  { %1347 = vst.msk [vmem:[#allocation2 + $0xd0] sm:$0xff] %vm508_vm2, %v1135_v10  ;;  %v1088_v34 = vmax.f32 %v3405_v1, 0.0  ;;  %v1148_v2 = vmin.f32 %v1084_v56, 6.0  ;;  %v3623_v41 = vperm.slane %v1397_v13, 2  ;;  %v3625_v47 = vperm.slane %v1397_v13, 6 }
 0x1d5   :  { %1348 = vst.msk [vmem:[#allocation2 + $0xe0] sm:$0xff] %vm508_vm2, %v1136_v28  ;;  %v1089_v7 = vmax.f32 %v3408_v54, 0.0  ;;  %v1149_v17 = vmin.f32 %v1085_v16, 6.0  ;;  %v3630_v43 = vmul.f32 %v3611_v52, %v1399_v11  ;;  %v3632_v9 = vperm.slane %v1397_v13, 3  ;;  %v4551_v28 = vld [vmem:[#allocation27_spill] sm:$0xff]  ;;  %v4562_v11 = vld [vmem:[#allocation38_spill] sm:$0xff] }
 0x1d6   :  { %1349 = vst.msk [vmem:[#allocation2 + $0xf0] sm:$0xff] %vm508_vm2, %v1137_v24  ;;  %v1090_v3 = vmax.f32 %v3411_v57, 0.0  ;;  %v1150_v1 = vmin.f32 %v1086_v27, 6.0  ;;  %v3637_v5 = vmul.f32 %v3615_v0, %v1449_v35  ;;  %v3639_v15 = vperm.slane %v1397_v13, 5  ;;  %v4561_v27 = vld [vmem:[#allocation37_spill] sm:$0xff] }
 0x1d7   :  { %1350 = vst.msk [vmem:[#allocation2 + $0x100] sm:$0xff] %vm508_vm2, %v1138_v50  ;;  %v1091_v54 = vmax.f32 %v3414_v61, 0.0  ;;  %v1151_v55 = vmin.f32 %v1087_v49, 6.0  ;;  %v3643_v31 = vperm.slane %v1397_v13, 7  ;;  %v1092_v42 = vmax.f32 %v3417_v45, 0.0  ;;  %v4554_v50 = vld [vmem:[#allocation30_spill] sm:$0xff] }
 0x1d8   :  { %1351 = vst.msk [vmem:[#allocation2 + $0x110] sm:$0xff] %vm508_vm2, %v1139_v12  ;;  %v1093_v63 = vmax.f32 %v3420_v4, 0.0  ;;  %v1152_v57 = vmin.f32 %v1088_v34, 6.0  ;;  %v1094_v51 = vmax.f32 %v3423_v53, 0.0  ;;  %v1095_v58 = vmax.f32 %v3426_v46, 0.0  ;;  %v4549_v4 = vld [vmem:[#allocation25_spill] sm:$0xff] }
 0x1d9   :  { %1353 = vst.msk [vmem:[#allocation2 + $0x11] sm:$0xff] %vm508_vm2, %v1140_v33  ;;  %v1096_v62 = vmax.f32 %v3429_v40, 0.0  ;;  %v1153_v32 = vmin.f32 %v1089_v7, 6.0  ;;  %v1097_v61 = vmax.f32 %v3432_v21, 0.0  ;;  %v1098_v8 = vmax.f32 %v3435_v48, 0.0  ;;  %v4552_v40 = vld [vmem:[#allocation28_spill] sm:$0xff] }
 0x1da   :  { %1354 = vst.msk [vmem:[#allocation2 + $0x21] sm:$0xff] %vm508_vm2, %v1141_v6  ;;  %v1099_v45 = vmax.f32 %v4548_v44, 0.0  ;;  %v1154_v39 = vmin.f32 %v1090_v3, 6.0  ;;  %v1100_v10 = vmax.f32 %v4549_v4, 0.0  ;;  %v1101_v53 = vmax.f32 %v4550_v29, 0.0  ;;  %v4555_v12 = vld [vmem:[#allocation31_spill] sm:$0xff] }
 0x1db   :  { %1355 = vst.msk [vmem:[#allocation2 + $0x31] sm:$0xff] %vm508_vm2, %v1142_v38  ;;  %v1102_v46 = vmax.f32 %v4551_v28, 0.0  ;;  %v1155_v59 = vmin.f32 %v1091_v54, 6.0  ;;  %v1103_v24 = vmax.f32 %v4552_v40, 0.0  ;;  %v1104_v21 = vmax.f32 %v4553_v19, 0.0  ;;  %v4556_v33 = vld [vmem:[#allocation32_spill] sm:$0xff] }
 0x1dc   :  { %1356 = vst.msk [vmem:[#allocation2 + $0x41] sm:$0xff] %vm508_vm2, %v1143_v26  ;;  %v1105_v48 = vmax.f32 %v4554_v50, 0.0  ;;  %v1156_v14 = vmin.f32 %v1092_v42, 6.0  ;;  %v1106_v20 = vmax.f32 %v4555_v12, 0.0  ;;  %v1107_v23 = vmax.f32 %v4556_v33, 0.0  ;;  %v4557_v6 = vld [vmem:[#allocation33_spill] sm:$0xff] }
 0x1dd   :  { %1357 = vst.msk [vmem:[#allocation2 + $0x51] sm:$0xff] %vm508_vm2, %v1144_v30  ;;  %v1108_v25 = vmax.f32 %v4557_v6, 0.0  ;;  %v1157_v38 = vmin.f32 %v1093_v63, 6.0  ;;  %v4558_v13 = vld [vmem:[#allocation34_spill] sm:$0xff]  ;;  %v4559_v26 = vld [vmem:[#allocation35_spill] sm:$0xff]  ;;  %v4560_v30 = vld [vmem:[#allocation36_spill] sm:$0xff] }
 0x1de   :  { %1358 = vst.msk [vmem:[#allocation2 + $0x61] sm:$0xff] %vm508_vm2, %v1145_v36  ;;  %v1109_v37 = vmax.f32 %v4558_v13, 0.0  ;;  %v1110_v56 = vmax.f32 %v4559_v26, 0.0  ;;  %v1111_v16 = vmax.f32 %v4560_v30, 0.0  ;;  %v1158_v36 = vmin.f32 %v1094_v51, 6.0  ;;  %v3710_v40 = vld [vmem:[#allocation2 + $0xc0] sm:$0xff] }
 0x1df   :  { %1359 = vst.msk [vmem:[#allocation2 + $0x71] sm:$0xff] %vm508_vm2, %v1146_v60  ;;  %v1112_v60 = vmax.f32 %v4561_v27, 0.0  ;;  %v1113_v49 = vmax.f32 %v4562_v11, 0.0  ;;  %v1159_v34 = vmin.f32 %v1095_v58, 6.0  ;;  %v1160_v7 = vmin.f32 %v1096_v62, 6.0  ;;  %v3722_v50 = vld [vmem:[#allocation2 + $0xf0] sm:$0xff] }
 0x1e0   :  { %1360 = vst.msk [vmem:[#allocation2 + $0x81] sm:$0xff] %vm508_vm2, %v1147_v22  ;;  %v4563_v22 = vld [vmem:[#allocation39_spill] sm:$0xff]  ;;  %v1162_v3 = vmin.f32 %v1098_v8, 6.0  ;;  %v1164_v54 = vmin.f32 %v1100_v10, 6.0  ;;  %v1166_v42 = vmin.f32 %v1102_v46, 6.0  ;;  %v3678_v63 = vld [vmem:[#allocation2 + $0x10] sm:$0xff]  ;;  %v1482_v10 = vadd.f32 %v3637_v5, %v3630_v43 }
 0x1e1   :  { %4547 = vst [vmem:[#allocation3_spill] sm:$0xff] %v3643_v31  ;;  %v1114_v35 = vmax.f32 %v4563_v22, 0.0  ;;  %v1167_v51 = vmin.f32 %v1103_v24, 6.0  ;;  %v3683_v58 = vld [vmem:[#allocation2 + $0x20] sm:$0xff]  ;;  %v3687_v8 = vmin.f32 %v1105_v48, 6.0  ;;  %v3689_v44 = vmin.f32 %v1106_v20, 6.0 }
 0x1e2   :  { %1362 = vst.msk [vmem:[#allocation2 + $0x3f0] sm:$0xff] %vm508_vm2, %v1148_v2  ;;  %v1498_v2 = vld [vmem:[#allocation2 + $0x1] sm:$0xff]  ;;  %v3685_v62 = vld [vmem:[#allocation2 + $0x30] sm:$0xff]  ;;  %v3703_v28 = vmin.f32 %v1108_v25, 6.0  ;;  %v3712_v24 = vmin.f32 %v1109_v37, 6.0  ;;  %v3714_v19 = vmin.f32 %v1110_v56, 6.0  ;;  %v1417_v12 = vmul.f32 %v3611_v52, %v3678_v63 }
 0x1e3   :  { %1363 = vst.msk [vmem:[#allocation2 + $0x400] sm:$0xff] %vm508_vm2, %v1149_v17  ;;  %v1161_v17 = vmin.f32 %v1097_v61, 6.0  ;;  %v1457_v61 = vld [vmem:[#allocation2 + $0x2d0] sm:$0xff]  ;;  %v1515_v29 = vmul.f32 %v3623_v41, %v1498_v2  ;;  %v3706_v46 = vld [vmem:[#allocation2 + $0xa0] sm:$0xff]  ;;  %v1418_v20 = vmul.f32 %v3611_v52, %v3683_v58  ;;  %v1419_v33 = vmul.f32 %v3611_v52, %v3685_v62 }
 0x1e4   :  { %1364 = vst.msk [vmem:[#allocation2 + $0x410] sm:$0xff] %vm508_vm2, %v1150_v1  ;;  %v1163_v1 = vmin.f32 %v1099_v45, 6.0  ;;  %v3692_v45 = vld [vmem:[#allocation2 + $0x40] sm:$0xff]  ;;  %v3718_v5 = vld [vmem:[#allocation2 + $0xd0] sm:$0xff]  ;;  %v1474_v48 = vmul.f32 %v3615_v0, %v1457_v61  ;;  %v1469_v37 = vmul.f32 %v3615_v0, %v3710_v40  ;;  %v1472_v27 = vmul.f32 %v3615_v0, %v3722_v50 }
 0x1e5   :  { %1365 = vst.msk [vmem:[#allocation2 + $0x420] sm:$0xff] %vm508_vm2, %v1151_v55  ;;  %v1165_v55 = vmin.f32 %v1101_v53, 6.0  ;;  %v3696_v4 = vld [vmem:[#allocation2 + $0x60] sm:$0xff]  ;;  %v3701_v53 = vmin.f32 %v1107_v23, 6.0  ;;  %v1420_v23 = vmul.f32 %v3611_v52, %v3692_v45  ;;  %v1470_v56 = vmul.f32 %v3615_v0, %v3718_v5 }
 0x1e6   :  { %1366 = vst.msk [vmem:[#allocation2 + $0x430] sm:$0xff] %vm508_vm2, %v1152_v57  ;;  %v1407_v57 = vld [vmem:[#allocation2 + $0x240] sm:$0xff]  ;;  %v1422_v26 = vmul.f32 %v3611_v52, %v3696_v4  ;;  %v3760_v2 = vmin.f32 %v1112_v60, 6.0  ;;  %v3773_v30 = vmin.f32 %v1113_v49, 6.0  ;;  %v3787_v49 = vld [vmem:[#allocation2 + $0x51] sm:$0xff] }
 0x1e7   :  { %1367 = vst.msk [vmem:[#allocation2 + $0x440] sm:$0xff] %vm508_vm2, %v1153_v32  ;;  %v3680_v32 = vmin.f32 %v1104_v21, 6.0  ;;  %v1424_v43 = vmul.f32 %v3611_v52, %v1407_v57  ;;  %v3720_v21 = vld [vmem:[#allocation2 + $0xe0] sm:$0xff]  ;;  %v3791_v22 = vld [vmem:[#allocation2 + $0x71] sm:$0xff] }
 0x1e8   :  { %1368 = vst.msk [vmem:[#allocation2 + $0x450] sm:$0xff] %vm508_vm2, %v1154_v39  ;;  %v3694_v39 = vld [vmem:[#allocation2 + $0x50] sm:$0xff]  ;;  %v3736_v6 = vld [vmem:[#allocation2 + $0x100] sm:$0xff] }
 0x1e9   :  { %1369 = vst.msk [vmem:[#allocation2 + $0x460] sm:$0xff] %vm508_vm2, %v1155_v59  ;;  %v3708_v59 = vld [vmem:[#allocation2 + $0xb0] sm:$0xff]  ;;  %v1421_v25 = vmul.f32 %v3611_v52, %v3694_v39  ;;  %v3780_v60 = vld [vmem:[#allocation2 + $0x21] sm:$0xff]  ;;  %v1490_v11 = vadd.f32 %v1474_v48, %v1424_v43 }
 0x1ea   :  { %1371 = vst.msk [vmem:[#allocation2 + $0x361] sm:$0xff] %vm508_vm2, %v1156_v14  ;;  %v3726_v14 = vld [vmem:[#allocation2 + $0x70] sm:$0xff]  ;;  %v1468_v13 = vmul.f32 %v3615_v0, %v3708_v59  ;;  %v3784_v57 = vld [vmem:[#allocation2 + $0x41] sm:$0xff]  ;;  %v1517_v48 = vmul.f32 %v3623_v41, %v3780_v60 }
 0x1eb   :  { %1372 = vst.msk [vmem:[#allocation2 + $0x371] sm:$0xff] %vm508_vm2, %v1157_v38  ;;  %v1467_v38 = vmul.f32 %v3615_v0, %v3706_v46 }
 0x1ec   :  { %1373 = vst.msk [vmem:[#allocation2 + $0x381] sm:$0xff] %vm508_vm2, %v1158_v36  ;;  %v1471_v36 = vmul.f32 %v3615_v0, %v3720_v21 }
 0x1ed   :  { %1374 = vst.msk [vmem:[#allocation2 + $0x391] sm:$0xff] %vm508_vm2, %v1159_v34  ;;  %v3758_v34 = vmin.f32 %v1111_v16, 6.0  ;;  %v3777_v16 = vmin.f32 %v1114_v35, 6.0  ;;  %v1483_v61 = vadd.f32 %v1467_v38, %v1417_v12  ;;  %v1486_v35 = vadd.f32 %v1470_v56, %v1420_v23  ;;  %v1550_v38 = vld [vmem:[#allocation2 + $0x150] sm:$0xff]  ;;  %v1551_v56 = vld [vmem:[#allocation2 + $0x160] sm:$0xff] }
 0x1ee   :  { %4564 = vst [vmem:[#allocation4_spill] sm:$0xff] %v3694_v39  ;;  %v1522_v23 = vmul.f32 %v3623_v41, %v3791_v22 }
 0x1ef   :  { %4565 = vst [vmem:[#allocation5_spill] sm:$0xff] %v3696_v4 }
 0x1f0   :  { %1375 = vst.msk [vmem:[#allocation2 + $0x3a1] sm:$0xff] %vm508_vm2, %v1160_v7  ;;  %v1423_v7 = vmul.f32 %v3611_v52, %v3726_v14 }
 0x1f1   :  { %4566 = vst [vmem:[#allocation6_spill] sm:$0xff] %v3706_v46 }
 0x1f2   :  { %4567 = vst [vmem:[#allocation7_spill] sm:$0xff] %v3708_v59 }
 0x1f3   :  { %4568 = vst [vmem:[#allocation8_spill] sm:$0xff] %v3710_v40 }
 0x1f4   :  { %1376 = vst.msk [vmem:[#allocation2 + $0x3b1] sm:$0xff] %vm508_vm2, %v1161_v17  ;;  %v1473_v17 = vmul.f32 %v3615_v0, %v3736_v6 }
 0x1f5   :  { %4569 = vst [vmem:[#allocation9_spill] sm:$0xff] %v3718_v5  ;;  %v1547_v5 = vld [vmem:[#allocation2 + $0x120] sm:$0xff] }
 0x1f6   :  { %4570 = vst [vmem:[#allocation10_spill] sm:$0xff] %v3720_v21 }
 0x1f7   :  { %4571 = vst [vmem:[#allocation11_spill] sm:$0xff] %v3722_v50  ;;  %v1488_v50 = vadd.f32 %v1472_v27, %v1422_v26  ;;  %v1553_v27 = vld [vmem:[#allocation2 + $0x180] sm:$0xff] }
 0x1f8   :  { %1377 = vst.msk [vmem:[#allocation2 + $0x3c1] sm:$0xff] %vm508_vm2, %v1162_v3  ;;  %v3767_v3 = vld [vmem:[#allocation2 + $0x11] sm:$0xff] }
 0x1f9   :  { %4572 = vst [vmem:[#allocation12_spill] sm:$0xff] %v3726_v14  ;;  %v1516_v43 = vmul.f32 %v3623_v41, %v3767_v3 }
 0x1fa   :  { %4573 = vst [vmem:[#allocation14_spill] sm:$0xff] %v3736_v6  ;;  %v3789_v6 = vld [vmem:[#allocation2 + $0x61] sm:$0xff] }
 0x1fb   :  { %1378 = vst.msk [vmem:[#allocation2 + $0x3d1] sm:$0xff] %vm508_vm2, %v1163_v1  ;;  %v1506_v1 = vld [vmem:[#allocation2 + $0x241] sm:$0xff] }
 0x1fc   :  { %1380 = vst.msk [vmem:[#allocation2 + $0x2e0] sm:$0xff] %vm508_vm2, %v1164_v54  ;;  %v3769_v54 = vadd.f32 %v1515_v29, %v1482_v10  ;;  %v1484_v10 = vadd.f32 %v1468_v13, %v1418_v20  ;;  %v1485_v29 = vadd.f32 %v1469_v37, %v1419_v33  ;;  %v1523_v21 = vmul.f32 %v3623_v41, %v1506_v1  ;;  %v1555_v13 = vld [vmem:[#allocation2 + $0x360] sm:$0xff] }
 0x1fd   :  { %1381 = vst.msk [vmem:[#allocation2 + $0x2f0] sm:$0xff] %vm508_vm2, %v1165_v55  ;;  %v3782_v55 = vld [vmem:[#allocation2 + $0x31] sm:$0xff]  ;;  %v1519_v20 = vmul.f32 %v3623_v41, %v3784_v57  ;;  %v1521_v33 = vmul.f32 %v3623_v41, %v3789_v6  ;;  %v1532_v37 = vadd.f32 %v1516_v43, %v1483_v61  ;;  %v1572_v43 = vmul.f32 %v3632_v9, %v1555_v13 }
 0x1fe   :  { %4574 = vst [vmem:[#allocation16_spill] sm:$0xff] %v3767_v3  ;;  %v1518_v12 = vmul.f32 %v3623_v41, %v3782_v55  ;;  %v1556_v61 = vld [vmem:[#allocation2 + $0x370] sm:$0xff]  ;;  %v1611_v3 = vld [vmem:[#allocation2 + $0x460] sm:$0xff] }
 0x1ff   :  { %1382 = vst.msk [vmem:[#allocation2 + $0x300] sm:$0xff] %vm508_vm2, %v1166_v42  ;;  %v1487_v42 = vadd.f32 %v1471_v36, %v1421_v25  ;;  %v1549_v25 = vld [vmem:[#allocation2 + $0x140] sm:$0xff]  ;;  %v1552_v36 = vld [vmem:[#allocation2 + $0x170] sm:$0xff]  ;;  %v3843_v13 = vmul.f32 %v3632_v9, %v1556_v61 }
 0x200   :  { %4575 = vst [vmem:[#allocation17_spill] sm:$0xff] %v3780_v60  ;;  %v1534_v26 = vadd.f32 %v1518_v12, %v1485_v29  ;;  %v1566_v29 = vmul.f32 %v3632_v9, %v1549_v25  ;;  %v1598_v12 = vld [vmem:[#allocation2 + $0x1d0] sm:$0xff]  ;;  %v1603_v25 = vld [vmem:[#allocation2 + $0x220] sm:$0xff] }
 0x201   :  { %4576 = vst [vmem:[#allocation18_spill] sm:$0xff] %v3782_v55 }
 0x202   :  { %4577 = vst [vmem:[#allocation19_spill] sm:$0xff] %v3784_v57 }
 0x203   :  { %1383 = vst.msk [vmem:[#allocation2 + $0x310] sm:$0xff] %vm508_vm2, %v1167_v51  ;;  %v1489_v51 = vadd.f32 %v1473_v17, %v1423_v7  ;;  %v1564_v7 = vmul.f32 %v3632_v9, %v1547_v5  ;;  %v1535_v17 = vadd.f32 %v1519_v20, %v1486_v35  ;;  %v1596_v5 = vld [vmem:[#allocation2 + $0x1b0] sm:$0xff]  ;;  %v1599_v35 = vld [vmem:[#allocation2 + $0x1e0] sm:$0xff] }
 0x204   :  { %4578 = vst [vmem:[#allocation20_spill] sm:$0xff] %v3787_v49 }
 0x205   :  { %4579 = vst [vmem:[#allocation21_spill] sm:$0xff] %v3789_v6  ;;  %v1539_v6 = vadd.f32 %v1523_v21, %v1490_v11  ;;  %v1567_v21 = vmul.f32 %v3632_v9, %v1550_v38  ;;  %v1570_v11 = vmul.f32 %v3632_v9, %v1553_v27  ;;  %v1559_v38 = vld [vmem:[#allocation2 + $0x3a0] sm:$0xff] }
 0x206   :  { %4580 = vst [vmem:[#allocation22_spill] sm:$0xff] %v3791_v22  ;;  %v1537_v22 = vadd.f32 %v1521_v33, %v1488_v50  ;;  %v1568_v50 = vmul.f32 %v3632_v9, %v1551_v56 }
 0x207   :  { %1384 = vst.msk [vmem:[#allocation2 + $0x320] sm:$0xff] %vm508_vm2, %v3680_v32  ;;  %v1548_v32 = vld [vmem:[#allocation2 + $0x130] sm:$0xff] }
 0x208   :  { %1385 = vst.msk [vmem:[#allocation2 + $0x330] sm:$0xff] %vm508_vm2, %v3687_v8  ;;  %v1520_v8 = vmul.f32 %v3623_v41, %v3787_v49  ;;  %v1554_v49 = vld [vmem:[#allocation2 + $0x190] sm:$0xff]  ;;  %v3847_v56 = vadd.f32 %v1568_v50, %v1535_v17  ;;  %v1607_v17 = vld [vmem:[#allocation2 + $0x420] sm:$0xff] }
 0x209   :  { %1386 = vst.msk [vmem:[#allocation2 + $0x340] sm:$0xff] %vm508_vm2, %v3689_v44  ;;  %v1533_v44 = vadd.f32 %v1517_v48, %v1484_v10  ;;  %v1565_v10 = vmul.f32 %v3632_v9, %v1548_v32  ;;  %v1597_v48 = vld [vmem:[#allocation2 + $0x1c0] sm:$0xff]  ;;  %v1558_v32 = vld [vmem:[#allocation2 + $0x390] sm:$0xff]  ;;  %v1571_v20 = vmul.f32 %v3632_v9, %v1554_v49 }
 0x20a   :  { %1387 = vst.msk [vmem:[#allocation2 + $0x350] sm:$0xff] %vm508_vm2, %v3701_v53  ;;  %v1536_v1 = vadd.f32 %v1520_v8, %v1487_v42  ;;  %v1538_v53 = vadd.f32 %v1522_v23, %v1489_v51  ;;  %v1600_v42 = vld [vmem:[#allocation2 + $0x1f0] sm:$0xff]  ;;  %v1601_v51 = vld [vmem:[#allocation2 + $0x200] sm:$0xff]  ;;  %v3865_v61 = vmul.f32 %v3632_v9, %v1558_v32 }
 0x20b   :  { %1389 = vst.msk [vmem:[#allocation2 + $0x251] sm:$0xff] %vm508_vm2, %v3703_v28  ;;  %v1557_v28 = vld [vmem:[#allocation2 + $0x380] sm:$0xff]  ;;  %v3836_v8 = vadd.f32 %v1565_v10, %v1532_v37  ;;  %v3838_v33 = vadd.f32 %v1566_v29, %v1533_v44  ;;  %v1602_v23 = vld [vmem:[#allocation2 + $0x210] sm:$0xff]  ;;  %v1613_v29 = vmul.f32 %v3619_v18, %v1596_v5  ;;  %v1617_v50 = vmul.f32 %v3619_v18, %v1600_v42 }
 0x20c   :  { %1390 = vst.msk [vmem:[#allocation2 + $0x261] sm:$0xff] %vm508_vm2, %v3712_v24  ;;  %v1569_v24 = vmul.f32 %v3632_v9, %v1552_v36  ;;  %v1605_v37 = vld [vmem:[#allocation2 + $0x400] sm:$0xff]  ;;  %v1560_v44 = vld [vmem:[#allocation2 + $0x3b0] sm:$0xff]  ;;  %v3854_v36 = vmul.f32 %v3632_v9, %v1557_v28  ;;  %v3858_v27 = vadd.f32 %v1571_v20, %v1538_v53  ;;  %v1615_v53 = vmul.f32 %v3619_v18, %v1598_v12 }
 0x20d   :  { %1391 = vst.msk [vmem:[#allocation2 + $0x271] sm:$0xff] %vm508_vm2, %v3714_v19  ;;  %v3834_v19 = vadd.f32 %v1564_v7, %v3769_v54  ;;  %v1604_v54 = vld [vmem:[#allocation2 + $0x3f0] sm:$0xff]  ;;  %v3860_v7 = vadd.f32 %v1572_v43, %v1539_v6  ;;  %v1609_v10 = vld [vmem:[#allocation2 + $0x440] sm:$0xff]  ;;  %v3873_v43 = vmul.f32 %v3632_v9, %v1559_v38  ;;  %v3885_v12 = vmul.f32 %v3632_v9, %v1560_v44 }
 0x20e   :  { %1392 = vst.msk [vmem:[#allocation2 + $0x281] sm:$0xff] %vm508_vm2, %v3758_v34  ;;  %v3845_v34 = vadd.f32 %v1567_v21, %v1534_v26  ;;  %v3849_v49 = vadd.f32 %v1569_v24, %v1536_v1  ;;  %v1606_v26 = vld [vmem:[#allocation2 + $0x410] sm:$0xff]  ;;  %v1561_v1 = vld [vmem:[#allocation2 + $0x3c0] sm:$0xff]  ;;  %v1618_v24 = vmul.f32 %v3619_v18, %v1601_v51  ;;  %v1619_v32 = vmul.f32 %v3619_v18, %v1602_v23 }
 0x20f   :  { %1393 = vst.msk [vmem:[#allocation2 + $0x291] sm:$0xff] %vm508_vm2, %v3760_v2  ;;  %v3856_v2 = vadd.f32 %v1570_v11, %v1537_v22  ;;  %v1614_v22 = vmul.f32 %v3619_v18, %v1597_v48  ;;  %v3870_v28 = vld [vmem:[#allocation2 + $0x2e0] sm:$0xff]  ;;  %v1562_v6 = vld [vmem:[#allocation2 + $0x3d0] sm:$0xff]  ;;  %v3889_v20 = vmul.f32 %v3619_v18, %v1603_v25  ;;  %v3901_v57 = vmul.f32 %v3632_v9, %v1561_v1 }
 0x210   :  { %1394 = vst.msk [vmem:[#allocation2 + $0x2a1] sm:$0xff] %vm508_vm2, %v3773_v30  ;;  %v1608_v30 = vld [vmem:[#allocation2 + $0x430] sm:$0xff]  ;;  %v3882_v48 = vld [vmem:[#allocation2 + $0x300] sm:$0xff]  ;;  %v3904_v44 = vmul.f32 %v3619_v18, %v1605_v37  ;;  %v3907_v23 = vmul.f32 %v3619_v18, %v1606_v26  ;;  %v3910_v25 = vmul.f32 %v3619_v18, %v1607_v17  ;;  %v3917_v60 = vmul.f32 %v3632_v9, %v1562_v6 }
 0x211   :  { %1395 = vst.msk [vmem:[#allocation2 + $0x2b1] sm:$0xff] %vm508_vm2, %v3777_v16  ;;  %v1610_v21 = vld [vmem:[#allocation2 + $0x450] sm:$0xff]  ;;  %v1616_v16 = vmul.f32 %v3619_v18, %v1599_v35  ;;  %v3892_v35 = vmul.f32 %v3619_v18, %v1604_v54  ;;  %v3914_v55 = vld [vmem:[#allocation2 + $0x320] sm:$0xff]  ;;  %v3920_v1 = vmul.f32 %v3619_v18, %v1608_v30  ;;  %v3923_v37 = vmul.f32 %v3619_v18, %v1609_v10 }
 0x212   :  { %4581 = vst [vmem:[#allocation23_spill] sm:$0xff] %v3870_v28  ;;  %v3878_v11 = vld [vmem:[#allocation2 + $0x250] sm:$0xff]  ;;  %v3926_v26 = vmul.f32 %v3619_v18, %v1610_v21  ;;  %v1475_v9 = vmul.f32 %v3615_v0, %v3870_v28  ;;  %v1477_v10 = vmul.f32 %v3615_v0, %v3882_v48  ;;  %v1479_v14 = vmul.f32 %v3615_v0, %v3914_v55 }
 0x213   :  { %4582 = vst [vmem:[#allocation13_spill] sm:$0xff] %v3878_v11  ;;  %v3880_v5 = vld [vmem:[#allocation2 + $0x2f0] sm:$0xff]  ;;  %v3894_v42 = vld [vmem:[#allocation2 + $0x260] sm:$0xff]  ;;  %v1425_v17 = vmul.f32 %v3611_v52, %v3878_v11  ;;  %v3971_v39 = vadd.f32 %v1614_v22, %v3836_v8 }
 0x214   :  { %4583 = vst [vmem:[#allocation15_spill] sm:$0xff] %v3880_v5  ;;  %v3896_v51 = vld [vmem:[#allocation2 + $0x270] sm:$0xff]  ;;  %v1476_v30 = vmul.f32 %v3615_v0, %v3880_v5  ;;  %v1426_v21 = vmul.f32 %v3611_v52, %v3894_v42  ;;  %v3948_v11 = vld [vmem:[#allocation2 + $0x340] sm:$0xff] }
 0x215   :  { %4584 = vst [vmem:[#allocation24_spill] sm:$0xff] %v3882_v48  ;;  %v3898_v38 = vld [vmem:[#allocation2 + $0x310] sm:$0xff]  ;;  %v3912_v54 = vld [vmem:[#allocation2 + $0x280] sm:$0xff]  ;;  %v1427_v31 = vmul.f32 %v3611_v52, %v3896_v51 }
 0x216   :  { %4585 = vst [vmem:[#allocation25_spill] sm:$0xff] %v3894_v42  ;;  %v3928_v40 = vld [vmem:[#allocation2 + $0x290] sm:$0xff]  ;;  %v1428_v46 = vmul.f32 %v3611_v52, %v3912_v54  ;;  %v1478_v28 = vmul.f32 %v3615_v0, %v3898_v38  ;;  %v3959_v42 = vmul.f32 %v3619_v18, %v1611_v3  ;;  %v1481_v3 = vmul.f32 %v3615_v0, %v3948_v11 }
 0x217   :  { %4586 = vst [vmem:[#allocation26_spill] sm:$0xff] %v3896_v51  ;;  %v3932_v59 = vld [vmem:[#allocation2 + $0x330] sm:$0xff]  ;;  %v3940_v6 = vld [vmem:[#allocation2 + $0x2a0] sm:$0xff]  ;;  %v1429_v48 = vmul.f32 %v3611_v52, %v3928_v40  ;;  %v3962_v51 = vadd.f32 %v1613_v29, %v3834_v19  ;;  %v1491_v19 = vadd.f32 %v1475_v9, %v1425_v17  ;;  %v1492_v8 = vadd.f32 %v1476_v30, %v1426_v21 }
 0x218   :  { %4587 = vst [vmem:[#allocation27_spill] sm:$0xff] %v3898_v38  ;;  %v3952_v5 = vld [vmem:[#allocation2 + $0x2b0] sm:$0xff]  ;;  %v1480_v38 = vmul.f32 %v3615_v0, %v3932_v59  ;;  %v3980_v29 = vld [vmem:[#allocation2 + $0x261] sm:$0xff]  ;;  %v1493_v22 = vadd.f32 %v1477_v10, %v1427_v31  ;;  %v3999_v9 = vadd.f32 %v1618_v24, %v3849_v49 }
 0x219   :  { %4588 = vst [vmem:[#allocation28_spill] sm:$0xff] %v3912_v54  ;;  %v1430_v54 = vmul.f32 %v3611_v52, %v3940_v6  ;;  %v3968_v4 = vld [vmem:[#allocation2 + $0x251] sm:$0xff]  ;;  %v1431_v18 = vmul.f32 %v3611_v52, %v3952_v5  ;;  %v3992_v52 = vadd.f32 %v1617_v50, %v3847_v56  ;;  %v3994_v0 = vld [vmem:[#allocation2 + $0x2a1] sm:$0xff] }
 0x21a   :  { %4589 = vst [vmem:[#allocation29_spill] sm:$0xff] %v3914_v55  ;;  %v3982_v55 = vld [vmem:[#allocation2 + $0x271] sm:$0xff]  ;;  %v1524_v17 = vmul.f32 %v3623_v41, %v3968_v4 }
 0x21b   :  { %4590 = vst [vmem:[#allocation30_spill] sm:$0xff] %v3928_v40  ;;  %v3974_v40 = vadd.f32 %v1615_v53, %v3838_v33  ;;  %v1494_v33 = vadd.f32 %v1478_v28, %v1428_v46  ;;  %v3989_v53 = vld [vmem:[#allocation2 + $0x291] sm:$0xff]  ;;  %v1525_v46 = vmul.f32 %v3623_v41, %v3980_v29  ;;  %v1645_v28 = vld [vmem:[#allocation2 + $0x121] sm:$0xff]  ;;  %v1497_v50 = vadd.f32 %v1481_v3, %v1431_v18 }
 0x21c   :  { %4591 = vst [vmem:[#allocation31_spill] sm:$0xff] %v3932_v59  ;;  %v3984_v59 = vld [vmem:[#allocation2 + $0x281] sm:$0xff]  ;;  %v4004_v31 = vld [vmem:[#allocation2 + $0x2b1] sm:$0xff]  ;;  %v1528_v49 = vmul.f32 %v3623_v41, %v3989_v53  ;;  %v1540_v24 = vadd.f32 %v1524_v17, %v1491_v19  ;;  %v1637_v19 = vadd.f32 %v3892_v35, %v3860_v7 }
 0x21d   :  { %4592 = vst [vmem:[#allocation32_spill] sm:$0xff] %v3940_v6  ;;  %v3987_v6 = vadd.f32 %v1616_v16, %v3845_v34  ;;  %v4002_v34 = vadd.f32 %v1619_v32, %v3856_v2  ;;  %v1496_v16 = vadd.f32 %v1480_v38, %v1430_v54  ;;  %v1527_v56 = vmul.f32 %v3623_v41, %v3984_v59  ;;  %v1647_v32 = vld [vmem:[#allocation2 + $0x141] sm:$0xff]  ;;  %v1648_v38 = vld [vmem:[#allocation2 + $0x151] sm:$0xff] }
 0x21e   :  { %4593 = vst [vmem:[#allocation33_spill] sm:$0xff] %v3952_v5  ;;  %v1495_v5 = vadd.f32 %v1479_v14, %v1429_v48  ;;  %v1526_v14 = vmul.f32 %v3623_v41, %v3982_v55  ;;  %v1636_v2 = vadd.f32 %v3889_v20, %v3858_v27  ;;  %v1646_v48 = vld [vmem:[#allocation2 + $0x131] sm:$0xff]  ;;  %v1529_v54 = vmul.f32 %v3623_v41, %v3994_v0 }
 0x21f   :  { %4594 = vst [vmem:[#allocation34_spill] sm:$0xff] %v3968_v4  ;;  %v1541_v30 = vadd.f32 %v1525_v46, %v1492_v8  ;;  %v1543_v21 = vadd.f32 %v1527_v56, %v1494_v33  ;;  %v1530_v18 = vmul.f32 %v3623_v41, %v4004_v31  ;;  %v1662_v27 = vmul.f32 %v3639_v15, %v1645_v28  ;;  %v1652_v17 = vld [vmem:[#allocation2 + $0x191] sm:$0xff]  ;;  %v1657_v41 = vld [vmem:[#allocation2 + $0x3a1] sm:$0xff] }
 0x220   :  { %4595 = vst [vmem:[#allocation35_spill] sm:$0xff] %v3980_v29  ;;  %v1542_v10 = vadd.f32 %v1526_v14, %v1493_v22  ;;  %v1651_v29 = vld [vmem:[#allocation2 + $0x181] sm:$0xff]  ;;  %v1544_v3 = vadd.f32 %v1528_v49, %v1495_v5  ;;  %v1545_v20 = vadd.f32 %v1529_v54, %v1496_v16  ;;  %v1654_v4 = vld [vmem:[#allocation2 + $0x371] sm:$0xff]  ;;  %v1663_v8 = vmul.f32 %v3639_v15, %v1646_v48 }
 0x221   :  { %4596 = vst [vmem:[#allocation36_spill] sm:$0xff] %v3982_v55  ;;  %v1649_v55 = vld [vmem:[#allocation2 + $0x161] sm:$0xff]  ;;  %v1664_v22 = vmul.f32 %v3639_v15, %v1647_v32  ;;  %v1665_v33 = vmul.f32 %v3639_v15, %v1648_v38  ;;  %v1546_v46 = vadd.f32 %v1530_v18, %v1497_v50  ;;  %v1656_v56 = vld [vmem:[#allocation2 + $0x391] sm:$0xff]  ;;  %v1668_v35 = vmul.f32 %v3639_v15, %v1651_v29 }
 0x222   :  { %4597 = vst [vmem:[#allocation37_spill] sm:$0xff] %v3984_v59  ;;  %v1650_v59 = vld [vmem:[#allocation2 + $0x171] sm:$0xff]  ;;  %v1655_v14 = vld [vmem:[#allocation2 + $0x381] sm:$0xff]  ;;  %v1666_v5 = vmul.f32 %v3639_v15, %v1649_v55  ;;  %v1589_v16 = vadd.f32 %v3843_v13, %v1540_v24  ;;  %v1590_v28 = vadd.f32 %v3854_v36, %v1541_v30  ;;  %v1591_v49 = vadd.f32 %v3865_v61, %v1542_v10 }
 0x223   :  { %4598 = vst [vmem:[#allocation38_spill] sm:$0xff] %v3989_v53  ;;  %v1653_v53 = vld [vmem:[#allocation2 + $0x361] sm:$0xff]  ;;  %v1667_v7 = vmul.f32 %v3639_v15, %v1650_v59  ;;  %v1592_v48 = vadd.f32 %v3873_v43, %v1543_v21  ;;  %v1658_v32 = vld [vmem:[#allocation2 + $0x3b1] sm:$0xff]  ;;  %v1593_v54 = vadd.f32 %v3885_v12, %v1544_v3  ;;  %v1669_v18 = vmul.f32 %v3639_v15, %v1652_v17 }
 0x224   :  { %v1659_v38 = vld [vmem:[#allocation2 + $0x3c1] sm:$0xff]  ;;  %v1660_v50 = vld [vmem:[#allocation2 + $0x3d1] sm:$0xff]  ;;  %v1670_v55 = vmul.f32 %v3639_v15, %v1653_v53  ;;  %v1671_v59 = vmul.f32 %v3639_v15, %v1654_v4  ;;  %v1594_v29 = vadd.f32 %v3901_v57, %v1545_v20  ;;  %v1672_v13 = vmul.f32 %v3639_v15, %v1655_v14 }
 0x225   :  { %v1673_v36 = vmul.f32 %v3639_v15, %v1656_v56  ;;  %v1674_v61 = vmul.f32 %v3639_v15, %v1657_v41  ;;  %v1595_v43 = vadd.f32 %v3917_v60, %v1546_v46  ;;  %v1675_v24 = vmul.f32 %v3639_v15, %v1658_v32  ;;  %v1709_v56 = vld [vmem:[#allocation2 + $0x2c0] sm:$0xff]  ;;  %v4601_v41 = vld [vmem:[#allocation12_spill] sm:$0xff] }
 0x226   :  { %v1676_v12 = vmul.f32 %v3639_v15, %v1659_v38  ;;  %v1677_v30 = vmul.f32 %v3639_v15, %v1660_v50  ;;  %v1638_v53 = vadd.f32 %v3904_v44, %v1589_v16  ;;  %v1639_v4 = vadd.f32 %v3907_v23, %v1590_v28  ;;  %v4603_v16 = vld [vmem:[#allocation25_spill] sm:$0xff]  ;;  %v4604_v28 = vld [vmem:[#allocation26_spill] sm:$0xff]  ;;  %v4605_v32 = vld [vmem:[#allocation28_spill] sm:$0xff] }
 0x227   :  { %v1640_v57 = vadd.f32 %v3910_v25, %v1591_v49  ;;  %v1641_v10 = vadd.f32 %v3920_v1, %v1592_v48  ;;  %v1642_v21 = vadd.f32 %v3923_v37, %v1593_v54  ;;  %v1678_v3 = vadd.f32 %v1662_v27, %v3962_v51  ;;  %v4083_v48 = vld [vmem:[%s4409_s4 + $0x8] ss:$0 sm:$0xff]  ;;  %v4606_v54 = vld [vmem:[#allocation6_spill] sm:$0xff] }
 0x228   :  { %v1679_v60 = vadd.f32 %v1663_v8, %v3971_v39  ;;  %v1680_v20 = vadd.f32 %v1664_v22, %v3974_v40  ;;  %v1643_v17 = vadd.f32 %v3926_v26, %v1594_v29  ;;  %v1681_v15 = vadd.f32 %v1665_v33, %v3987_v6  ;;  %v1701_v40 = vld [vmem:[#allocation2 + $0x80] sm:$0xff] }
 0x229   :  { %v1682_v44 = vadd.f32 %v1666_v5, %v3992_v52  ;;  %v1683_v23 = vadd.f32 %v1667_v7, %v3999_v9  ;;  %v1644_v25 = vadd.f32 %v3959_v42, %v1595_v43  ;;  %v1684_v1 = vadd.f32 %v1668_v35, %v4002_v34  ;;  %v4599_v34 = vld [vmem:[#allocation4_spill] sm:$0xff] }
 0x22a   :  { %v1685_v46 = vadd.f32 %v1669_v18, %v1636_v2  ;;  %v1686_v37 = vadd.f32 %v1670_v55, %v1637_v19  ;;  %v1687_v14 = vadd.f32 %v1671_v59, %v1638_v53  ;;  %v1688_v51 = vadd.f32 %v1672_v13, %v1639_v4  ;;  %v4600_v19 = vld [vmem:[#allocation5_spill] sm:$0xff]  ;;  %v4607_v18 = vld [vmem:[#allocation3_spill] sm:$0xff]  ;;  %v4609_v13 = vld [vmem:[#allocation30_spill] sm:$0xff] }
 0x22b   :  { %v1689_v27 = vadd.f32 %v1673_v36, %v1640_v57  ;;  %v1690_v39 = vadd.f32 %v1674_v61, %v1641_v10  ;;  %v1691_v8 = vadd.f32 %v1675_v24, %v1642_v21  ;;  %v1711_v26 = vmul.f32 %v3625_v47, %v3678_v63  ;;  %v4608_v59 = vld [vmem:[#allocation7_spill] sm:$0xff]  ;;  %v4610_v61 = vld [vmem:[#allocation32_spill] sm:$0xff]  ;;  %v4611_v24 = vld [vmem:[#allocation33_spill] sm:$0xff] }
 0x22c   :  { %v1712_v6 = vmul.f32 %v3625_v47, %v3683_v58  ;;  %v1713_v52 = vmul.f32 %v3625_v47, %v3685_v62  ;;  %v1692_v42 = vadd.f32 %v1676_v12, %v1643_v17  ;;  %v1714_v9 = vmul.f32 %v3625_v47, %v3692_v45  ;;  %v4602_v62 = vld [vmem:[#allocation13_spill] sm:$0xff]  ;;  %v4612_v4 = vld [vmem:[#allocation8_spill] sm:$0xff] }
 0x22d   :  { %v1715_v2 = vmul.f32 %v3625_v47, %v4599_v34  ;;  %v1716_v22 = vmul.f32 %v3625_v47, %v4600_v19  ;;  %v1693_v33 = vadd.f32 %v1677_v30, %v1644_v25  ;;  %v1717_v63 = vmul.f32 %v3625_v47, %v4601_v41  ;;  %v4613_v25 = vld [vmem:[#allocation9_spill] sm:$0xff] }
 0x22e   :  { %v1727_v5 = vadd.f32 %v1711_v26, %v1678_v3  ;;  %v1728_v58 = vadd.f32 %v1712_v6, %v1679_v60  ;;  %v1718_v7 = vmul.f32 %v3625_v47, %v1701_v40  ;;  %v1719_v35 = vmul.f32 %v3625_v47, %v4602_v62  ;;  %v4614_v6 = vld [vmem:[#allocation16_spill] sm:$0xff]  ;;  %v4615_v34 = vld [vmem:[#allocation17_spill] sm:$0xff]  ;;  %v4619_v62 = vld [vmem:[#allocation19_spill] sm:$0xff] }
 0x22f   :  { %v1720_v45 = vmul.f32 %v3625_v47, %v4603_v16  ;;  %v1721_v49 = vmul.f32 %v3625_v47, %v4604_v28  ;;  %v1722_v38 = vmul.f32 %v3625_v47, %v4605_v32  ;;  %v1729_v50 = vadd.f32 %v1713_v52, %v1680_v20  ;;  %v4620_v28 = vld [vmem:[#allocation14_spill] sm:$0xff] }
 0x230   :  { %v1760_v55 = vmul.f32 %v4607_v18, %v4606_v54  ;;  %v1761_v29 = vmul.f32 %v4607_v18, %v4608_v59  ;;  %v1723_v36 = vmul.f32 %v3625_v47, %v4609_v13  ;;  %v1724_v43 = vmul.f32 %v3625_v47, %v4610_v61  ;;  %v4622_v54 = vld [vmem:[#allocation23_spill] sm:$0xff] }
 0x231   :  { %v1725_v12 = vmul.f32 %v3625_v47, %v4611_v24  ;;  %v1726_v30 = vmul.f32 %v3625_v47, %v1709_v56  ;;  %v1730_v53 = vadd.f32 %v1714_v9, %v1681_v15  ;;  %v1762_v57 = vmul.f32 %v4607_v18, %v4612_v4  ;;  %v4616_v56 = vld [vmem:[#allocation10_spill] sm:$0xff] }
 0x232   :  { %v1776_v10 = vadd.f32 %v1760_v55, %v1727_v5  ;;  %v1777_v21 = vadd.f32 %v1761_v29, %v1728_v58  ;;  %v1731_v3 = vadd.f32 %v1715_v2, %v1682_v44  ;;  %v1732_v60 = vadd.f32 %v1716_v22, %v1683_v23  ;;  %v1750_v44 = vld [vmem:[#allocation2 + $0x110] sm:$0xff]  ;;  %v4623_v55 = vld [vmem:[#allocation15_spill] sm:$0xff]  ;;  %v4624_v29 = vld [vmem:[#allocation24_spill] sm:$0xff] }
 0x233   :  { %v1733_v20 = vadd.f32 %v1717_v63, %v1684_v1  ;;  %v1734_v17 = vadd.f32 %v1718_v7, %v1685_v46  ;;  %v1763_v40 = vmul.f32 %v4607_v18, %v4613_v25  ;;  %v1778_v26 = vadd.f32 %v1762_v57, %v1729_v50  ;;  %v4617_v1 = vld [vmem:[#allocation18_spill] sm:$0xff]  ;;  %v4627_v57 = vld [vmem:[#allocation29_spill] sm:$0xff] }
 0x234   :  { %v1809_v52 = vmul.f32 %v4083_v48, %v4614_v6  ;;  %v1810_v47 = vmul.f32 %v4083_v48, %v4615_v34  ;;  %v1735_v15 = vadd.f32 %v1719_v35, %v1686_v37  ;;  %v1736_v9 = vadd.f32 %v1720_v45, %v1687_v14  ;;  %v4618_v37 = vld [vmem:[#allocation11_spill] sm:$0xff] }
 0x235   :  { %v1737_v19 = vadd.f32 %v1721_v49, %v1688_v51  ;;  %v1764_v41 = vmul.f32 %v4607_v18, %v4616_v56  ;;  %v1779_v23 = vadd.f32 %v1763_v40, %v1730_v53  ;;  %v1811_v46 = vmul.f32 %v4083_v48, %v4617_v1  ;;  %v4621_v49 = vld [vmem:[#allocation20_spill] sm:$0xff]  ;;  %v4626_v53 = vld [vmem:[#allocation27_spill] sm:$0xff] }
 0x236   :  { %v4110_v2 = vadd.f32 %v1809_v52, %v1776_v10  ;;  %v4112_v22 = vadd.f32 %v1810_v47, %v1777_v21  ;;  %v1738_v63 = vadd.f32 %v1722_v38, %v1689_v27  ;;  %v4114_v5 = vadd.f32 %v1723_v36, %v1690_v39  ;;  %v4628_v21 = vld [vmem:[#allocation31_spill] sm:$0xff] }
 0x237   :  { %v4116_v58 = vadd.f32 %v1724_v43, %v1691_v8  ;;  %v1765_v14 = vmul.f32 %v4607_v18, %v4618_v37  ;;  %v4120_v51 = vadd.f32 %v1725_v12, %v1692_v42  ;;  %v1780_v7 = vadd.f32 %v1764_v41, %v1731_v3  ;;  %v4625_v43 = vld [vmem:[#allocation21_spill] sm:$0xff] }
 0x238   :  { %v1812_v35 = vmul.f32 %v4083_v48, %v4619_v62  ;;  %v4124_v16 = vadd.f32 %v1811_v46, %v1778_v26  ;;  %v4126_v45 = vadd.f32 %v1726_v30, %v1693_v33  ;;  %v1766_v27 = vmul.f32 %v4607_v18, %v4620_v28  ;;  %v4629_v26 = vld [vmem:[#allocation22_spill] sm:$0xff] }
 0x239   :  { %v1767_v39 = vmul.f32 %v4607_v18, %v1750_v44  ;;  %v1781_v8 = vadd.f32 %v1765_v14, %v1732_v60  ;;  %v1813_v32 = vmul.f32 %v4083_v48, %v4621_v49  ;;  %v1843_v42 = vsel %vm508_vm2, %v4110_v2, 0.0  ;;  %v1799_v60 = vld [vmem:[#allocation2 + $0x81] sm:$0xff] }
 0x23a   :  { %v4133_v38 = vadd.f32 %v1812_v35, %v1779_v23  ;;  %v1844_v50 = vsel %vm508_vm2, %v4112_v22, 0.0  ;;  %v1768_v33 = vmul.f32 %v4607_v18, %v4622_v54  ;;  %v1769_v59 = vmul.f32 %v4607_v18, %v4623_v55  ;;  %v4630_v35 = vld [vmem:[#allocation34_spill] sm:$0xff]  ;;  %v4631_v49 = vld [vmem:[#allocation35_spill] sm:$0xff] }
 0x23b   :  { %v1770_v13 = vmul.f32 %v4607_v18, %v4624_v29  ;;  %v1845_v36 = vadd.f32 %v1844_v50, %v1843_v42  ;;  %v1782_v61 = vadd.f32 %v1766_v27, %v1733_v20  ;;  %v1814_v24 = vmul.f32 %v4083_v48, %v4625_v43  ;;  %v1758_v20 = vld [vmem:[#allocation2 + $0x350] sm:$0xff]  ;;  %v4632_v29 = vld [vmem:[#allocation36_spill] sm:$0xff] }
 0x23c   :  { %v4147_v12 = vadd.f32 %v1813_v32, %v1780_v7  ;;  %v1846_v30 = vsel %vm508_vm2, %v4124_v16, 0.0  ;;  %v1771_v4 = vmul.f32 %v4607_v18, %v4626_v53  ;;  %v1772_v10 = vmul.f32 %v4607_v18, %v4627_v57 }
 0x23d   :  { %v1773_v3 = vmul.f32 %v4607_v18, %v4628_v21  ;;  %v1847_v25 = vadd.f32 %v1846_v30, %v1845_v36  ;;  %v1783_v40 = vadd.f32 %v1767_v39, %v1734_v17  ;;  %v1815_v6 = vmul.f32 %v4083_v48, %v4629_v26  ;;  %v4634_v26 = vld [vmem:[#allocation38_spill] sm:$0xff] }
 0x23e   :  { %v4159_v52 = vadd.f32 %v1814_v24, %v1781_v8  ;;  %v1848_v34 = vsel %vm508_vm2, %v4133_v38, 0.0  ;;  %v1774_v47 = vmul.f32 %v4607_v18, %v3948_v11  ;;  %v1881_v41 = vmul.f32 %v4110_v2, %v4110_v2 }
 0x23f   :  { %v1849_v56 = vadd.f32 %v1848_v34, %v1847_v25  ;;  %v1882_v44 = vmul.f32 %v4112_v22, %v4112_v22  ;;  %v1784_v23 = vadd.f32 %v1768_v33, %v1735_v15  ;;  %v1816_v17 = vmul.f32 %v4083_v48, %v1799_v60 }
 0x240   :  { %v4170_v1 = vadd.f32 %v1815_v6, %v1782_v61  ;;  %v1850_v46 = vsel %vm508_vm2, %v4147_v12, 0.0  ;;  %v1775_v37 = vmul.f32 %v4607_v18, %v1758_v20  ;;  %v1785_v14 = vadd.f32 %v1769_v59, %v1736_v9 }
 0x241   :  { %v1851_v7 = vadd.f32 %v1850_v46, %v1849_v56  ;;  %v1883_v11 = vmul.f32 %v4124_v16, %v4124_v16  ;;  %v1786_v62 = vadd.f32 %v1770_v13, %v1737_v19  ;;  %v1817_v28 = vmul.f32 %v4083_v48, %v4630_v35 }
 0x242   :  { %v4179_v27 = vadd.f32 %v1816_v17, %v1783_v40  ;;  %v1852_v15 = vsel %vm508_vm2, %v4159_v52, 0.0  ;;  %v1884_v8 = vmul.f32 %v4133_v38, %v4133_v38  ;;  %v1897_v18 = vsel %vm508_vm2, %v1881_v41, 0.0 }
 0x243   :  { %v1853_v39 = vadd.f32 %v1852_v15, %v1851_v7  ;;  %v1898_v9 = vsel %vm508_vm2, %v1882_v44, 0.0  ;;  %v1818_v32 = vmul.f32 %v4083_v48, %v4631_v49  ;;  %v4189_v19 = vadd.f32 %v1817_v28, %v1784_v23 }
 0x244   :  { %v1854_v42 = vsel %vm508_vm2, %v4170_v1, 0.0  ;;  %v1899_v50 = vadd.f32 %v1898_v9, %v1897_v18  ;;  %v1787_v54 = vadd.f32 %v1771_v4, %v1738_v63  ;;  %v1885_v55 = vmul.f32 %v4147_v12, %v4147_v12  ;;  %v4633_v4 = vld [vmem:[#allocation37_spill] sm:$0xff] }
 0x245   :  { %v1855_v33 = vadd.f32 %v1854_v42, %v1853_v39  ;;  %v1900_v59 = vsel %vm508_vm2, %v1883_v11, 0.0  ;;  %v1819_v13 = vmul.f32 %v4083_v48, %v4632_v29  ;;  %v4198_v36 = vadd.f32 %v1818_v32, %v1785_v14 }
 0x246   :  { %v1856_v61 = vsel %vm508_vm2, %v4179_v27, 0.0  ;;  %v1901_v43 = vadd.f32 %v1900_v59, %v1899_v50  ;;  %v1788_v24 = vadd.f32 %v1772_v10, %v4114_v5  ;;  %v1886_v63 = vmul.f32 %v4159_v52, %v4159_v52 }
 0x247   :  { %v1857_v30 = vadd.f32 %v1856_v61, %v1855_v33  ;;  %v1902_v53 = vsel %vm508_vm2, %v1884_v8, 0.0  ;;  %v1820_v57 = vmul.f32 %v4083_v48, %v4633_v4  ;;  %v4208_v21 = vadd.f32 %v1819_v13, %v1786_v62  ;;  %v1807_v62 = vld [vmem:[#allocation2 + $0x2c1] sm:$0xff] }
 0x248   :  { %v1858_v60 = vsel %vm508_vm2, %v4189_v19, 0.0  ;;  %v1903_v25 = vadd.f32 %v1902_v53, %v1901_v43  ;;  %v1789_v20 = vadd.f32 %v1773_v3, %v4116_v58  ;;  %v1887_v5 = vmul.f32 %v4170_v1, %v4170_v1 }
 0x249   :  { %v1859_v40 = vadd.f32 %v1858_v60, %v1857_v30  ;;  %v1904_v10 = vsel %vm508_vm2, %v1885_v55, 0.0  ;;  %v1821_v6 = vmul.f32 %v4083_v48, %v4634_v26  ;;  %v4218_v34 = vadd.f32 %v1820_v57, %v1787_v54 }
 0x24a   :  { %v1860_v56 = vsel %vm508_vm2, %v4198_v36, 0.0  ;;  %v1905_v41 = vadd.f32 %v1904_v10, %v1903_v25  ;;  %v1790_v44 = vadd.f32 %v1774_v47, %v4120_v51  ;;  %v1888_v58 = vmul.f32 %v4179_v27, %v4179_v27 }
 0x24b   :  { %v1861_v23 = vadd.f32 %v1860_v56, %v1859_v40  ;;  %v1906_v3 = vsel %vm508_vm2, %v1886_v63, 0.0  ;;  %v1822_v17 = vmul.f32 %v4083_v48, %v3994_v0  ;;  %v4228_v46 = vadd.f32 %v1821_v6, %v1788_v24 }
 0x24c   :  { %v1862_v14 = vsel %vm508_vm2, %v4208_v21, 0.0  ;;  %v1907_v7 = vadd.f32 %v1906_v3, %v1905_v41  ;;  %v1791_v11 = vadd.f32 %v1775_v37, %v4126_v45  ;;  %v1889_v51 = vmul.f32 %v4189_v19, %v4189_v19 }
 0x24d   :  { %v1863_v35 = vadd.f32 %v1862_v14, %v1861_v23  ;;  %v1908_v47 = vsel %vm508_vm2, %v1887_v5, 0.0  ;;  %v1823_v28 = vmul.f32 %v4083_v48, %v4004_v31  ;;  %v4238_v15 = vadd.f32 %v1822_v17, %v1789_v20 }
 0x24e   :  { %v1864_v0 = vsel %vm508_vm2, %v4218_v34, 0.0  ;;  %v1909_v39 = vadd.f32 %v1908_v47, %v1907_v7  ;;  %v1890_v45 = vmul.f32 %v4198_v36, %v4198_v36  ;;  %v1910_v37 = vsel %vm508_vm2, %v1888_v58, 0.0 }
 0x24f   :  { %v1865_v8 = vadd.f32 %v1864_v0, %v1863_v35  ;;  %v1824_v18 = vmul.f32 %v4083_v48, %v1807_v62  ;;  %v4246_v9 = vadd.f32 %v1823_v28, %v1790_v44  ;;  %v1866_v49 = vsel %vm508_vm2, %v4228_v46, 0.0 }
 0x250   :  { %v1911_v31 = vadd.f32 %v1910_v37, %v1909_v39  ;;  %v1891_v42 = vmul.f32 %v4208_v21, %v4208_v21  ;;  %v1912_v50 = vsel %vm508_vm2, %v1889_v51, 0.0  ;;  %v1868_v33 = vsel %vm508_vm2, %v4238_v15, 0.0 }
 0x251   :  { %v1867_v32 = vadd.f32 %v1866_v49, %v1865_v8  ;;  %v4253_v54 = vadd.f32 %v1824_v18, %v1791_v11  ;;  %v1892_v48 = vmul.f32 %v4218_v34, %v4218_v34  ;;  %v1914_v29 = vsel %vm508_vm2, %v1890_v45, 0.0 }
 0x252   :  { %v1913_v55 = vadd.f32 %v1912_v50, %v1911_v31  ;;  %v1870_v13 = vsel %vm508_vm2, %v4246_v9, 0.0  ;;  %v1893_v24 = vmul.f32 %v4228_v46, %v4228_v46  ;;  %v1916_v30 = vsel %vm508_vm2, %v1891_v42, 0.0 }
 0x253   :  { %v1869_v59 = vadd.f32 %v1868_v33, %v1867_v32  ;;  %v1872_v63 = vsel %vm508_vm2, %v4253_v54, 0.0  ;;  %v1894_v57 = vmul.f32 %v4238_v15, %v4238_v15  ;;  %v1918_v60 = vsel %vm508_vm2, %v1892_v48, 0.0 }
 0x254   :  { %v1915_v61 = vadd.f32 %v1914_v29, %v1913_v55  ;;  %v1895_v40 = vmul.f32 %v4246_v9, %v4246_v9  ;;  %v1920_v5 = vsel %vm508_vm2, %v1893_v24, 0.0  ;;  %v1896_v6 = vmul.f32 %v4253_v54, %v4253_v54  ;;  %v1841_v24 = vld [vmem:[%s4412_s5] sm:$0x1] }
 0x255   :  { %v1871_v43 = vadd.f32 %v1870_v13, %v1869_v59  ;;  %v1922_v56 = vsel %vm508_vm2, %v1894_v57, 0.0 }
 0x256   :  { %v1917_v53 = vadd.f32 %v1916_v30, %v1915_v61  ;;  %v1924_v23 = vsel %vm508_vm2, %v1895_v40, 0.0  ;;  %v1926_v17 = vsel %vm508_vm2, %v1896_v6, 0.0 }
 0x257   :  { %v1873_v4 = vadd.f32 %v1872_v63, %v1871_v43 }
 0x258   :  { %v1919_v25 = vadd.f32 %v1918_v60, %v1917_v53  ;;  %v4306_v60 = vld [vmem:[%s4410_s6] ss:$0 sm:$0xff] }
 0x259   :  { %v1874_v20 = vrot.slane %v1873_v4, 4 }
 0x25a   :  { %v1921_v10 = vadd.f32 %v1920_v5, %v1919_v25 }
 0x25b   :  { %v1875_v26 = vadd.f32 %v1874_v20, %v1873_v4 }
 0x25c   :  { %v1923_v41 = vadd.f32 %v1922_v56, %v1921_v10 }
 0x25d   :  { %v1876_v44 = vrot.slane %v1875_v26, 2 }
 0x25e   :  { %v1925_v58 = vadd.f32 %v1924_v23, %v1923_v41 }
 0x25f   :  { %v1877_v3 = vadd.f32 %v1876_v44, %v1875_v26 }
 0x260   :  { %v1927_v14 = vadd.f32 %v1926_v17, %v1925_v58 }
 0x261   :  { %v1878_v7 = vrot.slane %v1877_v3, 1 }
 0x262   :  { %v1928_v11 = vrot.slane %v1927_v14, 4 }
 0x263   :  { %v1879_v62 = vadd.f32 %v1878_v7, %v1877_v3 }
 0x264   :  { %v1929_v35 = vadd.f32 %v1928_v11, %v1927_v14 }
 0x265   :  { %v4278_v51 = vmul.f32 0.0078125, %v1879_v62 }
 0x266   :  { %v1930_v47 = vrot.slane %v1929_v35, 2 }
 0x267   :  { %v1944_v0 = vsub.f32 %v4170_v1, %v4278_v51  ;;  %v1943_v8 = vsub.f32 %v4159_v52, %v4278_v51  ;;  %v1942_v45 = vsub.f32 %v4147_v12, %v4278_v51  ;;  %v1941_v37 = vsub.f32 %v4133_v38, %v4278_v51 }
 0x268   :  { %v1931_v28 = vadd.f32 %v1930_v47, %v1929_v35  ;;  %v1940_v18 = vsub.f32 %v4124_v16, %v4278_v51  ;;  %v1939_v49 = vsub.f32 %v4112_v22, %v4278_v51  ;;  %v1938_v31 = vsub.f32 %v4110_v2, %v4278_v51  ;;  %v2034_v2 = vld [vmem:[%s4413_s7] sm:$0xff] }
 0x269   :  { %v1935_v42 = vmul.f32 %v4278_v51, %v4278_v51  ;;  %v1953_v4 = vsub.f32 %v4253_v54, %v4278_v51  ;;  %v1952_v25 = vsub.f32 %v4246_v9, %v4278_v51  ;;  %v1951_v5 = vsub.f32 %v4238_v15, %v4278_v51 }
 0x26a   :  { %v1932_v39 = vrot.slane %v1931_v28, 1  ;;  %v1950_v56 = vsub.f32 %v4228_v46, %v4278_v51  ;;  %v1949_v15 = vsub.f32 %v4218_v34, %v4278_v51  ;;  %v1948_v46 = vsub.f32 %v4208_v21, %v4278_v51 }
 0x26b   :  { %v1947_v34 = vsub.f32 %v4198_v36, %v4278_v51  ;;  %v1946_v21 = vsub.f32 %v4189_v19, %v4278_v51  ;;  %v1945_v36 = vsub.f32 %v4179_v27, %v4278_v51 }
 0x26c   :  { %v1933_v32 = vadd.f32 %v1932_v39, %v1931_v28 }
 0x26e   :  { %v1934_v50 = vmul.f32 0.0078125, %v1933_v32 }
 0x270   :  { %v1936_v33 = vsub.f32 %v1934_v50, %v1935_v42 }
 0x272   :  { %v1937_v55 = vmax.f32 %v1936_v33, 0.0 }
 0x274   :  { %v1954_v59 = vadd.f32 1e-05, %v1937_v55 }
 0x276   :  { %2242 = vrsqrt.f32 %v1954_v59  ;;  %vm1961_vm8 = vweird.f32 %v1954_v59 }
 0x27c   :  { %v2243_v48 = vpop.eup %2242 }
 0x27d   :  { %v1956_v29 = vmul.f32 %v2243_v48, %v1954_v59  ;;  %vm1962_vm7 = vweird.f32 %v2243_v48 }
 0x27e   :  { %vm1963_vm9 = vmor %vm1961_vm8, %vm1962_vm7 }
 0x27f   :  { %v1957_v13 = vmul.f32 %v2243_v48, %v1956_v29 }
 0x281   :  { %v1958_v61 = vmul.f32 0.5, %v1957_v13 }
 0x283   :  { %v1959_v43 = vsub.f32 1.5, %v1958_v61 }
 0x285   :  { %v1960_v30 = vmul.f32 %v2243_v48, %v1959_v43 }
 0x287   :  { %v1964_v63 = vsel %vm1963_vm9, %v2243_v48, %v1960_v30 }
 0x288   :  { %v1965_v53 = vmul.f32 %v1964_v63, %v1841_v24 }
 0x28a   :  { %v4301_v57 = vperm.slane %v1965_v53, 0 }
 0x28c   :  { %v1982_v20 = vmul.f32 %v4301_v57, %v1953_v4  ;;  %v1981_v40 = vmul.f32 %v4301_v57, %v1952_v25  ;;  %v1980_v26 = vmul.f32 %v4301_v57, %v1951_v5  ;;  %v1979_v23 = vmul.f32 %v4301_v57, %v1950_v56 }
 0x28d   :  { %v1978_v14 = vmul.f32 %v4301_v57, %v1949_v15  ;;  %v1977_v35 = vmul.f32 %v4301_v57, %v1948_v46  ;;  %v1976_v32 = vmul.f32 %v4301_v57, %v1947_v34  ;;  %v1975_v55 = vmul.f32 %v4301_v57, %v1946_v21 }
 0x28e   :  { %v2001_v10 = vadd.f32 %v4306_v60, %v1982_v20  ;;  %v2000_v54 = vadd.f32 %v4306_v60, %v1981_v40  ;;  %v1999_v9 = vadd.f32 %v4306_v60, %v1980_v26  ;;  %v1998_v17 = vadd.f32 %v4306_v60, %v1979_v23 }
 0x28f   :  { %v1997_v62 = vadd.f32 %v4306_v60, %v1978_v14  ;;  %v1996_v39 = vadd.f32 %v4306_v60, %v1977_v35  ;;  %v1995_v33 = vadd.f32 %v4306_v60, %v1976_v32  ;;  %v1994_v29 = vadd.f32 %v4306_v60, %v1975_v55 }
 0x290   :  { %v2017_v6 = vmax.f32 %v2001_v10, 0.0  ;;  %v2016_v44 = vmax.f32 %v2000_v54, 0.0  ;;  %v2015_v3 = vmax.f32 %v1999_v9, 0.0  ;;  %v2014_v11 = vmax.f32 %v1998_v17, 0.0 }
 0x291   :  { %v2013_v28 = vmax.f32 %v1997_v62, 0.0  ;;  %v2012_v50 = vmax.f32 %v1996_v39, 0.0  ;;  %v2011_v48 = vmax.f32 %v1995_v33, 0.0  ;;  %v1974_v13 = vmul.f32 %v4301_v57, %v1945_v36 }
 0x292   :  { %v2033_v41 = vmin.f32 %v2017_v6, 6.0  ;;  %v2032_v58 = vmin.f32 %v2016_v44, 6.0  ;;  %v2031_v7 = vmin.f32 %v2015_v3, 6.0  ;;  %v2030_v47 = vmin.f32 %v2014_v11, 6.0 }
 0x293   :  { %v2029_v42 = vmin.f32 %v2013_v28, 6.0  ;;  %v2028_v59 = vmin.f32 %v2012_v50, 6.0  ;;  %v2027_v19 = vmin.f32 %v2011_v48, 6.0  ;;  %v2010_v61 = vmax.f32 %v1994_v29, 0.0  ;;  %v2106_v28 = vld [vmem:[%s4414_s8] sm:$0xff] }
 0x294   :  { %2213 = vmatpush.xpose.msk.msrb.mxu1 %vm508_vm2, %v2033_v41  ;;  %v1993_v43 = vadd.f32 %v4306_v60, %v1974_v13  ;;  %v1973_v24 = vmul.f32 %v4301_v57, %v1944_v0  ;;  %v1972_v53 = vmul.f32 %v4301_v57, %v1943_v8  ;;  %v1971_v1 = vmul.f32 %v4301_v57, %v1942_v45 }
 0x295   :  { %v2026_v27 = vmin.f32 %v2010_v61, 6.0  ;;  %v1970_v52 = vmul.f32 %v4301_v57, %v1941_v37  ;;  %v1969_v12 = vmul.f32 %v4301_v57, %v1940_v18  ;;  %v1968_v38 = vmul.f32 %v4301_v57, %v1939_v49 }
 0x296   :  { %v2009_v30 = vmax.f32 %v1993_v43, 0.0  ;;  %v1992_v63 = vadd.f32 %v4306_v60, %v1973_v24  ;;  %v1991_v20 = vadd.f32 %v4306_v60, %v1972_v53  ;;  %v1990_v5 = vadd.f32 %v4306_v60, %v1971_v1 }
 0x297   :  { %v1989_v54 = vadd.f32 %v4306_v60, %v1970_v52  ;;  %v1988_v6 = vadd.f32 %v4306_v60, %v1969_v12  ;;  %v1987_v41 = vadd.f32 %v4306_v60, %v1968_v38  ;;  %v1967_v16 = vmul.f32 %v4301_v57, %v1938_v31 }
 0x298   :  { %2214 = vmatpush.xpose.msk.msrb.mxu1 %vm508_vm2, %v2032_v58  ;;  %v2025_v4 = vmin.f32 %v2009_v30, 6.0  ;;  %v2008_v25 = vmax.f32 %v1992_v63, 0.0  ;;  %v2007_v40 = vmax.f32 %v1991_v20, 0.0  ;;  %v2006_v10 = vmax.f32 %v1990_v5, 0.0 }
 0x299   :  { %v2005_v26 = vmax.f32 %v1989_v54, 0.0  ;;  %v2004_v56 = vmax.f32 %v1988_v6, 0.0  ;;  %v2003_v44 = vmax.f32 %v1987_v41, 0.0  ;;  %v1986_v9 = vadd.f32 %v4306_v60, %v1967_v16 }
 0x29a   :  { %v2024_v0 = vmin.f32 %v2008_v25, 6.0  ;;  %v2023_v8 = vmin.f32 %v2007_v40, 6.0  ;;  %v2022_v45 = vmin.f32 %v2006_v10, 6.0  ;;  %v2247_v57 = vmov 0  }
 0x29b   :  { %v2021_v37 = vmin.f32 %v2005_v26, 6.0  ;;  %v2020_v18 = vmin.f32 %v2004_v56, 6.0  ;;  %v2019_v22 = vmin.f32 %v2003_v44, 6.0  ;;  %v2002_v49 = vmax.f32 %v1986_v9, 0.0  ;;  %2235 = vset.pattern.permute.xlu1 %v2247_v57  ;;  %2236 = vset.pattern.permute.xlu0 %v2247_v57 }
 0x29c   :  { %2215 = vmatpush.xpose.msk.msrb.mxu1 %vm508_vm2, %v2031_v7 }
 0x29d   :  { %v2018_v23 = vmin.f32 %v2002_v49, 6.0 }
 0x2a0   :  { %2216 = vmatpush.xpose.msk.msrb.mxu1 %vm508_vm2, %v2030_v47 }
 0x2a4   :  { %2217 = vmatpush.xpose.msk.msrb.mxu1 %vm508_vm2, %v2029_v42  ;;  %v2107_v42 = vld [vmem:[%s4415_s9] sm:$0xff] }
 0x2a8   :  { %2218 = vmatpush.xpose.msk.msrb.mxu1 %vm508_vm2, %v2028_v59 }
 0x2ac   :  { %2219 = vmatpush.xpose.msk.msrb.mxu1 %vm508_vm2, %v2027_v19 }
 0x2b0   :  { %2220 = vmatpush.xpose.msk.msrb.mxu1 %vm508_vm2, %v2026_v27 }
 0x2b4   :  { %2221 = vmatpush.xpose.msk.msrb.mxu1 %vm508_vm2, %v2025_v4 }
 0x2b8   :  { %2222 = vmatpush.xpose.msk.msrb.mxu1 %vm508_vm2, %v2024_v0 }
 0x2bc   :  { %2223 = vmatpush.xpose.msk.msrb.mxu1 %vm508_vm2, %v2023_v8 }
 0x2c0   :  { %2224 = vmatpush.xpose.msk.msrb.mxu1 %vm508_vm2, %v2022_v45 }
 0x2c4   :  { %2225 = vmatpush.xpose.msk.msrb.mxu1 %vm508_vm2, %v2021_v37 }
 0x2c8   :  { %2226 = vmatpush.xpose.msk.msrb.mxu1 %vm508_vm2, %v2020_v18 }
 0x2cc   :  { %2227 = vmatpush.xpose.msk.msrb.mxu1 %vm508_vm2, %v2019_v22 }
 0x2d0   :  { %2228 = vmatpush.xpose.msk.msrb.mxu1 %vm508_vm2, %v2018_v23 }
 0x2d3   :  { %2229 = vmatmul.msk.f32.vlgmr.msrb.gmra.mxu1 %vm508_vm2, %v2034_v2 }
 0x350   :  { %v2103_v51 = vpop.f32.mrf.mxu1 }
 0x351   :  { %2108 = vadd.xlane.f32.xlu0 %v2103_v51  ;;  %v2111_v31 = vmul.f32 %v2103_v51, %v2103_v51 }
 0x359   :  { %2112 = vadd.xlane.f32.xlu0 %v2111_v31 }
 0x3c4   :  { %v2109_v60 = vpop.xlane.xlu0 %2108 }
 0x3c5   :  { %v2110_v15 = vmul.f32 0.0078125, %v2109_v60 }
 0x3c7   :  { %v2115_v3 = vmul.f32 %v2110_v15, %v2110_v15  ;;  %v2118_v33 = vsub.f32 %v2103_v51, %v2110_v15 }
 0x3cc   :  { %v2113_v58 = vpop.xlane.xlu0 %2112 }
 0x3cd   :  { %v2114_v17 = vmul.f32 0.0078125, %v2113_v58 }
 0x3cf   :  { %v2116_v14 = vsub.f32 %v2114_v17, %v2115_v3 }
 0x3d1   :  { %v2117_v46 = vmax.f32 %v2116_v14, 0.0 }
 0x3d3   :  { %v2119_v7 = vadd.f32 1e-05, %v2117_v46 }
 0x3d5   :  { %2244 = vrsqrt.f32 %v2119_v7  ;;  %vm2126_vm11 = vweird.f32 %v2119_v7 }
 0x3db   :  { %v2245_v11 = vpop.eup %2244 }
 0x3dc   :  { %v2121_v62 = vmul.f32 %v2245_v11, %v2119_v7  ;;  %vm2127_vm10 = vweird.f32 %v2245_v11 }
 0x3dd   :  { %vm2128_vm12 = vmor %vm2126_vm11, %vm2127_vm10 }
 0x3de   :  { %v2122_v35 = vmul.f32 %v2245_v11, %v2121_v62 }
 0x3e0   :  { %v2123_v34 = vmul.f32 0.5, %v2122_v35 }
 0x3e2   :  { %v2124_v47 = vsub.f32 1.5, %v2123_v34 }
 0x3e4   :  { %v2125_v39 = vmul.f32 %v2245_v11, %v2124_v47 }
 0x3e6   :  { %v2129_v32 = vsel %vm2128_vm12, %v2245_v11, %v2125_v39 }
 0x3e7   :  { %v2130_v21 = vmul.f32 %v2129_v32, %v2106_v28 }
 0x3e9   :  { %2133 = vperm.xlu1 %2235, %v2130_v21  }
 0x3f1   :  { %2139 = vperm.xlu1 %2235, %v2107_v42  }
 0x45b   :  { %v2134_v50 = vpop.permute.xlu1 %2133 }
 0x45c   :  { %v2136_v55 = vmul.f32 %v2134_v50, %v2118_v33 }
 0x463   :  { %v2140_v36 = vpop.permute.xlu1 %2139 }
 0x464   :  { %v2142_v59 = vadd.f32 %v2140_v36, %v2136_v55 }
 0x466   :  { %2143 = vst [vmem:[%s4416_s10] sm:$0xff] %v2142_v59 }

</bundles_post_ra>
